<compile_context>
chip_gen: v5e
topology: v5e:2x2
jax: 0.10.0
libtpu: 0.0.40
codegen_flags: <defaults>
</compile_context>

<pallas_src>
import functools

import jax
import jax.numpy as jnp
from jax import lax
from jax.experimental import pallas as pl
from jax.experimental.pallas import tpu as pltpu

EPS = 1e-5


# ----------------------------- Pallas kernel --------------------------------

def _block_kernel(*refs, H, W, Ho, Wo, stride, has_proj):
    """Fused BasicBlock for a `bt`-image batch tile resident in VMEM.

    relu(bn1(x)) -> conv1(3x3, stride) -> relu(bn2(.)) -> conv2(3x3, 1)
                 -> + residual (identity x | 1x1 projection of relu(bn1(x)))
    """
    if has_proj:
        (x_ref, s1_ref, b1_ref, w1_ref, s2_ref, b2_ref, w2_ref, ws_ref,
         o_ref, xp_s, h2p_s) = refs
    else:
        (x_ref, s1_ref, b1_ref, w1_ref, s2_ref, b2_ref, w2_ref,
         o_ref, xp_s, h2p_s) = refs
        ws_ref = None

    cdtype = w1_ref.dtype
    bt = x_ref.shape[0]
    cin = x_ref.shape[-1]
    cout = o_ref.shape[-1]
    m = bt * Ho * Wo

    # ---- bn1 + relu into the interior of a zero-padded VMEM scratch --------
    xp_s[...] = jnp.zeros_like(xp_s)                 # re-establish zero halo
    x = x_ref[...].astype(jnp.float32)               # (bt, H, W, Cin), f32 math
    h1 = jnp.maximum(
        x.reshape(bt * H * W, cin) * s1_ref[...] + b1_ref[...], 0.0)
    xp_s[:, 1:H + 1, 1:W + 1, :] = h1.reshape(bt, H, W, cin).astype(cdtype)
    xp = xp_s[...]                                   # (bt, H+2, W+2, Cin)

    hi = stride * (Ho - 1) + 1
    wi = stride * (Wo - 1) + 1

    # ---- conv1: 3 row-groups, kw taps concatenated along K (K = 3*Cin) -----
    # TODO(synk): for stride == 2 pre-decimate xp into phase buffers instead
    #             of strided slices per tap.
    acc1 = jnp.zeros((m, cout), jnp.float32)
    for kh in range(3):
        rows = xp[:, kh:kh + hi:stride, :, :]        # (bt, Ho, W+2, Cin)
        tap = jnp.concatenate(
            [rows[:, :, kw:kw + wi:stride, :] for kw in range(3)], axis=-1)
        acc1 += jnp.dot(tap.reshape(m, 3 * cin), w1_ref[kh],
                        preferred_element_type=jnp.float32)

    # ---- bn2 + relu into the interior of a zero-padded h2 scratch ----------
    # (Dropout would follow here; identity in eval mode.)
    h2p_s[...] = jnp.zeros_like(h2p_s)
    h2 = jnp.maximum(acc1 * s2_ref[...] + b2_ref[...], 0.0)
    h2p_s[:, 1:Ho + 1, 1:Wo + 1, :] = h2.reshape(bt, Ho, Wo, cout).astype(cdtype)
    h2p = h2p_s[...]                                 # (bt, Ho+2, Wo+2, Cout)

    # ---- conv2: 3x3 stride-1, same 3-matmul tap-concat form -----------------
    acc2 = jnp.zeros((m, cout), jnp.float32)
    for kh in range(3):
        rows = h2p[:, kh:kh + Ho, :, :]              # (bt, Ho, Wo+2, Cout)
        tap = jnp.concatenate(
            [rows[:, :, kw:kw + Wo, :] for kw in range(3)], axis=-1)
        acc2 += jnp.dot(tap.reshape(m, 3 * cout), w2_ref[kh],
                        preferred_element_type=jnp.float32)

    # ---- residual add fused in the epilogue ---------------------------------
    if has_proj:
        # convShortcut: 1x1 stride-s conv of relu(bn1(x)) (the scratch interior).
        hs = xp[:, 1:1 + hi:stride, 1:1 + wi:stride, :]
        res = jnp.dot(hs.reshape(m, cin), ws_ref[...],
                      preferred_element_type=jnp.float32)
    else:
        res = x.reshape(m, cin)                      # identity: original x

    o_ref[...] = (acc2 + res).reshape(bt, Ho, Wo, cout).astype(o_ref.dtype)


# ------------------------------- wrapper -------------------------------------

def basic_block_forward(x_nchw, params, *, stride=1, dropout_rate=0.0,
                        compute_dtype=jnp.bfloat16, batch_tile=1,
                        nhwc_out=False):
    """Pallas implementation of WideResNet BasicBlock.forward (eval semantics)."""
    del dropout_rate  # identity in inference mode
    N, Cin, H, W = x_nchw.shape
    Cout = params["conv1_w"].shape[0]
    equal_in_out = (Cin == Cout)
    if equal_in_out and stride != 1:
        raise ValueError("identity shortcut requires stride == 1 (the PyTorch "
                         "module would fail the residual add otherwise)")
    if N % batch_tile != 0:
        raise ValueError("batch_tile must divide the batch size")
    Ho = (H - 1) // stride + 1
    Wo = (W - 1) // stride + 1
    bt = batch_tile

    # Single layout conversion at the boundary; a full network should stay
    # NHWC throughout and skip both transposes.
    x_nhwc = jnp.transpose(x_nchw, (0, 2, 3, 1)).astype(jnp.float32)

    # Fold BatchNorm (running stats) into per-channel scale/bias (f32).
    s1 = params["bn1_gamma"] * lax.rsqrt(params["bn1_var"] + EPS)
    b1 = params["bn1_beta"] - params["bn1_mean"] * s1
    s2 = params["bn2_gamma"] * lax.rsqrt(params["bn2_var"] + EPS)
    b2 = params["bn2_beta"] - params["bn2_mean"] * s2

    # Conv weights as (3, 3*Cin, Cout): grouped by kh, the 3 kw taps stacked
    # along the contraction dim (matches the in-kernel kw tap concatenation).
    w1 = jnp.transpose(params["conv1_w"], (2, 3, 1, 0)).reshape(3, 3 * Cin, Cout)
    w2 = jnp.transpose(params["conv2_w"], (2, 3, 1, 0)).reshape(3, 3 * Cout, Cout)
    w1 = w1.astype(compute_dtype)
    w2 = w2.astype(compute_dtype)

    vec2 = lambda n: (0, 0)
    vec3 = lambda n: (0, 0, 0)
    img4 = lambda n: (n, 0, 0, 0)

    # TODO(synk): on v7x add pipeline_mode=pl.Buffered(1) to the constant-index
    #             weight/scale specs and a second parallel grid axis (row tiles
    #             with halo) once large-channel layers are targeted.
    in_specs = [
        pl.BlockSpec((bt, H, W, Cin), img4),          # unpadded x (batch tile)
        pl.BlockSpec((1, Cin), vec2),                 # bn1 scale
        pl.BlockSpec((1, Cin), vec2),                 # bn1 bias
        pl.BlockSpec((3, 3 * Cin, Cout), vec3),       # conv1 tap weights
        pl.BlockSpec((1, Cout), vec2),                # bn2 scale
        pl.BlockSpec((1, Cout), vec2),                # bn2 bias
        pl.BlockSpec((3, 3 * Cout, Cout), vec3),      # conv2 tap weights
    ]
    args = [x_nhwc,
            s1.reshape(1, Cin).astype(jnp.float32),
            b1.reshape(1, Cin).astype(jnp.float32),
            w1,
            s2.reshape(1, Cout).astype(jnp.float32),
            b2.reshape(1, Cout).astype(jnp.float32),
            w2]

    proj_flops = 0
    if not equal_in_out:
        ws = jnp.transpose(params["short_w"][:, :, 0, 0], (1, 0))
        in_specs.append(pl.BlockSpec((Cin, Cout), vec2))
        args.append(ws.astype(compute_dtype))
        proj_flops = 2 * N * Ho * Wo * Cin * Cout

    out_dtype = compute_dtype
    w_bytes = (w1.size + w2.size) * jnp.dtype(compute_dtype).itemsize
    cost = pl.CostEstimate(
        flops=2 * N * Ho * Wo * 9 * (Cin * Cout + Cout * Cout) + proj_flops,
        transcendentals=0,
        bytes_accessed=int(x_nhwc.size * 4
                           + N * Ho * Wo * Cout * jnp.dtype(out_dtype).itemsize
                           + w_bytes))

    kernel = functools.partial(_block_kernel, H=H, W=W, Ho=Ho, Wo=Wo,
                               stride=stride, has_proj=not equal_in_out)

    out_nhwc = pl.pallas_call(
        kernel,
        out_shape=jax.ShapeDtypeStruct((N, Ho, Wo, Cout), out_dtype),
        grid=(N // bt,),
        in_specs=in_specs,
        out_specs=pl.BlockSpec((bt, Ho, Wo, Cout), img4),
        scratch_shapes=[pltpu.VMEM((bt, H + 2, W + 2, Cin), compute_dtype),
                        pltpu.VMEM((bt, Ho + 2, Wo + 2, Cout), compute_dtype)],
        compiler_params=pltpu.CompilerParams(
            dimension_semantics=("parallel",),
            vmem_limit_bytes=48 * 1024 * 1024),
        cost_estimate=cost,
    )(*args)

    if nhwc_out:
        return out_nhwc
    return jnp.transpose(out_nhwc, (0, 3, 1, 2))      # NCHW for module parity


# ------------------------------ reference ------------------------------------

def _ref_forward(x, params, *, stride=1):
    def bn(y, g, b, m, v):
        s = (g * lax.rsqrt(v + EPS))[None, :, None, None]
        return (y - m[None, :, None, None]) * s + b[None, :, None, None]

    def conv(y, w, s, pad):
        return lax.conv_general_dilated(
            y, w, (s, s), ((pad, pad), (pad, pad)),
            dimension_numbers=("NCHW", "OIHW", "NCHW"))

    Cin = x.shape[1]
    Cout = params["conv1_w"].shape[0]
    h = jnp.maximum(bn(x, params["bn1_gamma"], params["bn1_beta"],
                       params["bn1_mean"], params["bn1_var"]), 0.0)
    out = conv(h, params["conv1_w"], stride, 1)
    out = jnp.maximum(bn(out, params["bn2_gamma"], params["bn2_beta"],
                         params["bn2_mean"], params["bn2_var"]), 0.0)
    out = conv(out, params["conv2_w"], 1, 1)
    short = x if Cin == Cout else conv(h, params["short_w"], stride, 0)
    return short + out


# --------------------------------- main ---------------------------------------

if __name__ == "__main__":
    key = jax.random.PRNGKey(0)

    def make_params(k, cin, cout):
        ks = jax.random.split(k, 11)
        p = {
            "bn1_gamma": 1.0 + 0.1 * jax.random.normal(ks[0], (cin,)),
            "bn1_beta": 0.1 * jax.random.normal(ks[1], (cin,)),
            "bn1_mean": 0.1 * jax.random.normal(ks[2], (cin,)),
            "bn1_var": 1.0 + 0.1 * jnp.abs(jax.random.normal(ks[3], (cin,))),
            "conv1_w": 0.2 * jax.random.normal(ks[4], (cout, cin, 3, 3)),
            "bn2_gamma": 1.0 + 0.1 * jax.random.normal(ks[5], (cout,)),
            "bn2_beta": 0.1 * jax.random.normal(ks[6], (cout,)),
            "bn2_mean": 0.1 * jax.random.normal(ks[7], (cout,)),
            "bn2_var": 1.0 + 0.1 * jnp.abs(jax.random.normal(ks[8], (cout,))),
            "conv2_w": 0.2 * jax.random.normal(ks[9], (cout, cout, 3, 3)),
            "short_w": 0.2 * jax.random.normal(ks[10], (cout, cin, 1, 1)),
        }
        return jax.tree_util.tree_map(lambda a: a.astype(jnp.float32), p)

    def run_check(name, x, p, stride, compute_dtype, batch_tile=1):
        fwd = jax.jit(functools.partial(basic_block_forward, stride=stride,
                                        dropout_rate=0.0,
                                        compute_dtype=compute_dtype,
                                        batch_tile=batch_tile))
        out = jax.block_until_ready(fwd(x, p))
        ref = _ref_forward(x, p, stride=stride)
        assert out.shape == ref.shape, (name, out.shape, ref.shape)
        err = float(jnp.max(jnp.abs(out.astype(jnp.float32) - ref)))
        tol = 5e-2 * max(1.0, float(jnp.max(jnp.abs(ref))))
        if err > tol:
            raise AssertionError(f"{name}: max abs err {err:.4g} > tol {tol:.4g}")

    k1, k2, k3 = jax.random.split(key, 3)

    # Projection-shortcut path (in_planes != planes), stride 1.
    x1 = jax.random.normal(k1, (2, 4, 16, 16), jnp.float32)
    p1 = make_params(k2, 4, 8)
    run_check("proj/f32", x1, p1, 1, jnp.float32)
    run_check("proj/bf16", x1, p1, 1, jnp.bfloat16)

    # Identity-shortcut path (in_planes == planes), stride 1.
    x2 = jax.random.normal(k3, (2, 8, 16, 16), jnp.float32)
    p2 = make_params(k3, 8, 8)
    run_check("identity/f32", x2, p2, 1, jnp.float32)
    run_check("identity/bf16/bt2", x2, p2, 1, jnp.bfloat16, batch_tile=2)

    print("KERNEL_OK")
</pallas_src>

<mosaic_0001>
module attributes {stable_mosaic.version = 11 : i64} {
  func.func @_block_kernel(%arg0: i32, %arg1: memref<1x16x16x4xf32, #tpu.memory_space<vmem>>, %arg2: memref<1x4xf32, #tpu.memory_space<vmem>>, %arg3: memref<1x4xf32, #tpu.memory_space<vmem>>, %arg4: memref<3x12x8xf32, #tpu.memory_space<vmem>>, %arg5: memref<1x8xf32, #tpu.memory_space<vmem>>, %arg6: memref<1x8xf32, #tpu.memory_space<vmem>>, %arg7: memref<3x24x8xf32, #tpu.memory_space<vmem>>, %arg8: memref<4x8xf32, #tpu.memory_space<vmem>>, %arg9: memref<1x16x16x8xf32, #tpu.memory_space<vmem>>, %arg10: memref<1x18x18x4xf32, #tpu.memory_space<vmem>>, %arg11: memref<1x18x18x8xf32, #tpu.memory_space<vmem>>) attributes {dimension_semantics = [#tpu.dimension_semantics<parallel>], iteration_bounds = array<i64: 2>, scalar_prefetch = 0 : i64, scratch_operands = 2 : i64, tpu.core_type = #tpu.core_type<tc>, window_params = [{transform_indices = @transform_0, window_bounds = array<i64: 1, 16, 16, 4>}, {pipeline_mode = #tpu.pipeline_mode<synchronous>, transform_indices = @transform_1, window_bounds = array<i64: 1, 4>}, {pipeline_mode = #tpu.pipeline_mode<synchronous>, transform_indices = @transform_2, window_bounds = array<i64: 1, 4>}, {pipeline_mode = #tpu.pipeline_mode<synchronous>, transform_indices = @transform_3, window_bounds = array<i64: 3, 12, 8>}, {pipeline_mode = #tpu.pipeline_mode<synchronous>, transform_indices = @transform_4, window_bounds = array<i64: 1, 8>}, {pipeline_mode = #tpu.pipeline_mode<synchronous>, transform_indices = @transform_5, window_bounds = array<i64: 1, 8>}, {pipeline_mode = #tpu.pipeline_mode<synchronous>, transform_indices = @transform_6, window_bounds = array<i64: 3, 24, 8>}, {pipeline_mode = #tpu.pipeline_mode<synchronous>, transform_indices = @transform_7, window_bounds = array<i64: 4, 8>}, {transform_indices = @transform_8, window_bounds = array<i64: 1, 16, 16, 8>}]} {
    %cst = arith.constant 0.000000e+00 : f32
    %0 = vector.broadcast %cst : f32 to vector<1x18x18x4xf32>
    %c0 = arith.constant 0 : index
    %c0_0 = arith.constant 0 : index
    %c0_1 = arith.constant 0 : index
    %c0_2 = arith.constant 0 : index
    %1 = vector.load %arg10[%c0, %c0_0, %c0_1, %c0_2] : memref<1x18x18x4xf32, #tpu.memory_space<vmem>>, vector<1x18x18x4xf32>
    tpu.vector_store %arg10[%c0, %c0_0, %c0_1, %c0_2], %0 {strides = array<i32>} : memref<1x18x18x4xf32, #tpu.memory_space<vmem>>, vector<1x18x18x4xf32>,
    %c0_3 = arith.constant 0 : index
    %c0_4 = arith.constant 0 : index
    %c0_5 = arith.constant 0 : index
    %c0_6 = arith.constant 0 : index
    %2 = vector.load %arg1[%c0_3, %c0_4, %c0_5, %c0_6] : memref<1x16x16x4xf32, #tpu.memory_space<vmem>>, vector<1x16x16x4xf32>
    %3 = vector.shape_cast %2 : vector<1x16x16x4xf32> to vector<256x4xf32>
    %c0_7 = arith.constant 0 : index
    %c0_8 = arith.constant 0 : index
    %4 = vector.load %arg2[%c0_7, %c0_8] : memref<1x4xf32, #tpu.memory_space<vmem>>, vector<1x4xf32>
    %5 = vector.broadcast %4 : vector<1x4xf32> to vector<256x4xf32>
    %6 = arith.mulf %3, %5 : vector<256x4xf32>
    %c0_9 = arith.constant 0 : index
    %c0_10 = arith.constant 0 : index
    %7 = vector.load %arg3[%c0_9, %c0_10] : memref<1x4xf32, #tpu.memory_space<vmem>>, vector<1x4xf32>
    %8 = vector.broadcast %7 : vector<1x4xf32> to vector<256x4xf32>
    %9 = arith.addf %6, %8 : vector<256x4xf32>
    %cst_11 = arith.constant 0.000000e+00 : f32
    %10 = vector.broadcast %cst_11 : f32 to vector<256x4xf32>
    %11 = arith.maximumf %9, %10 : vector<256x4xf32>
    %12 = vector.shape_cast %11 : vector<256x4xf32> to vector<1x16x16x4xf32>
    %c0_12 = arith.constant 0 : index
    %c1 = arith.constant 1 : index
    %c1_13 = arith.constant 1 : index
    %c0_14 = arith.constant 0 : index
    %13 = vector.load %arg10[%c0_12, %c1, %c1_13, %c0_14] : memref<1x18x18x4xf32, #tpu.memory_space<vmem>>, vector<1x16x16x4xf32>
    tpu.vector_store %arg10[%c0_12, %c1, %c1_13, %c0_14], %12 {strides = array<i32>} : memref<1x18x18x4xf32, #tpu.memory_space<vmem>>, vector<1x16x16x4xf32>,
    %c0_15 = arith.constant 0 : index
    %c0_16 = arith.constant 0 : index
    %c0_17 = arith.constant 0 : index
    %c0_18 = arith.constant 0 : index
    %14 = vector.load %arg10[%c0_15, %c0_16, %c0_17, %c0_18] : memref<1x18x18x4xf32, #tpu.memory_space<vmem>>, vector<1x18x18x4xf32>
    %cst_19 = arith.constant 0.000000e+00 : f32
    %15 = vector.broadcast %cst_19 : f32 to vector<256x8xf32>
    %16 = vector.extract_strided_slice %14 {offsets = [0, 0, 0, 0], sizes = [1, 16, 18, 4], strides = [1, 1, 1, 1]} : vector<1x18x18x4xf32> to vector<1x16x18x4xf32>
    %17 = vector.extract_strided_slice %16 {offsets = [0, 0, 0, 0], sizes = [1, 16, 16, 4], strides = [1, 1, 1, 1]} : vector<1x16x18x4xf32> to vector<1x16x16x4xf32>
    %18 = vector.extract_strided_slice %16 {offsets = [0, 0, 1, 0], sizes = [1, 16, 16, 4], strides = [1, 1, 1, 1]} : vector<1x16x18x4xf32> to vector<1x16x16x4xf32>
    %19 = vector.extract_strided_slice %16 {offsets = [0, 0, 2, 0], sizes = [1, 16, 16, 4], strides = [1, 1, 1, 1]} : vector<1x16x18x4xf32> to vector<1x16x16x4xf32>
    %20 = tpu.concatenate %17, %18, %19 in 3 : vector<1x16x16x4xf32>, vector<1x16x16x4xf32>, vector<1x16x16x4xf32> -> vector<1x16x16x12xf32>
    %21 = vector.shape_cast %20 : vector<1x16x16x12xf32> to vector<256x12xf32>
    %c0_20 = arith.constant 0 : index
    %c0_21 = arith.constant 0 : index
    %c0_22 = arith.constant 0 : index
    %22 = vector.load %arg4[%c0_20, %c0_21, %c0_22] : memref<3x12x8xf32, #tpu.memory_space<vmem>>, vector<1x12x8xf32>
    %23 = vector.shape_cast %22 : vector<1x12x8xf32> to vector<12x8xf32>
    %cst_23 = arith.constant dense<0.000000e+00> : vector<256x8xf32>
    %24 = tpu.matmul %21, %23, %cst_23 {dimension_numbers = #tpu.dot_dimension_numbers<[1], [0], [0], [1], [0, 0, 1, 1], [], []>} : vector<256x12xf32>, vector<12x8xf32>, vector<256x8xf32> -> vector<256x8xf32>
    %25 = arith.addf %15, %24 : vector<256x8xf32>
    %26 = vector.extract_strided_slice %14 {offsets = [0, 1, 0, 0], sizes = [1, 16, 18, 4], strides = [1, 1, 1, 1]} : vector<1x18x18x4xf32> to vector<1x16x18x4xf32>
    %27 = vector.extract_strided_slice %26 {offsets = [0, 0, 0, 0], sizes = [1, 16, 16, 4], strides = [1, 1, 1, 1]} : vector<1x16x18x4xf32> to vector<1x16x16x4xf32>
    %28 = vector.extract_strided_slice %26 {offsets = [0, 0, 1, 0], sizes = [1, 16, 16, 4], strides = [1, 1, 1, 1]} : vector<1x16x18x4xf32> to vector<1x16x16x4xf32>
    %29 = vector.extract_strided_slice %26 {offsets = [0, 0, 2, 0], sizes = [1, 16, 16, 4], strides = [1, 1, 1, 1]} : vector<1x16x18x4xf32> to vector<1x16x16x4xf32>
    %30 = tpu.concatenate %27, %28, %29 in 3 : vector<1x16x16x4xf32>, vector<1x16x16x4xf32>, vector<1x16x16x4xf32> -> vector<1x16x16x12xf32>
    %31 = vector.shape_cast %30 : vector<1x16x16x12xf32> to vector<256x12xf32>
    %c1_24 = arith.constant 1 : index
    %c0_25 = arith.constant 0 : index
    %c0_26 = arith.constant 0 : index
    %32 = vector.load %arg4[%c1_24, %c0_25, %c0_26] : memref<3x12x8xf32, #tpu.memory_space<vmem>>, vector<1x12x8xf32>
    %33 = vector.shape_cast %32 : vector<1x12x8xf32> to vector<12x8xf32>
    %cst_27 = arith.constant dense<0.000000e+00> : vector<256x8xf32>
    %34 = tpu.matmul %31, %33, %cst_27 {dimension_numbers = #tpu.dot_dimension_numbers<[1], [0], [0], [1], [0, 0, 1, 1], [], []>} : vector<256x12xf32>, vector<12x8xf32>, vector<256x8xf32> -> vector<256x8xf32>
    %35 = arith.addf %25, %34 : vector<256x8xf32>
    %36 = vector.extract_strided_slice %14 {offsets = [0, 2, 0, 0], sizes = [1, 16, 18, 4], strides = [1, 1, 1, 1]} : vector<1x18x18x4xf32> to vector<1x16x18x4xf32>
    %37 = vector.extract_strided_slice %36 {offsets = [0, 0, 0, 0], sizes = [1, 16, 16, 4], strides = [1, 1, 1, 1]} : vector<1x16x18x4xf32> to vector<1x16x16x4xf32>
    %38 = vector.extract_strided_slice %36 {offsets = [0, 0, 1, 0], sizes = [1, 16, 16, 4], strides = [1, 1, 1, 1]} : vector<1x16x18x4xf32> to vector<1x16x16x4xf32>
    %39 = vector.extract_strided_slice %36 {offsets = [0, 0, 2, 0], sizes = [1, 16, 16, 4], strides = [1, 1, 1, 1]} : vector<1x16x18x4xf32> to vector<1x16x16x4xf32>
    %40 = tpu.concatenate %37, %38, %39 in 3 : vector<1x16x16x4xf32>, vector<1x16x16x4xf32>, vector<1x16x16x4xf32> -> vector<1x16x16x12xf32>
    %41 = vector.shape_cast %40 : vector<1x16x16x12xf32> to vector<256x12xf32>
    %c2 = arith.constant 2 : index
    %c0_28 = arith.constant 0 : index
    %c0_29 = arith.constant 0 : index
    %42 = vector.load %arg4[%c2, %c0_28, %c0_29] : memref<3x12x8xf32, #tpu.memory_space<vmem>>, vector<1x12x8xf32>
    %43 = vector.shape_cast %42 : vector<1x12x8xf32> to vector<12x8xf32>
    %cst_30 = arith.constant dense<0.000000e+00> : vector<256x8xf32>
    %44 = tpu.matmul %41, %43, %cst_30 {dimension_numbers = #tpu.dot_dimension_numbers<[1], [0], [0], [1], [0, 0, 1, 1], [], []>} : vector<256x12xf32>, vector<12x8xf32>, vector<256x8xf32> -> vector<256x8xf32>
    %45 = arith.addf %35, %44 : vector<256x8xf32>
    %cst_31 = arith.constant 0.000000e+00 : f32
    %46 = vector.broadcast %cst_31 : f32 to vector<1x18x18x8xf32>
    %c0_32 = arith.constant 0 : index
    %c0_33 = arith.constant 0 : index
    %c0_34 = arith.constant 0 : index
    %c0_35 = arith.constant 0 : index
    %47 = vector.load %arg11[%c0_32, %c0_33, %c0_34, %c0_35] : memref<1x18x18x8xf32, #tpu.memory_space<vmem>>, vector<1x18x18x8xf32>
    tpu.vector_store %arg11[%c0_32, %c0_33, %c0_34, %c0_35], %46 {strides = array<i32>} : memref<1x18x18x8xf32, #tpu.memory_space<vmem>>, vector<1x18x18x8xf32>,
    %c0_36 = arith.constant 0 : index
    %c0_37 = arith.constant 0 : index
    %48 = vector.load %arg5[%c0_36, %c0_37] : memref<1x8xf32, #tpu.memory_space<vmem>>, vector<1x8xf32>
    %49 = vector.broadcast %48 : vector<1x8xf32> to vector<256x8xf32>
    %50 = arith.mulf %45, %49 : vector<256x8xf32>
    %c0_38 = arith.constant 0 : index
    %c0_39 = arith.constant 0 : index
    %51 = vector.load %arg6[%c0_38, %c0_39] : memref<1x8xf32, #tpu.memory_space<vmem>>, vector<1x8xf32>
    %52 = vector.broadcast %51 : vector<1x8xf32> to vector<256x8xf32>
    %53 = arith.addf %50, %52 : vector<256x8xf32>
    %cst_40 = arith.constant 0.000000e+00 : f32
    %54 = vector.broadcast %cst_40 : f32 to vector<256x8xf32>
    %55 = arith.maximumf %53, %54 : vector<256x8xf32>
    %56 = vector.shape_cast %55 : vector<256x8xf32> to vector<1x16x16x8xf32>
    %c0_41 = arith.constant 0 : index
    %c1_42 = arith.constant 1 : index
    %c1_43 = arith.constant 1 : index
    %c0_44 = arith.constant 0 : index
    %57 = vector.load %arg11[%c0_41, %c1_42, %c1_43, %c0_44] : memref<1x18x18x8xf32, #tpu.memory_space<vmem>>, vector<1x16x16x8xf32>
    tpu.vector_store %arg11[%c0_41, %c1_42, %c1_43, %c0_44], %56 {strides = array<i32>} : memref<1x18x18x8xf32, #tpu.memory_space<vmem>>, vector<1x16x16x8xf32>,
    %c0_45 = arith.constant 0 : index
    %c0_46 = arith.constant 0 : index
    %c0_47 = arith.constant 0 : index
    %c0_48 = arith.constant 0 : index
    %58 = vector.load %arg11[%c0_45, %c0_46, %c0_47, %c0_48] : memref<1x18x18x8xf32, #tpu.memory_space<vmem>>, vector<1x18x18x8xf32>
    %cst_49 = arith.constant 0.000000e+00 : f32
    %59 = vector.broadcast %cst_49 : f32 to vector<256x8xf32>
    %60 = vector.extract_strided_slice %58 {offsets = [0, 0, 0, 0], sizes = [1, 16, 18, 8], strides = [1, 1, 1, 1]} : vector<1x18x18x8xf32> to vector<1x16x18x8xf32>
    %61 = vector.extract_strided_slice %60 {offsets = [0, 0, 0, 0], sizes = [1, 16, 16, 8], strides = [1, 1, 1, 1]} : vector<1x16x18x8xf32> to vector<1x16x16x8xf32>
    %62 = vector.extract_strided_slice %60 {offsets = [0, 0, 1, 0], sizes = [1, 16, 16, 8], strides = [1, 1, 1, 1]} : vector<1x16x18x8xf32> to vector<1x16x16x8xf32>
    %63 = vector.extract_strided_slice %60 {offsets = [0, 0, 2, 0], sizes = [1, 16, 16, 8], strides = [1, 1, 1, 1]} : vector<1x16x18x8xf32> to vector<1x16x16x8xf32>
    %64 = tpu.concatenate %61, %62, %63 in 3 : vector<1x16x16x8xf32>, vector<1x16x16x8xf32>, vector<1x16x16x8xf32> -> vector<1x16x16x24xf32>
    %65 = vector.shape_cast %64 : vector<1x16x16x24xf32> to vector<256x24xf32>
    %c0_50 = arith.constant 0 : index
    %c0_51 = arith.constant 0 : index
    %c0_52 = arith.constant 0 : index
    %66 = vector.load %arg7[%c0_50, %c0_51, %c0_52] : memref<3x24x8xf32, #tpu.memory_space<vmem>>, vector<1x24x8xf32>
    %67 = vector.shape_cast %66 : vector<1x24x8xf32> to vector<24x8xf32>
    %cst_53 = arith.constant dense<0.000000e+00> : vector<256x8xf32>
    %68 = tpu.matmul %65, %67, %cst_53 {dimension_numbers = #tpu.dot_dimension_numbers<[1], [0], [0], [1], [0, 0, 1, 1], [], []>} : vector<256x24xf32>, vector<24x8xf32>, vector<256x8xf32> -> vector<256x8xf32>
    %69 = arith.addf %59, %68 : vector<256x8xf32>
    %70 = vector.extract_strided_slice %58 {offsets = [0, 1, 0, 0], sizes = [1, 16, 18, 8], strides = [1, 1, 1, 1]} : vector<1x18x18x8xf32> to vector<1x16x18x8xf32>
    %71 = vector.extract_strided_slice %70 {offsets = [0, 0, 0, 0], sizes = [1, 16, 16, 8], strides = [1, 1, 1, 1]} : vector<1x16x18x8xf32> to vector<1x16x16x8xf32>
    %72 = vector.extract_strided_slice %70 {offsets = [0, 0, 1, 0], sizes = [1, 16, 16, 8], strides = [1, 1, 1, 1]} : vector<1x16x18x8xf32> to vector<1x16x16x8xf32>
    %73 = vector.extract_strided_slice %70 {offsets = [0, 0, 2, 0], sizes = [1, 16, 16, 8], strides = [1, 1, 1, 1]} : vector<1x16x18x8xf32> to vector<1x16x16x8xf32>
    %74 = tpu.concatenate %71, %72, %73 in 3 : vector<1x16x16x8xf32>, vector<1x16x16x8xf32>, vector<1x16x16x8xf32> -> vector<1x16x16x24xf32>
    %75 = vector.shape_cast %74 : vector<1x16x16x24xf32> to vector<256x24xf32>
    %c1_54 = arith.constant 1 : index
    %c0_55 = arith.constant 0 : index
    %c0_56 = arith.constant 0 : index
    %76 = vector.load %arg7[%c1_54, %c0_55, %c0_56] : memref<3x24x8xf32, #tpu.memory_space<vmem>>, vector<1x24x8xf32>
    %77 = vector.shape_cast %76 : vector<1x24x8xf32> to vector<24x8xf32>
    %cst_57 = arith.constant dense<0.000000e+00> : vector<256x8xf32>
    %78 = tpu.matmul %75, %77, %cst_57 {dimension_numbers = #tpu.dot_dimension_numbers<[1], [0], [0], [1], [0, 0, 1, 1], [], []>} : vector<256x24xf32>, vector<24x8xf32>, vector<256x8xf32> -> vector<256x8xf32>
    %79 = arith.addf %69, %78 : vector<256x8xf32>
    %80 = vector.extract_strided_slice %58 {offsets = [0, 2, 0, 0], sizes = [1, 16, 18, 8], strides = [1, 1, 1, 1]} : vector<1x18x18x8xf32> to vector<1x16x18x8xf32>
    %81 = vector.extract_strided_slice %80 {offsets = [0, 0, 0, 0], sizes = [1, 16, 16, 8], strides = [1, 1, 1, 1]} : vector<1x16x18x8xf32> to vector<1x16x16x8xf32>
    %82 = vector.extract_strided_slice %80 {offsets = [0, 0, 1, 0], sizes = [1, 16, 16, 8], strides = [1, 1, 1, 1]} : vector<1x16x18x8xf32> to vector<1x16x16x8xf32>
    %83 = vector.extract_strided_slice %80 {offsets = [0, 0, 2, 0], sizes = [1, 16, 16, 8], strides = [1, 1, 1, 1]} : vector<1x16x18x8xf32> to vector<1x16x16x8xf32>
    %84 = tpu.concatenate %81, %82, %83 in 3 : vector<1x16x16x8xf32>, vector<1x16x16x8xf32>, vector<1x16x16x8xf32> -> vector<1x16x16x24xf32>
    %85 = vector.shape_cast %84 : vector<1x16x16x24xf32> to vector<256x24xf32>
    %c2_58 = arith.constant 2 : index
    %c0_59 = arith.constant 0 : index
    %c0_60 = arith.constant 0 : index
    %86 = vector.load %arg7[%c2_58, %c0_59, %c0_60] : memref<3x24x8xf32, #tpu.memory_space<vmem>>, vector<1x24x8xf32>
    %87 = vector.shape_cast %86 : vector<1x24x8xf32> to vector<24x8xf32>
    %cst_61 = arith.constant dense<0.000000e+00> : vector<256x8xf32>
    %88 = tpu.matmul %85, %87, %cst_61 {dimension_numbers = #tpu.dot_dimension_numbers<[1], [0], [0], [1], [0, 0, 1, 1], [], []>} : vector<256x24xf32>, vector<24x8xf32>, vector<256x8xf32> -> vector<256x8xf32>
    %89 = arith.addf %79, %88 : vector<256x8xf32>
    %90 = vector.extract_strided_slice %14 {offsets = [0, 1, 1, 0], sizes = [1, 16, 16, 4], strides = [1, 1, 1, 1]} : vector<1x18x18x4xf32> to vector<1x16x16x4xf32>
    %91 = vector.shape_cast %90 : vector<1x16x16x4xf32> to vector<256x4xf32>
    %c0_62 = arith.constant 0 : index
    %c0_63 = arith.constant 0 : index
    %92 = vector.load %arg8[%c0_62, %c0_63] : memref<4x8xf32, #tpu.memory_space<vmem>>, vector<4x8xf32>
    %cst_64 = arith.constant dense<0.000000e+00> : vector<256x8xf32>
    %93 = tpu.matmul %91, %92, %cst_64 {dimension_numbers = #tpu.dot_dimension_numbers<[1], [0], [0], [1], [0, 0, 1, 1], [], []>} : vector<256x4xf32>, vector<4x8xf32>, vector<256x8xf32> -> vector<256x8xf32>
    %94 = arith.addf %89, %93 : vector<256x8xf32>
    %95 = vector.shape_cast %94 : vector<256x8xf32> to vector<1x16x16x8xf32>
    %c0_65 = arith.constant 0 : index
    %c0_66 = arith.constant 0 : index
    %c0_67 = arith.constant 0 : index
    %c0_68 = arith.constant 0 : index
    %96 = vector.load %arg9[%c0_65, %c0_66, %c0_67, %c0_68] : memref<1x16x16x8xf32, #tpu.memory_space<vmem>>, vector<1x16x16x8xf32>
    tpu.vector_store %arg9[%c0_65, %c0_66, %c0_67, %c0_68], %95 {strides = array<i32>} : memref<1x16x16x8xf32, #tpu.memory_space<vmem>>, vector<1x16x16x8xf32>,
    return
  }
  func.func @transform_0(%arg0: i32) -> (i32, i32, i32, i32) {
    %c0_i32 = arith.constant 0 : i32
    %c0_i32_0 = arith.constant 0 : i32
    %c0_i32_1 = arith.constant 0 : i32
    %c0_i32_2 = arith.constant 0 : i32
    return %arg0, %c0_i32, %c0_i32_0, %c0_i32_1 : i32, i32, i32, i32
  }
  func.func @transform_1(%arg0: i32) -> (i32, i32) {
    %c0_i32 = arith.constant 0 : i32
    %c0_i32_0 = arith.constant 0 : i32
    %c0_i32_1 = arith.constant 0 : i32
    return %c0_i32, %c0_i32_0 : i32, i32
  }
  func.func @transform_2(%arg0: i32) -> (i32, i32) {
    %c0_i32 = arith.constant 0 : i32
    %c0_i32_0 = arith.constant 0 : i32
    %c0_i32_1 = arith.constant 0 : i32
    return %c0_i32, %c0_i32_0 : i32, i32
  }
  func.func @transform_3(%arg0: i32) -> (i32, i32, i32) {
    %c0_i32 = arith.constant 0 : i32
    %c0_i32_0 = arith.constant 0 : i32
    %c0_i32_1 = arith.constant 0 : i32
    %c0_i32_2 = arith.constant 0 : i32
    return %c0_i32, %c0_i32_0, %c0_i32_1 : i32, i32, i32
  }
  func.func @transform_4(%arg0: i32) -> (i32, i32) {
    %c0_i32 = arith.constant 0 : i32
    %c0_i32_0 = arith.constant 0 : i32
    %c0_i32_1 = arith.constant 0 : i32
    return %c0_i32, %c0_i32_0 : i32, i32
  }
  func.func @transform_5(%arg0: i32) -> (i32, i32) {
    %c0_i32 = arith.constant 0 : i32
    %c0_i32_0 = arith.constant 0 : i32
    %c0_i32_1 = arith.constant 0 : i32
    return %c0_i32, %c0_i32_0 : i32, i32
  }
  func.func @transform_6(%arg0: i32) -> (i32, i32, i32) {
    %c0_i32 = arith.constant 0 : i32
    %c0_i32_0 = arith.constant 0 : i32
    %c0_i32_1 = arith.constant 0 : i32
    %c0_i32_2 = arith.constant 0 : i32
    return %c0_i32, %c0_i32_0, %c0_i32_1 : i32, i32, i32
  }
  func.func @transform_7(%arg0: i32) -> (i32, i32) {
    %c0_i32 = arith.constant 0 : i32
    %c0_i32_0 = arith.constant 0 : i32
    %c0_i32_1 = arith.constant 0 : i32
    return %c0_i32, %c0_i32_0 : i32, i32
  }
  func.func @transform_8(%arg0: i32) -> (i32, i32, i32, i32) {
    %c0_i32 = arith.constant 0 : i32
    %c0_i32_0 = arith.constant 0 : i32
    %c0_i32_1 = arith.constant 0 : i32
    %c0_i32_2 = arith.constant 0 : i32
    return %arg0, %c0_i32, %c0_i32_0, %c0_i32_1 : i32, i32, i32, i32
  }
}

</mosaic_0001>

<bundles_post_ra>
// kernel: basic_block_forward.1
= control target key start
LH: loop header
LB: loop body
LE: loop exit
PB: predicated region body
PF: predicated region fallthrough
CT: control target
= control target key end

     0   :  { %s3500_s27 = smov 0   ;;  %s5477_s0 = inlined_call_operand.vmem [shape: f32[2,16,16,4], index: 0, kind: input, shape index: {}]   ;;  %s5478_s1 = inlined_call_operand.vmem [shape: f32[1,4], index: 1, kind: input, shape index: {}]   ;;  %s5479_s2 = inlined_call_operand.vmem [shape: f32[1,4], index: 2, kind: input, shape index: {}]   ;;  %s5480_s3 = inlined_call_operand.vmem [shape: f32[3,12,8], index: 3, kind: input, shape index: {}]   ;;  %s5481_s4 = inlined_call_operand.vmem [shape: f32[1,8], index: 4, kind: input, shape index: {}]   ;;  %s5482_s5 = inlined_call_operand.vmem [shape: f32[1,8], index: 5, kind: input, shape index: {}]   ;;  %s5483_s6 = inlined_call_operand.vmem [shape: f32[3,24,8], index: 6, kind: input, shape index: {}]   ;;  %s5484_s7 = inlined_call_operand.vmem [shape: f32[4,8], index: 7, kind: input, shape index: {}]   ;;  %s5485_s8 = inlined_call_operand.vmem [shape: f32[2,16,16,8], index: 8, kind: output, shape index: {}]  }
   0x1 LB: > { %s3168_s28 = sadd.s32 4294967295, %s3449_s27   ;;  %p3172_p0 = scmp.ge.s32.totalorder %s3449_s27, 1  ;;  %s3449_s27 = sphi %s3500_s27, %s18_s27  }
   0x2   : > { %p262_p1 = scmp.lt.s32.totalorder %s3449_s27, 3 }
   0x4   : > { %p263_p2 = pnand %p3172_p0, %p262_p1 }
   0x6   : > { %266 = sbr.rel (%p263_p2) target bundleno = 909 (0x38d), region = 52 }
   0xb   : > { %vm306_vm0 = vcmask 31744   ;;  %v5494_v0 = vmov 0.0   ;;  %vm633_vm1 = vcmask 1046528   ;;  %s3452_s29 = smov 4   ;;  %p296_p3 = scmp.lt.s32.totalorder %s3168_s28, 1  ;;  %vm309_vm2 = vcmask 25600  }
   0xc   : > { %307 = vst.msk [vmem:[#allocation2] sm:$0xff] %vm306_vm0, %v5494_v0  ;;  %v3613_v6 = vld [vmem:[%s5478_s1] ss:$0 sm:$0xff]  ;;  %vm810_vm3 = vcmask 1045504   ;;  %s3453_s16 = smov 8   ;;  %vm1183_vm4 = vcmask 1043456  }
   0xd   : > { %308 = vst.msk [vmem:[#allocation2 + $0x8] sm:$0xff] %vm306_vm0, %v5494_v0  ;;  %s5538_s28 = smov (!%p296_p3, %s3168_s28), 1  ;;  %v3626_v9 = vld [vmem:[%s5479_s2] ss:$0 sm:$0xff]  ;;  %vm1019_vm5 = vcmask 64512   ;;  %vm1086_vm6 = vcmask 97280  }
   0xe   : > { %311 = vst.msk [vmem:[#allocation2 + $0x18] sm:$0xff] %vm306_vm0, %v5494_v0  ;;  %s3417_s30 = sshll.u32 %s5538_s28, 8  ;;  %vm1610_vm7 = vcmask 58368   ;;  %vm2286_vm8 = vcmask 130048   ;;  %vm2355_vm9 = vcmask 195584  }
   0xf   : > { %312 = vst.msk [vmem:[#allocation2 + $0x20] sm:$0xff] %vm306_vm0, %v5494_v0  ;;  %s3604_s11 = scalar_lea.vmem %s5477_s0, %s3417_s30  ;;  %s5281_s25 = scalar_lea.vmem %s5485_s8, %s3417_s30 }
  0x10   : > { %314 = vst.msk [vmem:[#allocation2 + $0x30] sm:$0xff] %vm306_vm0, %v5494_v0  ;;  %v364_v7 = vld [vmem:[%s3604_s11 + $0x10] sm:$0xff]  ;;  %v365_v8 = vld [vmem:[%s3604_s11 + $0x18] sm:$0xff]  ;;  %v362_v10 = vld [vmem:[%s3604_s11] sm:$0xff] }
  0x11   : > { %315 = vst.msk [vmem:[#allocation2 + $0x38] sm:$0xff] %vm306_vm0, %v5494_v0  ;;  %v400_v12 = vmul.f32 %v3613_v6, %v364_v7  ;;  %v363_v13 = vld [vmem:[%s3604_s11 + $0x8] sm:$0xff]  ;;  %v401_v16 = vmul.f32 %v3613_v6, %v365_v8  ;;  %v386_v17 = vld [vmem:[%s3604_s11 + $0xc0] sm:$0xff]  ;;  %v398_v19 = vmul.f32 %v3613_v6, %v362_v10  ;;  %v368_v60 = vld [vmem:[%s3604_s11 + $0x30] sm:$0xff] }
  0x12   : > { %317 = vst.msk [vmem:[#allocation2 + $0x48] sm:$0xff] %vm306_vm0, %v5494_v0  ;;  %v387_v21 = vld [vmem:[%s3604_s11 + $0xc8] sm:$0xff]  ;;  %v399_v22 = vmul.f32 %v3613_v6, %v363_v13  ;;  %v422_v25 = vmul.f32 %v3613_v6, %v386_v17  ;;  %v366_v29 = vld [vmem:[%s3604_s11 + $0x20] sm:$0xff] }
  0x13   : > { %v3522_v1 = vld [vmem:[#allocation2] sm:$0xff]  ;;  %318 = vst.msk [vmem:[#allocation2 + $0x50] sm:$0xff] %vm306_vm0, %v5494_v0  ;;  %v436_v24 = vadd.f32 %v3626_v9, %v400_v12  ;;  %v437_v26 = vadd.f32 %v3626_v9, %v401_v16  ;;  %v423_v27 = vmul.f32 %v3613_v6, %v387_v21  ;;  %v434_v28 = vadd.f32 %v3626_v9, %v398_v19  ;;  %v367_v30 = vld [vmem:[%s3604_s11 + $0x28] sm:$0xff] }
  0x14   : > { %v3526_v2 = vld [vmem:[#allocation2 + $0x8] sm:$0xff]  ;;  %v634_v3 = vrot.slane %v3522_v1, 1  ;;  %320 = vst.msk [vmem:[#allocation2 + $0x60] sm:$0xff] %vm306_vm0, %v5494_v0  ;;  %v811_v14 = vrot.slane %v3522_v1, 2  ;;  %v435_v31 = vadd.f32 %v3626_v9, %v399_v22  ;;  %v402_v32 = vmul.f32 %v3613_v6, %v366_v29 }
  0x15   : > { %v635_v4 = vrot.slane %v3526_v2, 1  ;;  %321 = vst.msk [vmem:[#allocation2 + $0x68] sm:$0xff] %vm306_vm0, %v5494_v0  ;;  %v812_v11 = vrot.slane %v3526_v2, 2  ;;  %v403_v33 = vmul.f32 %v3613_v6, %v367_v30  ;;  %v468_v34 = vmax.f32 %v436_v24, 0.0 }
  0x16   : > { %323 = vst.msk [vmem:[#allocation2 + $0x78] sm:$0xff] %vm306_vm0, %v5494_v0  ;;  %v458_v36 = vadd.f32 %v3626_v9, %v422_v25  ;;  %v469_v37 = vmax.f32 %v437_v26, 0.0  ;;  %v459_v38 = vadd.f32 %v3626_v9, %v423_v27  ;;  %v466_v39 = vmax.f32 %v434_v28, 0.0 }
  0x17   : > { %v636_v5 = vsel %vm633_vm1, %v634_v3, %v635_v4  ;;  %324 = vst.msk [vmem:[#allocation2 + $0x80] sm:$0xff] %vm306_vm0, %v5494_v0  ;;  %v813_v20 = vsel %vm810_vm3, %v811_v14, %v812_v11  ;;  %v438_v41 = vadd.f32 %v3626_v9, %v402_v32  ;;  %v467_v42 = vmax.f32 %v435_v31, 0.0  ;;  %v369_v3 = vld [vmem:[%s3604_s11 + $0x38] sm:$0xff]  ;;  %v388_v14 = vld [vmem:[%s3604_s11 + $0xd0] sm:$0xff] }
  0x18   : > { %714 = vrot.lane.b32.xlu1 %v636_v5, %s3452_s29  ;;  %326 = vst.msk [vmem:[#allocation2 + $0x90] sm:$0xff] %vm306_vm0, %v5494_v0  ;;  %891 = vrot.lane.b32.xlu2 %v813_v20, %s3453_s16  ;;  %v439_v43 = vadd.f32 %v3626_v9, %v403_v33  ;;  %v490_v44 = vmax.f32 %v458_v36, 0.0  ;;  %v491_v45 = vmax.f32 %v459_v38, 0.0  ;;  %v404_v5 = vmul.f32 %v3613_v6, %v368_v60  ;;  %v371_v36 = vld [vmem:[%s3604_s11 + $0x48] sm:$0xff] }
  0x19   : > { %327 = vst.msk [vmem:[#allocation2 + $0x98] sm:$0xff] %vm306_vm0, %v5494_v0  ;;  %v470_v46 = vmax.f32 %v438_v41, 0.0  ;;  %v405_v8 = vmul.f32 %v3613_v6, %v369_v3  ;;  %v424_v17 = vmul.f32 %v3613_v6, %v388_v14  ;;  %v391_v60 = vld [vmem:[%s3604_s11 + $0xe8] sm:$0xff] }
  0x1a   : > { %329 = vst.msk [vmem:[#allocation2 + $0xa8] sm:$0xff] %vm306_vm0, %v5494_v0  ;;  %v471_v47 = vmax.f32 %v439_v43, 0.0  ;;  %v440_v10 = vadd.f32 %v3626_v9, %v404_v5  ;;  %v427_v3 = vmul.f32 %v3613_v6, %v391_v60 }
  0x1b   : > { %330 = vst.msk [vmem:[#allocation2 + $0xb0] sm:$0xff] %vm306_vm0, %v5494_v0  ;;  %v441_v12 = vadd.f32 %v3626_v9, %v405_v8 }
  0x1c   : > { %332 = vst.msk [vmem:[#allocation2 + $0xc0] sm:$0xff] %vm306_vm0, %v5494_v0  ;;  %v472_v13 = vmax.f32 %v440_v10, 0.0 }
  0x1d   : > { %333 = vst.msk [vmem:[#allocation2 + $0xc8] sm:$0xff] %vm306_vm0, %v5494_v0  ;;  %v473_v21 = vmax.f32 %v441_v12, 0.0 }
  0x1e   : > { %335 = vst.msk [vmem:[#allocation2 + $0xd8] sm:$0xff] %vm306_vm0, %v5494_v0 }
  0x1f   : > { %336 = vst.msk [vmem:[#allocation2 + $0xe0] sm:$0xff] %vm306_vm0, %v5494_v0 }
  0x20   : > { %338 = vst.msk [vmem:[#allocation2 + $0xf0] sm:$0xff] %vm306_vm0, %v5494_v0 }
  0x21   : > { %339 = vst.msk [vmem:[#allocation2 + $0xf8] sm:$0xff] %vm306_vm0, %v5494_v0 }
  0x22   : > { %341 = vst.msk [vmem:[#allocation2 + $0x108] sm:$0xff] %vm306_vm0, %v5494_v0 }
  0x23   : > { %342 = vst.msk [vmem:[#allocation2 + $0x110] sm:$0xff] %vm306_vm0, %v5494_v0 }
  0x24   : > { %344 = vst.msk [vmem:[#allocation2 + $0x120] sm:$0xff] %vm306_vm0, %v5494_v0 }
  0x25   : > { %345 = vst.msk [vmem:[#allocation2 + $0x128] sm:$0xff] %vm306_vm0, %v5494_v0 }
  0x26   : > { %347 = vst.msk [vmem:[#allocation2 + $0x138] sm:$0xff] %vm306_vm0, %v5494_v0 }
  0x27   : > { %348 = vst.msk [vmem:[#allocation2 + $0x140] sm:$0xff] %vm306_vm0, %v5494_v0 }
  0x28   : > { %350 = vst.msk [vmem:[#allocation2 + $0x150] sm:$0xff] %vm306_vm0, %v5494_v0 }
  0x29   : > { %351 = vst.msk [vmem:[#allocation2 + $0x158] sm:$0xff] %vm306_vm0, %v5494_v0 }
  0x2a   : > { %353 = vst.msk [vmem:[#allocation2 + $0x168] sm:$0xff] %vm306_vm0, %v5494_v0 }
  0x2b   : > { %354 = vst.msk [vmem:[#allocation2 + $0x170] sm:$0xff] %vm306_vm0, %v5494_v0 }
  0x2c   : > { %356 = vst.msk [vmem:[#allocation2 + $0x180] sm:$0xff] %vm306_vm0, %v5494_v0 }
  0x2d   : > { %357 = vst.msk [vmem:[#allocation2 + $0x188] sm:$0xff] %vm306_vm0, %v5494_v0 }
  0x2e   : > { %359 = vst.msk [vmem:[#allocation2 + $0x198] sm:$0xff] %vm306_vm0, %v5494_v0 }
  0x2f   : > { %360 = vst.msk [vmem:[#allocation2 + $0x1a0] sm:$0xff] %vm306_vm0, %v5494_v0 }
  0x30   : > { %310 = vst.msk [vmem:[#allocation2 + $0x10] sm:$0x3] %vm309_vm2, %v5494_v0 }
  0x31   : > { %313 = vst.msk [vmem:[#allocation2 + $0x28] sm:$0x3] %vm309_vm2, %v5494_v0 }
  0x32   : > { %316 = vst.msk [vmem:[#allocation2 + $0x40] sm:$0x3] %vm309_vm2, %v5494_v0 }
  0x33   : > { %319 = vst.msk [vmem:[#allocation2 + $0x58] sm:$0x3] %vm309_vm2, %v5494_v0 }
  0x34   : > { %322 = vst.msk [vmem:[#allocation2 + $0x70] sm:$0x3] %vm309_vm2, %v5494_v0 }
  0x35   : > { %325 = vst.msk [vmem:[#allocation2 + $0x88] sm:$0x3] %vm309_vm2, %v5494_v0 }
  0x36   : > { %328 = vst.msk [vmem:[#allocation2 + $0xa0] sm:$0x3] %vm309_vm2, %v5494_v0 }
  0x37   : > { %v533_v15 = vld [vmem:[#allocation2 + $0x10] sm:$0x3]  ;;  %331 = vst.msk [vmem:[#allocation2 + $0xb8] sm:$0x3] %vm309_vm2, %v5494_v0 }
  0x38   : > { %v814_v18 = vrot.slane %v533_v15, 2  ;;  %334 = vst.msk [vmem:[#allocation2 + $0xd0] sm:$0x3] %vm309_vm2, %v5494_v0  ;;  %v637_v35 = vrot.slane %v533_v15, 1  ;;  %v389_v15 = vld [vmem:[%s3604_s11 + $0xd8] sm:$0xff] }
  0x39   : > { %337 = vst.msk [vmem:[#allocation2 + $0xe8] sm:$0x3] %vm309_vm2, %v5494_v0 }
  0x3a   : > { %v815_v23 = vsel %vm810_vm3, %v812_v11, %v814_v18  ;;  %340 = vst.msk [vmem:[#allocation2 + $0x100] sm:$0x3] %vm309_vm2, %v5494_v0  ;;  %v638_v40 = vsel %vm633_vm1, %v635_v4, %v637_v35  ;;  %v425_v18 = vmul.f32 %v3613_v6, %v389_v15  ;;  %v370_v35 = vld [vmem:[%s3604_s11 + $0x40] sm:$0xff] }
  0x3b   : > { %893 = vrot.lane.b32.xlu1 %v815_v23, %s3453_s16  ;;  %343 = vst.msk [vmem:[#allocation2 + $0x118] sm:$0x3] %vm309_vm2, %v5494_v0  ;;  %716 = vrot.lane.b32.xlu2 %v638_v40, %s3452_s29  ;;  %v460_v23 = vadd.f32 %v3626_v9, %v424_v17  ;;  %v406_v38 = vmul.f32 %v3613_v6, %v370_v35 }
  0x3c   : > { %346 = vst.msk [vmem:[#allocation2 + $0x130] sm:$0x3] %vm309_vm2, %v5494_v0  ;;  %v461_v24 = vadd.f32 %v3626_v9, %v425_v18 }
  0x3d   : > { %349 = vst.msk [vmem:[#allocation2 + $0x148] sm:$0x3] %vm309_vm2, %v5494_v0  ;;  %v492_v27 = vmax.f32 %v460_v23, 0.0 }
  0x3e   : > { %352 = vst.msk [vmem:[#allocation2 + $0x160] sm:$0x3] %vm309_vm2, %v5494_v0  ;;  %v493_v28 = vmax.f32 %v461_v24, 0.0 }
  0x3f   : > { %355 = vst.msk [vmem:[#allocation2 + $0x178] sm:$0x3] %vm309_vm2, %v5494_v0 }
  0x40   : > { %358 = vst.msk [vmem:[#allocation2 + $0x190] sm:$0x3] %vm309_vm2, %v5494_v0 }
  0x41   : > { %361 = vst.msk [vmem:[#allocation2 + $0x1a8] sm:$0x3] %vm309_vm2, %v5494_v0 }
  0x42   : > { %501 = vst.msk [vmem:[#allocation2 + $0x31] sm:$0xff] %vm306_vm0, %v468_v34 }
  0x43   : > { %502 = vst.msk [vmem:[#allocation2 + $0x39] sm:$0xff] %vm306_vm0, %v469_v37 }
  0x44   : > { %499 = vst.msk [vmem:[#allocation2 + $0x19] sm:$0xff] %vm306_vm0, %v466_v39  ;;  %v407_v39 = vmul.f32 %v3613_v6, %v371_v36 }
  0x45   : > { %500 = vst.msk [vmem:[#allocation2 + $0x21] sm:$0xff] %vm306_vm0, %v467_v42  ;;  %v442_v42 = vadd.f32 %v3626_v9, %v406_v38 }
  0x46   : > { %523 = vst.msk [vmem:[#allocation2 + $0x139] sm:$0xff] %vm306_vm0, %v490_v44  ;;  %v443_v43 = vadd.f32 %v3626_v9, %v407_v39 }
  0x47   : > { %524 = vst.msk [vmem:[#allocation2 + $0x141] sm:$0xff] %vm306_vm0, %v491_v45 }
  0x48   : > { %503 = vst.msk [vmem:[#allocation2 + $0x49] sm:$0xff] %vm306_vm0, %v470_v46 }
  0x49   : > { %v3691_v48 = vld [vmem:[#allocation2 + $0x30] sm:$0xff]  ;;  %504 = vst.msk [vmem:[#allocation2 + $0x51] sm:$0xff] %vm306_vm0, %v471_v47  ;;  %v474_v47 = vmax.f32 %v442_v42, 0.0 }
  0x4a   : > { %v3694_v49 = vld [vmem:[#allocation2 + $0x38] sm:$0xff]  ;;  %v644_v50 = vrot.slane %v3691_v48, 1  ;;  %v539_v58 = vld [vmem:[#allocation2 + $0x40] sm:$0x3]  ;;  %v821_v62 = vrot.slane %v3691_v48, 2  ;;  %505 = vst.msk [vmem:[#allocation2 + $0x61] sm:$0xff] %vm306_vm0, %v472_v13 }
  0x4b   : > { %v645_v51 = vrot.slane %v3694_v49, 1  ;;  %v3698_v52 = vld [vmem:[#allocation2 + $0x18] sm:$0xff]  ;;  %v822_v63 = vrot.slane %v3694_v49, 2  ;;  %v824_v7 = vrot.slane %v539_v58, 2  ;;  %v647_v22 = vrot.slane %v539_v58, 1  ;;  %506 = vst.msk [vmem:[#allocation2 + $0x69] sm:$0xff] %vm306_vm0, %v473_v21 }
  0x4c   : > { %v3700_v53 = vld [vmem:[#allocation2 + $0x20] sm:$0xff]  ;;  %v639_v54 = vrot.slane %v3698_v52, 1  ;;  %v816_v55 = vrot.slane %v3698_v52, 2  ;;  %v536_v30 = vld [vmem:[#allocation2 + $0x28] sm:$0x3]  ;;  %525 = vst.msk [vmem:[#allocation2 + $0x151] sm:$0xff] %vm306_vm0, %v492_v27 }
  0x4d   : > { %v3705_v56 = vsel %vm633_vm1, %v644_v50, %v645_v51  ;;  %v640_v57 = vrot.slane %v3700_v53, 1  ;;  %v817_v59 = vrot.slane %v3700_v53, 2  ;;  %v823_v11 = vsel %vm810_vm3, %v821_v62, %v822_v63  ;;  %v3733_v19 = vld [vmem:[#allocation2 + $0x138] sm:$0xff]  ;;  %526 = vst.msk [vmem:[#allocation2 + $0x159] sm:$0xff] %vm306_vm0, %v493_v28 }
  0x4e   : > { %722 = vrot.lane.b32.xlu0 %v3705_v56, %s3452_s29  ;;  %v825_v16 = vsel %vm810_vm3, %v822_v63, %v824_v7  ;;  %v3735_v20 = vld [vmem:[#allocation2 + $0x140] sm:$0xff]  ;;  %v699_v25 = vrot.slane %v3733_v19, 1  ;;  %v3745_v29 = vsel %vm633_vm1, %v645_v51, %v647_v22  ;;  %v819_v31 = vrot.slane %v536_v30, 2  ;;  %507 = vst.msk [vmem:[#allocation2 + $0x79] sm:$0xff] %vm306_vm0, %v474_v47 }
  0x4f   : > { %v3713_v61 = vsel %vm633_vm1, %v639_v54, %v640_v57  ;;  %v818_v4 = vsel %vm810_vm3, %v816_v55, %v817_v59  ;;  %v700_v26 = vrot.slane %v3735_v20, 1  ;;  %v642_v37 = vrot.slane %v536_v30, 1  ;;  %v3772_v45 = vld [vmem:[#allocation2 + $0x48] sm:$0xff]  ;;  %v392_v30 = vld [vmem:[%s3604_s11 + $0xf0] sm:$0xff]  ;;  %1608 = vst.msk [vmem:[#allocation3] sm:$0xff] %vm1019_vm5, %v5494_v0 }
  0x50   : > { %718 = vrot.lane.b32.xlu1 %v3713_v61, %s3452_s29  ;;  %895 = vrot.lane.b32.xlu2 %v818_v4, %s3453_s16  ;;  %v3754_v33 = vld [vmem:[#allocation2 + $0x58] sm:$0x3]  ;;  %v820_v34 = vsel %vm810_vm3, %v817_v59, %v819_v31  ;;  %v3764_v40 = vld [vmem:[#allocation2 + $0x50] sm:$0xff]  ;;  %v475_v50 = vmax.f32 %v443_v43, 0.0  ;;  %v826_v54 = vrot.slane %v3772_v45, 2  ;;  %v390_v59 = vld [vmem:[%s3604_s11 + $0xe0] sm:$0xff]  ;;  %v463_v7 = vadd.f32 %v3626_v9, %v427_v3 }
  0x51   : > { %v3750_v32 = vsel %vm633_vm1, %v699_v25, %v700_v26  ;;  %v652_v41 = vrot.slane %v3754_v33, 1  ;;  %v3770_v44 = vsel %vm633_vm1, %v640_v57, %v642_v37  ;;  %v650_v46 = vrot.slane %v3764_v40, 1  ;;  %v572_v57 = vld [vmem:[#allocation2 + $0x148] sm:$0x3]  ;;  %v3803_v15 = vld [vmem:[#allocation2 + $0x60] sm:$0xff]  ;;  %v393_v31 = vld [vmem:[%s3604_s11 + $0xf8] sm:$0xff] }
  0x52   : > { %5505 = vst [vmem:[#allocation4_spill] sm:$0xff] %v3750_v32  ;;  %v827_v51 = vrot.slane %v3764_v40, 2  ;;  %v649_v62 = vrot.slane %v3772_v45, 1  ;;  %v426_v63 = vmul.f32 %v3613_v6, %v390_v59  ;;  %v879_v4 = vrot.slane %v572_v57, 2 }
  0x53   : > { %v3778_v55 = vsel %vm633_vm1, %v650_v46, %v652_v41  ;;  %508 = vst.msk [vmem:[#allocation2 + $0x81] sm:$0xff] %vm306_vm0, %v475_v50  ;;  %v877_v10 = vrot.slane %v3735_v20, 2  ;;  %v495_v12 = vmax.f32 %v463_v7, 0.0  ;;  %v702_v13 = vrot.slane %v572_v57, 1  ;;  %v3841_v42 = vld [vmem:[#allocation2 + $0x150] sm:$0xff] }
  0x54   : > { %v828_v58 = vsel %vm810_vm3, %v826_v54, %v827_v51  ;;  %v462_v5 = vadd.f32 %v3626_v9, %v426_v63  ;;  %v3796_v8 = vsel %vm633_vm1, %v649_v62, %v650_v46  ;;  %v876_v18 = vrot.slane %v3733_v19, 2  ;;  %v3822_v27 = vld [vmem:[#allocation2 + $0x160] sm:$0x3]  ;;  %v3835_v37 = vld [vmem:[#allocation2 + $0x158] sm:$0xff]  ;;  %v372_v57 = vld [vmem:[%s3604_s11 + $0x50] sm:$0xff]  ;;  %1609 = vst.msk [vmem:[#allocation3 + $0x8] sm:$0xff] %vm1019_vm5, %v5494_v0 }
  0x55   : > { %v880_v14 = vsel %vm810_vm3, %v877_v10, %v879_v4  ;;  %v3808_v17 = vsel %vm633_vm1, %v700_v26, %v702_v13  ;;  %528 = vst.msk [vmem:[#allocation2 + $0x171] sm:$0xff] %vm306_vm0, %v495_v12  ;;  %v831_v21 = vrot.slane %v3803_v15, 2  ;;  %v654_v25 = vrot.slane %v3803_v15, 1  ;;  %v3855_v62 = vld [vmem:[#allocation2 + $0x78] sm:$0xff] }
  0x56   : > { %899 = vrot.lane.b32.xlu0 %v823_v11, %s3453_s16  ;;  %v494_v11 = vmax.f32 %v462_v5, 0.0  ;;  %5506 = vst [vmem:[#allocation5_spill] sm:$0xff] %v3808_v17  ;;  %v878_v23 = vsel %vm810_vm3, %v876_v18, %v877_v10  ;;  %v428_v35 = vmul.f32 %v3613_v6, %v392_v30  ;;  %v429_v36 = vmul.f32 %v3613_v6, %v393_v31  ;;  %v545_v18 = vld [vmem:[#allocation2 + $0x70] sm:$0x3] }
  0x57   : > { %v707_v38 = vrot.slane %v3822_v27, 1  ;;  %v705_v43 = vrot.slane %v3835_v37, 1  ;;  %v882_v50 = vrot.slane %v3835_v37, 2  ;;  %v881_v54 = vrot.slane %v3841_v42, 2  ;;  %1612 = vst.msk [vmem:[#allocation3 + $0x18] sm:$0xff] %vm1019_vm5, %v5494_v0 }
  0x58   : > { %901 = vrot.lane.b32.xlu1 %v825_v16, %s3453_s16  ;;  %897 = vrot.lane.b32.xlu2 %v820_v34, %s3453_s16  ;;  %527 = vst.msk [vmem:[#allocation2 + $0x169] sm:$0xff] %vm306_vm0, %v494_v11  ;;  %v3805_v16 = vld [vmem:[#allocation2 + $0x68] sm:$0xff]  ;;  %v829_v34 = vrot.slane %v3754_v33, 2  ;;  %v464_v39 = vadd.f32 %v3626_v9, %v428_v35  ;;  %v465_v41 = vadd.f32 %v3626_v9, %v429_v36  ;;  %v704_v4 = vrot.slane %v3841_v42, 1 }
  0x59   : > { %v832_v22 = vrot.slane %v3805_v16, 2  ;;  %v655_v24 = vrot.slane %v3805_v16, 1  ;;  %v3849_v59 = vsel %vm633_vm1, %v705_v43, %v707_v38  ;;  %v408_v60 = vmul.f32 %v3613_v6, %v372_v57  ;;  %1613 = vst.msk [vmem:[#allocation3 + $0x20] sm:$0xff] %vm1019_vm5, %v5494_v0 }
  0x5a   : > { %v830_v33 = vsel %vm810_vm3, %v827_v51, %v829_v34  ;;  %v496_v46 = vmax.f32 %v464_v39, 0.0  ;;  %v497_v47 = vmax.f32 %v465_v41, 0.0  ;;  %5507 = vst [vmem:[#allocation6_spill] sm:$0xff] %v3849_v59  ;;  %v3857_v63 = vld [vmem:[#allocation2 + $0x80] sm:$0xff]  ;;  %v883_v3 = vsel %vm810_vm3, %v881_v54, %v882_v50 }
  0x5b   : > { %v833_v26 = vsel %vm810_vm3, %v831_v21, %v832_v22  ;;  %v3825_v28 = vsel %vm633_vm1, %v654_v25, %v655_v24  ;;  %v444_v5 = vadd.f32 %v3626_v9, %v408_v60  ;;  %v659_v10 = vrot.slane %v3855_v62, 1  ;;  %1615 = vst.msk [vmem:[#allocation3 + $0x30] sm:$0xff] %vm1019_vm5, %v5494_v0 }
  0x5c   : > { %529 = vst.msk [vmem:[#allocation2 + $0x181] sm:$0xff] %vm306_vm0, %v496_v46  ;;  %v660_v11 = vrot.slane %v3857_v63, 1  ;;  %v834_v21 = vrot.slane %v545_v18, 2  ;;  %v657_v31 = vrot.slane %v545_v18, 1  ;;  %v884_v46 = vrot.slane %v3822_v27, 2 }
  0x5d   : > { %530 = vst.msk [vmem:[#allocation2 + $0x189] sm:$0xff] %vm306_vm0, %v497_v47  ;;  %v476_v12 = vmax.f32 %v444_v5, 0.0 }
  0x5e   : > { %724 = vrot.lane.b32.xlu0 %v3745_v29, %s3452_s29  ;;  %v835_v30 = vsel %vm810_vm3, %v832_v22, %v834_v21  ;;  %v3890_v36 = vsel %vm633_vm1, %v655_v24, %v657_v31  ;;  %v548_v22 = vld [vmem:[#allocation2 + $0x88] sm:$0x3]  ;;  %v836_v31 = vrot.slane %v3855_v62, 2  ;;  %1616 = vst.msk [vmem:[#allocation3 + $0x38] sm:$0xff] %vm1019_vm5, %v5494_v0 }
  0x5f   : > { %509 = vst.msk [vmem:[#allocation2 + $0x91] sm:$0xff] %vm306_vm0, %v476_v12  ;;  %v3879_v25 = vld [vmem:[#allocation2 + $0x168] sm:$0xff]  ;;  %v839_v57 = vrot.slane %v548_v22, 2  ;;  %v662_v5 = vrot.slane %v548_v22, 1 }
  0x60   : > { %766 = vrot.lane.b32.xlu1 %v3750_v32, %s3452_s29  ;;  %903 = vrot.lane.b32.xlu2 %v828_v58, %s3453_s16  ;;  %v373_v58 = vld [vmem:[%s3604_s11 + $0x58] sm:$0xff]  ;;  %v886_v34 = vrot.slane %v3879_v25, 2  ;;  %v709_v39 = vrot.slane %v3879_v25, 1  ;;  %v375_v24 = vld [vmem:[%s3604_s11 + $0x68] sm:$0xff]  ;;  %1618 = vst.msk [vmem:[#allocation3 + $0x48] sm:$0xff] %vm1019_vm5, %v5494_v0 }
  0x61   : > { %v409_v51 = vmul.f32 %v3613_v6, %v373_v58  ;;  %v411_v54 = vmul.f32 %v3613_v6, %v375_v24  ;;  %1619 = vst.msk [vmem:[#allocation3 + $0x50] sm:$0xff] %vm1019_vm5, %v5494_v0 }
  0x62   : > { %1621 = vst.msk [vmem:[#allocation3 + $0x60] sm:$0xff] %vm1019_vm5, %v5494_v0 }
  0x63   : > { %v445_v7 = vadd.f32 %v3626_v9, %v409_v51  ;;  %v447_v60 = vadd.f32 %v3626_v9, %v411_v54  ;;  %v885_v51 = vsel %vm810_vm3, %v882_v50, %v884_v46  ;;  %v3921_v21 = vld [vmem:[#allocation2 + $0x180] sm:$0xff]  ;;  %v578_v46 = vld [vmem:[#allocation2 + $0x178] sm:$0x3]  ;;  %1622 = vst.msk [vmem:[#allocation3 + $0x68] sm:$0xff] %vm1019_vm5, %v5494_v0 }
  0x64   : > { %v3923_v50 = vld [vmem:[#allocation2 + $0x188] sm:$0xff]  ;;  %1624 = vst.msk [vmem:[#allocation3 + $0x78] sm:$0xff] %vm1019_vm5, %v5494_v0 }
  0x65   : > { %v477_v13 = vmax.f32 %v445_v7, 0.0  ;;  %v479_v27 = vmax.f32 %v447_v60, 0.0  ;;  %v384_v7 = vld [vmem:[%s3604_s11 + $0xb0] sm:$0xff]  ;;  %v1058_v22 = vrot.slane %v3923_v50, 1  ;;  %1625 = vst.msk [vmem:[#allocation3 + $0x80] sm:$0xff] %vm1019_vm5, %v5494_v0 }
  0x66   : > { %720 = vrot.lane.b32.xlu0 %v3770_v44, %s3452_s29  ;;  %1627 = vst.msk [vmem:[#allocation3 + $0x90] sm:$0xff] %vm1019_vm5, %v5494_v0 }
  0x67   : > { %510 = vst.msk [vmem:[#allocation2 + $0x99] sm:$0xff] %vm306_vm0, %v477_v13  ;;  %v420_v13 = vmul.f32 %v3613_v6, %v384_v7 }
  0x68   : > { %728 = vrot.lane.b32.xlu1 %v3778_v55, %s3452_s29  ;;  %768 = vrot.lane.b32.xlu2 %v3808_v17, %s3452_s29  ;;  %512 = vst.msk [vmem:[#allocation2 + $0xb1] sm:$0xff] %vm306_vm0, %v479_v27  ;;  %v712_v27 = vrot.slane %v578_v46, 1  ;;  %v383_v17 = vld [vmem:[%s3604_s11 + $0xa8] sm:$0xff] }
  0x69   : > { %1628 = vst.msk [vmem:[#allocation3 + $0x98] sm:$0xff] %vm1019_vm5, %v5494_v0 }
  0x6a   : > { %1630 = vst.msk [vmem:[#allocation3 + $0xa8] sm:$0xff] %vm1019_vm5, %v5494_v0 }
  0x6b   : > { %1631 = vst.msk [vmem:[#allocation3 + $0xb0] sm:$0xff] %vm1019_vm5, %v5494_v0 }
  0x6c   : > { %1633 = vst.msk [vmem:[#allocation3 + $0xc0] sm:$0xff] %vm1019_vm5, %v5494_v0 }
  0x6d   : > { %1634 = vst.msk [vmem:[#allocation3 + $0xc8] sm:$0xff] %vm1019_vm5, %v5494_v0 }
  0x6e   : > { %726 = vrot.lane.b32.xlu0 %v3796_v8, %s3452_s29  ;;  %v3946_v60 = vld [vmem:[#allocation2 + $0xa0] sm:$0x3]  ;;  %1636 = vst.msk [vmem:[#allocation3 + $0xd8] sm:$0xff] %vm1019_vm5, %v5494_v0 }
  0x6f   : > { %v667_v7 = vrot.slane %v3946_v60, 1  ;;  %1637 = vst.msk [vmem:[#allocation3 + $0xe0] sm:$0xff] %vm1019_vm5, %v5494_v0 }
  0x70   : > { %945 = vrot.lane.b32.xlu1 %v880_v14, %s3453_s16  ;;  %730 = vrot.lane.b32.xlu2 %v3825_v28, %s3452_s29  ;;  %v3870_v14 = vsel %vm633_vm1, %v704_v4, %v705_v43  ;;  %v374_v43 = vld [vmem:[%s3604_s11 + $0x60] sm:$0xff]  ;;  %1639 = vst.msk [vmem:[#allocation3 + $0xf0] sm:$0xff] %vm1019_vm5, %v5494_v0 }
  0x71   : > { %5508 = vst [vmem:[#allocation7_spill] sm:$0xff] %v3870_v14  ;;  %v410_v47 = vmul.f32 %v3613_v6, %v374_v43 }
  0x72   : > { %1640 = vst.msk [vmem:[#allocation3 + $0xf8] sm:$0xff] %vm1019_vm5, %v5494_v0 }
  0x73   : > { %v446_v58 = vadd.f32 %v3626_v9, %v410_v47  ;;  %v889_v47 = vrot.slane %v578_v46, 2  ;;  %1642 = vst.msk [vmem:[#allocation3 + $0x108] sm:$0xff] %vm1019_vm5, %v5494_v0 }
  0x74   : > { %1643 = vst.msk [vmem:[#allocation3 + $0x110] sm:$0xff] %vm1019_vm5, %v5494_v0 }
  0x75   : > { %v478_v4 = vmax.f32 %v446_v58, 0.0  ;;  %v892_v58 = vpop.permute.xlu2 %891  ;;  %1645 = vst.msk [vmem:[#allocation3 + $0x120] sm:$0xff] %vm1019_vm5, %v5494_v0 }
  0x76   : > { %943 = vrot.lane.b32.xlu0 %v878_v23, %s3453_s16  ;;  %v3875_v23 = vsel %vm633_vm1, %v659_v10, %v660_v11  ;;  %v385_v10 = vld [vmem:[%s3604_s11 + $0xb8] sm:$0xff]  ;;  %1646 = vst.msk [vmem:[#allocation3 + $0x128] sm:$0xff] %vm1019_vm5, %v5494_v0 }
  0x77   : > { %511 = vst.msk [vmem:[#allocation2 + $0xa9] sm:$0xff] %vm306_vm0, %v478_v4  ;;  %v421_v18 = vmul.f32 %v3613_v6, %v385_v10 }
  0x78   : > { %907 = vrot.lane.b32.xlu1 %v833_v26, %s3453_s16  ;;  %947 = vrot.lane.b32.xlu2 %v883_v3, %s3453_s16  ;;  %v3881_v26 = vld [vmem:[#allocation2 + $0x170] sm:$0xff]  ;;  %v837_v3 = vrot.slane %v3857_v63, 2  ;;  %1648 = vst.msk [vmem:[#allocation3 + $0x138] sm:$0xff] %vm1019_vm5, %v5494_v0 }
  0x79   : > { %v887_v35 = vrot.slane %v3881_v26, 2  ;;  %v710_v38 = vrot.slane %v3881_v26, 1  ;;  %1649 = vst.msk [vmem:[#allocation3 + $0x140] sm:$0xff] %vm1019_vm5, %v5494_v0 }
  0x7a   : > { %v840_v12 = vsel %vm810_vm3, %v837_v3, %v839_v57  ;;  %v838_v24 = vsel %vm810_vm3, %v836_v31, %v837_v3  ;;  %v1053_v3 = vld [vmem:[%s5480_s3 + $0x8] sm:$0xf]  ;;  %1651 = vst.msk [vmem:[#allocation3 + $0x150] sm:$0xff] %vm1019_vm5, %v5494_v0 }
  0x7b   : > { %v888_v41 = vsel %vm810_vm3, %v886_v34, %v887_v35  ;;  %v456_v34 = vadd.f32 %v3626_v9, %v420_v13  ;;  %v890_v4 = vsel %vm810_vm3, %v887_v35, %v889_v47  ;;  %3212 = vmatpush.msk.msra.mxu1 %vm1183_vm4, %v1053_v3  ;;  %v3973_v10 = vsel %vm633_vm1, %v710_v38, %v712_v27  ;;  %v4022_v47 = vld [vmem:[%s5480_s3 + $0x20] sm:$0xff] }
  0x7c   : > { %5511 = vst [vmem:[#allocation10_spill] sm:$0xff] %v3973_v10 }
  0x7d   : > { %v488_v43 = vmax.f32 %v456_v34, 0.0  ;;  %1652 = vst.msk [vmem:[#allocation3 + $0x158] sm:$0xff] %vm1019_vm5, %v5494_v0 }
  0x7e   : > { %905 = vrot.lane.b32.xlu0 %v830_v33, %s3453_s16  ;;  %v3900_v33 = vsel %vm633_vm1, %v709_v39, %v710_v38  ;;  %v457_v39 = vadd.f32 %v3626_v9, %v421_v18  ;;  %v3178_v18 = vld [vmem:[%s5480_s3 + $0x18] sm:$0xf]  ;;  %v3177_v38 = vld [vmem:[%s5480_s3 + $0x10] sm:$0xff]  ;;  %1654 = vst.msk [vmem:[#allocation3 + $0x168] sm:$0xff] %vm1019_vm5, %v5494_v0 }
  0x7f   : > { %5509 = vst [vmem:[#allocation8_spill] sm:$0xff] %v3900_v33  ;;  %3179 = vmatpush.msk.msra.mxu0 %vm1183_vm4, %v3178_v18  ;;  %3419 = vmatpush.msk.msra.mxu3 %vm1183_vm4, %v3178_v18  ;;  %v1068_v18 = vrot.slane %v3921_v21, 2 }
  0x80   : > { %772 = vrot.lane.b32.xlu1 %v3849_v59, %s3452_s29  ;;  %909 = vrot.lane.b32.xlu2 %v835_v30, %s3453_s16  ;;  %v3926_v30 = vsel %vm633_vm1, %v660_v11, %v662_v5  ;;  %v489_v11 = vmax.f32 %v457_v39, 0.0  ;;  %521 = vst.msk [vmem:[#allocation2 + $0x121] sm:$0xff] %vm306_vm0, %v488_v43  ;;  %v3958_v5 = vld [vmem:[#allocation2 + $0x98] sm:$0xff]  ;;  %v4004_v43 = vld [vmem:[%s5480_s3 + $0x28] sm:$0xf] }
  0x81   : > { %v665_v13 = vrot.slane %v3958_v5, 1  ;;  %v842_v31 = vrot.slane %v3958_v5, 2  ;;  %1202 = vmatpush.msra.mxu0 %v3177_v38  ;;  %3247 = vmatpush.msk.msra.mxu2 %vm1183_vm4, %v4004_v43  ;;  %1655 = vst.msk [vmem:[#allocation3 + $0x170] sm:$0xff] %vm1019_vm5, %v5494_v0  ;;  %v554_v59 = vld [vmem:[#allocation2 + $0xb8] sm:$0x3] }
  0x82   : > { %522 = vst.msk [vmem:[#allocation2 + $0x129] sm:$0xff] %vm306_vm0, %v489_v11  ;;  %3420 = vmatpush.msra.mxu3 %v3177_v38 }
  0x83   : > { %v3993_v39 = vsel %vm633_vm1, %v665_v13, %v667_v7  ;;  %1478 = vmatpush.msra.mxu2 %v4022_v47  ;;  %1657 = vst.msk [vmem:[#allocation3 + $0x180] sm:$0xff] %vm1019_vm5, %v5494_v0 }
  0x84   : > { %3421 = vmatpush.msk.msrb.mxu3 %vm1183_vm4, %v1053_v3  ;;  %1658 = vst.msk [vmem:[#allocation3 + $0x188] sm:$0xff] %vm1019_vm5, %v5494_v0 }
  0x85   : > { %1660 = vst.msk [vmem:[#allocation3 + $0x198] sm:$0xff] %vm1019_vm5, %v5494_v0 }
  0x86   : > { %770 = vrot.lane.b32.xlu0 %v3870_v14, %s3452_s29  ;;  %1661 = vst.msk [vmem:[#allocation3 + $0x1a0] sm:$0xff] %vm1019_vm5, %v5494_v0 }
  0x88   : > { %734 = vrot.lane.b32.xlu1 %v3875_v23, %s3452_s29  ;;  %774 = vrot.lane.b32.xlu2 %v3900_v33, %s3452_s29 }
  0x8a   : > { %v715_v57 = vpop.permute.xlu1 %714 }
  0x8e   : > { %732 = vrot.lane.b32.xlu0 %v3890_v36, %s3452_s29 }
  0x90   : > { %951 = vrot.lane.b32.xlu1 %v888_v41, %s3453_s16  ;;  %736 = vrot.lane.b32.xlu2 %v3926_v30, %s3452_s29  ;;  %v1057_v41 = vrot.slane %v3921_v21, 1 }
  0x92   : > { %v3943_v54 = vsel %vm633_vm1, %v1057_v41, %v1058_v22  ;;  %v581_v41 = vld [vmem:[#allocation2 + $0x190] sm:$0x3] }
  0x93   : > { %5510 = vst [vmem:[#allocation9_spill] sm:$0xff] %v3943_v54  ;;  %v1060_v27 = vrot.slane %v581_v41, 1 }
  0x95   : > { %v717_v46 = vpop.permute.xlu2 %716 }
  0x96   : > { %949 = vrot.lane.b32.xlu0 %v885_v51, %s3453_s16  ;;  %v987_v51 = vsel %vm306_vm0, %v3522_v1, %v715_v57  ;;  %v1052_v1 = vld [vmem:[%s5480_s3] sm:$0xff]  ;;  %v1071_v57 = vrot.slane %v581_v41, 2 }
  0x97   : > { %1324 = vmatpush.msra.mxu1 %v1052_v1  ;;  %v1020_v35 = vsel %vm1019_vm5, %v987_v51, %v892_v58  ;;  %v1069_v51 = vrot.slane %v3923_v50, 2  ;;  %3422 = vmatpush.msrb.mxu3 %v1052_v1 }
  0x98   : > { %913 = vrot.lane.b32.xlu1 %v840_v12, %s3453_s16  ;;  %953 = vrot.lane.b32.xlu2 %v890_v4, %s3453_s16  ;;  %v3975_v12 = vld [vmem:[#allocation2 + $0x90] sm:$0xff]  ;;  %v988_v4 = vsel %vm306_vm0, %v3526_v2, %v717_v46 }
  0x99   : > { %3213 = vmatmul.msk.f32.vlgmr.msra.gmra.mxu1 %vm1086_vm6, %v1020_v35  ;;  %v841_v34 = vrot.slane %v3975_v12, 2  ;;  %v1072_v3 = vsel %vm810_vm3, %v1069_v51, %v1071_v57  ;;  %v4045_v35 = vld [vmem:[#allocation2 + $0xa8] sm:$0xff]  ;;  %v4047_v2 = vld [vmem:[#allocation2 + $0xb0] sm:$0xff]  ;;  %v1070_v41 = vsel %vm810_vm3, %v1068_v18, %v1069_v51 }
  0x9a   : > { %v846_v38 = vrot.slane %v4045_v35, 2  ;;  %v4089_v57 = vld [vmem:[#allocation2 + $0x130] sm:$0x3] }
  0x9b   : > { %v843_v11 = vsel %vm810_vm3, %v841_v34, %v842_v31  ;;  %v376_v51 = vld [vmem:[%s3604_s11 + $0x70] sm:$0xff] }
  0x9c   : > { %v412_v18 = vmul.f32 %v3613_v6, %v376_v51 }
  0x9e   : > { %911 = vrot.lane.b32.xlu0 %v838_v24, %s3453_s16  ;;  %v664_v24 = vrot.slane %v3975_v12, 1 }
  0xa0   : > { %1062 = vrot.lane.b32.xlu1 %v3943_v54, %s3452_s29  ;;  %915 = vrot.lane.b32.xlu2 %v843_v11, %s3453_s16  ;;  %v4031_v58 = vsel %vm633_vm1, %v664_v24, %v665_v13  ;;  %v4055_v13 = vsel %vm633_vm1, %v1058_v22, %v1060_v27  ;;  %v5487_v22 = vrot.slane %v4047_v2, 2  ;;  %v5486_v11 = vrot.slane %v4047_v2, 1 }
  0xa1   : > { %5512 = vst [vmem:[#allocation11_spill] sm:$0xff] %v4055_v13  ;;  %v669_v24 = vrot.slane %v4045_v35, 1  ;;  %v844_v27 = vrot.slane %v3946_v60, 2  ;;  %v697_v60 = vrot.slane %v4089_v57, 1 }
  0xa2   : > { %v848_v46 = vsel %vm810_vm3, %v846_v38, %v5487_v22 }
  0xa6   : > { %776 = vrot.lane.b32.xlu0 %v3973_v10, %s3452_s29 }
  0xa8   : > { %740 = vrot.lane.b32.xlu1 %v3993_v39, %s3452_s29  ;;  %1064 = vrot.lane.b32.xlu2 %v4055_v13, %s3452_s29 }
  0xaa   : > { %v4070_v34 = vpop.permute.xlu2 %895 }
  0xad   : > { %v894_v7 = vpop.permute.xlu1 %893 }
  0xae   : > { %738 = vrot.lane.b32.xlu0 %v4031_v58, %s3452_s29  ;;  %v1021_v1 = vsel %vm1019_vm5, %v988_v4, %v894_v7  ;;  %v4095_v4 = vsel %vm633_vm1, %v669_v24, %v5486_v11  ;;  %v4106_v7 = vld [vmem:[#allocation2 + $0x128] sm:$0xff]  ;;  %v4124_v11 = vld [vmem:[#allocation2 + $0x120] sm:$0xff] }
  0xaf   : > { %3214 = vmatmul.msk.f32.gmra.mxu1 %vm1086_vm6, %v1021_v1  ;;  %v378_v1 = vld [vmem:[%s3604_s11 + $0x80] sm:$0xff]  ;;  %v695_v22 = vrot.slane %v4106_v7, 1  ;;  %v5491_v13 = vrot.slane %v4106_v7, 2 }
  0xb0   : > { %1075 = vrot.lane.b32.xlu1 %v1072_v3, %s3453_s16  ;;  %v377_v3 = vld [vmem:[%s3604_s11 + $0x78] sm:$0xff]  ;;  %742 = vrot.lane.b32.xlu2 %v4095_v4, %s3452_s29  ;;  %v414_v51 = vmul.f32 %v3613_v6, %v378_v1 }
  0xb1   : > { %v413_v24 = vmul.f32 %v3613_v6, %v377_v3  ;;  %v871_v3 = vrot.slane %v4124_v11, 2 }
  0xb2   : > { %v4113_v38 = vpop.permute.xlu2 %897 }
  0xb3   : > { %v449_v1 = vadd.f32 %v3626_v9, %v413_v24  ;;  %v873_v10 = vsel %vm810_vm3, %v871_v3, %v5491_v13 }
  0xb6   : > { %1073 = vrot.lane.b32.xlu0 %v1070_v41, %s3453_s16  ;;  %v379_v41 = vld [vmem:[%s3604_s11 + $0x88] sm:$0xff] }
  0xb7   : > { %v415_v54 = vmul.f32 %v3613_v6, %v379_v41  ;;  %v694_v41 = vrot.slane %v4124_v11, 1 }
  0xb8   : > { %919 = vrot.lane.b32.xlu1 %v848_v46, %s3453_s16  ;;  %v845_v46 = vsel %vm810_vm3, %v842_v31, %v844_v27  ;;  %v4136_v31 = vsel %vm633_vm1, %v695_v22, %v697_v60  ;;  %v448_v27 = vadd.f32 %v3626_v9, %v412_v18  ;;  %939 = vrot.lane.b32.xlu2 %v873_v10, %s3453_s16 }
  0xb9   : > { %5513 = vst [vmem:[#allocation12_spill] sm:$0xff] %v4136_v31  ;;  %v450_v60 = vadd.f32 %v3626_v9, %v414_v51  ;;  %v451_v24 = vadd.f32 %v3626_v9, %v415_v54  ;;  %v481_v51 = vmax.f32 %v449_v1, 0.0  ;;  %v4165_v13 = vsel %vm633_vm1, %v694_v41, %v695_v22  ;;  %v380_v22 = vld [vmem:[%s3604_s11 + $0x90] sm:$0xff]  ;;  %v381_v41 = vld [vmem:[%s3604_s11 + $0x98] sm:$0xff] }
  0xba   : > { %5514 = vst [vmem:[#allocation13_spill] sm:$0xff] %v4165_v13  ;;  %v4167_v54 = vpop.permute.xlu2 %903 }
  0xbb   : > { %v482_v33 = vmax.f32 %v450_v60, 0.0  ;;  %v483_v1 = vmax.f32 %v451_v24, 0.0  ;;  %514 = vst.msk [vmem:[#allocation2 + $0xc9] sm:$0xff] %vm306_vm0, %v481_v51  ;;  %v416_v60 = vmul.f32 %v3613_v6, %v380_v22  ;;  %v5515_v24 = vrot.slane %v4047_v2, 2 }
  0xbd   : > { %515 = vst.msk [vmem:[#allocation2 + $0xd9] sm:$0xff] %vm306_vm0, %v482_v33  ;;  %v452_v51 = vadd.f32 %v3626_v9, %v416_v60 }
  0xbe   : > { %917 = vrot.lane.b32.xlu0 %v845_v46, %s3453_s16  ;;  %v480_v46 = vmax.f32 %v448_v27, 0.0  ;;  %516 = vst.msk [vmem:[#allocation2 + $0xe1] sm:$0xff] %vm306_vm0, %v483_v1 }
  0xc0   : > { %v723_v18 = vpop.permute.xlu0 %722  ;;  %764 = vrot.lane.b32.xlu1 %v4136_v31, %s3452_s29  ;;  %513 = vst.msk [vmem:[#allocation2 + $0xc1] sm:$0xff] %vm306_vm0, %v480_v46 }
  0xc1   : > { %v991_v46 = vsel %vm306_vm0, %v3691_v48, %v723_v18  ;;  %v5516_v48 = vrot.slane %v4047_v2, 1 }
  0xc2   : > { %v719_v10 = vpop.permute.xlu1 %718 }
  0xc3   : > { %v989_v3 = vsel %vm306_vm0, %v3698_v52, %v719_v10  ;;  %v849_v52 = vrot.slane %v554_v59, 2  ;;  %v672_v10 = vrot.slane %v554_v59, 1 }
  0xc4   : > { %v1022_v27 = vsel %vm1019_vm5, %v989_v3, %v4070_v34  ;;  %v417_v34 = vmul.f32 %v3613_v6, %v381_v41 }
  0xc5   : > { %3180 = vmatmul.msk.f32.vlgmr.msra.gmra.mxu0 %vm1086_vm6, %v1022_v27  ;;  %3215 = vmatmul.msk.f32.gmra.mxu1 %vm1086_vm6, %v1022_v27  ;;  %v850_v3 = vsel %vm810_vm3, %v5515_v24, %v849_v52  ;;  %v484_v52 = vmax.f32 %v452_v51, 0.0  ;;  %v4201_v18 = vsel %vm633_vm1, %v5516_v48, %v672_v10  ;;  %v4209_v24 = vpop.permute.xlu2 %768  ;;  %v560_v31 = vld [vmem:[#allocation2 + $0xe8] sm:$0x3] }
  0xc6   : > { %762 = vrot.lane.b32.xlu0 %v4165_v13, %s3452_s29  ;;  %921 = vrot.lane.b32.xlu2 %v850_v3, %s3453_s16  ;;  %v453_v22 = vadd.f32 %v3626_v9, %v417_v34  ;;  %5517 = vst [vmem:[#allocation14_spill] sm:$0xff] %v4201_v18 }
  0xc7   : > { %v4203_v1 = vld [vmem:[#allocation2 + $0xc0] sm:$0xff]  ;;  %517 = vst.msk [vmem:[#allocation2 + $0xf1] sm:$0xff] %vm306_vm0, %v484_v52  ;;  %v4206_v60 = vld [vmem:[#allocation2 + $0xc8] sm:$0xff] }
  0xc8   : > { %v900_v27 = vpop.permute.xlu0 %899  ;;  %v485_v41 = vmax.f32 %v453_v22, 0.0  ;;  %v674_v34 = vrot.slane %v4203_v1, 1  ;;  %v851_v3 = vrot.slane %v4203_v1, 2  ;;  %v675_v10 = vrot.slane %v4206_v60, 1 }
  0xc9   : > { %v4194_v59 = vsel %vm1019_vm5, %v991_v46, %v900_v27  ;;  %v874_v46 = vrot.slane %v4089_v57, 2  ;;  %v557_v27 = vld [vmem:[#allocation2 + $0xd0] sm:$0x3]  ;;  %v852_v51 = vrot.slane %v4206_v60, 2 }
  0xca   : > { %3248 = vmatmul.msk.f32.vlgmr.msra.gmra.mxu2 %vm1086_vm6, %v4194_v59  ;;  %v902_v33 = vpop.permute.xlu1 %901  ;;  %518 = vst.msk [vmem:[#allocation2 + $0xf9] sm:$0xff] %vm306_vm0, %v485_v41  ;;  %v4219_v52 = vsel %vm633_vm1, %v674_v34, %v675_v10  ;;  %v854_v57 = vrot.slane %v557_v27, 2  ;;  %v5519_v34 = vrot.slane %v4106_v7, 2  ;;  %v677_v32 = vrot.slane %v557_v27, 1 }
  0xcb   : > { %5518 = vst [vmem:[#allocation15_spill] sm:$0xff] %v4219_v52  ;;  %746 = vrot.lane.b32.xlu1 %v4219_v52, %s3452_s29  ;;  %v853_v41 = vsel %vm810_vm3, %v851_v3, %v852_v51  ;;  %v4245_v52 = vld [vmem:[#allocation2 + $0xe0] sm:$0xff]  ;;  %v682_v27 = vrot.slane %v560_v31, 1 }
  0xcc   : > { %v855_v3 = vsel %vm810_vm3, %v852_v51, %v854_v57  ;;  %v680_v51 = vrot.slane %v4245_v52, 1 }
  0xce   : > { %744 = vrot.lane.b32.xlu0 %v4201_v18, %s3452_s29  ;;  %923 = vrot.lane.b32.xlu2 %v853_v41, %s3453_s16  ;;  %v4243_v41 = vpop.permute.xlu2 %730 }
  0xd0   : > { %v725_v22 = vpop.permute.xlu0 %724 }
  0xd1   : > { %v992_v48 = vsel %vm306_vm0, %v3694_v49, %v725_v22  ;;  %v875_v49 = vsel %vm810_vm3, %v5519_v34, %v874_v46  ;;  %v382_v22 = vld [vmem:[%s3604_s11 + $0xa0] sm:$0xff] }
  0xd2   : > { %v4227_v0 = vsel %vm1019_vm5, %v992_v48, %v902_v33  ;;  %v4229_v14 = vpop.permute.xlu1 %766  ;;  %v418_v33 = vmul.f32 %v3613_v6, %v382_v22  ;;  %v419_v48 = vmul.f32 %v3613_v6, %v383_v17  ;;  %v4260_v22 = vld [vmem:[#allocation2 + $0xd8] sm:$0xff] }
  0xd3   : > { %3249 = vmatmul.msk.f32.gmra.mxu2 %vm1086_vm6, %v4227_v0  ;;  %925 = vrot.lane.b32.xlu1 %v855_v3, %s3453_s16  ;;  %v4277_v3 = vld [vmem:[#allocation2 + $0xf8] sm:$0xff] }
  0xd4   : > { %v454_v18 = vadd.f32 %v3626_v9, %v418_v33  ;;  %v455_v46 = vadd.f32 %v3626_v9, %v419_v48  ;;  %v4258_v9 = vsel %vm633_vm1, %v675_v10, %v677_v32  ;;  %v856_v32 = vrot.slane %v4260_v22, 2  ;;  %v4275_v10 = vld [vmem:[#allocation2 + $0xf0] sm:$0xff] }
  0xd6   : > { %941 = vrot.lane.b32.xlu0 %v875_v49, %s3453_s16  ;;  %v486_v57 = vmax.f32 %v454_v18, 0.0  ;;  %v487_v49 = vmax.f32 %v455_v46, 0.0  ;;  %v857_v18 = vrot.slane %v4245_v52, 2  ;;  %v4285_v46 = vpop.permute.xlu2 %947 }
  0xd8   : > { %v721_v13 = vpop.permute.xlu0 %720  ;;  %519 = vst.msk [vmem:[#allocation2 + $0x109] sm:$0xff] %vm306_vm0, %v486_v57  ;;  %v859_v57 = vrot.slane %v560_v31, 2  ;;  %v1013_v31 = vsel %vm306_vm0, %v3733_v19, %v4229_v14 }
  0xd9   : > { %v990_v34 = vsel %vm306_vm0, %v3700_v53, %v721_v13  ;;  %v679_v53 = vrot.slane %v4260_v22, 1  ;;  %520 = vst.msk [vmem:[#allocation2 + $0x111] sm:$0xff] %vm306_vm0, %v487_v49  ;;  %v4268_v13 = vsel %vm633_vm1, %v680_v51, %v682_v27  ;;  %v862_v27 = vrot.slane %v4277_v3, 2 }
  0xda   : > { %v1023_v6 = vsel %vm1019_vm5, %v990_v34, %v4113_v38  ;;  %v729_v17 = vpop.permute.xlu1 %728  ;;  %5520 = vst [vmem:[#allocation16_spill] sm:$0xff] %v4268_v13  ;;  %v860_v49 = vsel %vm810_vm3, %v857_v18, %v859_v57  ;;  %v563_v57 = vld [vmem:[#allocation2 + $0x100] sm:$0x3] }
  0xdb   : > { %3181 = vmatmul.msk.f32.gmra.mxu0 %vm1086_vm6, %v1023_v6  ;;  %3216 = vmatmul.msk.f32.gmra.mxu1 %vm1086_vm6, %v1023_v6  ;;  %v4271_v38 = vsel %vm633_vm1, %v679_v53, %v680_v51  ;;  %v861_v6 = vrot.slane %v4275_v10, 2  ;;  %v684_v53 = vrot.slane %v4275_v10, 1 }
  0xdc   : > { %5521 = vst [vmem:[#allocation17_spill] sm:$0xff] %v4271_v38  ;;  %750 = vrot.lane.b32.xlu2 %v4271_v38, %s3452_s29  ;;  %752 = vrot.lane.b32.xlu1 %v4268_v13, %s3452_s29 }
  0xde   : > { %748 = vrot.lane.b32.xlu0 %v4258_v9, %s3452_s29  ;;  %v910_v14 = vpop.permute.xlu2 %909 }
  0xe0   : > { %v727_v33 = vpop.permute.xlu0 %726  ;;  %v4304_v13 = vld [vmem:[#allocation2 + $0x110] sm:$0xff] }
  0xe1   : > { %v993_v48 = vsel %vm306_vm0, %v3772_v45, %v727_v33  ;;  %v858_v45 = vsel %vm810_vm3, %v856_v32, %v857_v18  ;;  %v685_v33 = vrot.slane %v4277_v3, 1 }
  0xe2   : > { %v1026_v34 = vsel %vm1019_vm5, %v993_v48, %v4167_v54  ;;  %v946_v51 = vpop.permute.xlu1 %945  ;;  %v863_v54 = vsel %vm810_vm3, %v861_v6, %v862_v27  ;;  %v4302_v48 = vld [vmem:[#allocation2 + $0x108] sm:$0xff] }
  0xe3   : > { %3182 = vmatmul.msk.f32.gmra.mxu0 %vm1086_vm6, %v4194_v59  ;;  %3217 = vmatmul.msk.f32.gmra.mxu1 %vm1086_vm6, %v4194_v59  ;;  %v689_v6 = vrot.slane %v4302_v48, 1  ;;  %v4323_v19 = vsel %vm633_vm1, %v684_v53, %v685_v33  ;;  %v566_v53 = vld [vmem:[#allocation2 + $0x118] sm:$0x3] }
  0xe4   : > { %3250 = vmatmul.msk.f32.gmra.mxu2 %vm1086_vm6, %v1026_v34  ;;  %929 = vrot.lane.b32.xlu2 %v860_v49, %s3453_s16 }
  0xe5   : > { %931 = vrot.lane.b32.xlu1 %v863_v54, %s3453_s16  ;;  %v1014_v54 = vsel %vm306_vm0, %v3735_v20, %v4209_v24  ;;  %v869_v24 = vrot.slane %v566_v53, 2 }
  0xe6   : > { %927 = vrot.lane.b32.xlu0 %v858_v45, %s3453_s16  ;;  %v690_v45 = vrot.slane %v4304_v13, 1 }
  0xe8   : > { %v944_v59 = vpop.permute.xlu0 %943  ;;  %v4333_v49 = vsel %vm633_vm1, %v689_v6, %v690_v45  ;;  %v995_v6 = vsel %vm306_vm0, %v3803_v15, %v4243_v41 }
  0xe9   : > { %v4311_v32 = vsel %vm1019_vm5, %v1013_v31, %v944_v59  ;;  %v994_v31 = vsel %vm306_vm0, %v3764_v40, %v729_v17  ;;  %v687_v17 = vrot.slane %v563_v57, 1 }
  0xea   : > { %3204 = vmatmul.msk.f32.vlgmr.msra.gmra.mxu3 %vm1086_vm6, %v4311_v32  ;;  %v908_v18 = vpop.permute.xlu1 %907 }
  0xeb   : > { %3183 = vmatmul.msk.f32.gmra.mxu0 %vm1086_vm6, %v4227_v0  ;;  %3218 = vmatmul.msk.f32.gmra.mxu1 %vm1086_vm6, %v4227_v0  ;;  %v864_v0 = vrot.slane %v563_v57, 2  ;;  %v1028_v57 = vsel %vm1019_vm5, %v995_v6, %v908_v18 }
  0xec   : > { %3423 = vmatpush.msk.msra.mxu3 %vm1183_vm4, %v4004_v43  ;;  %v4339_v43 = vsel %vm1019_vm5, %v1014_v54, %v946_v51  ;;  %v775_v51 = vpop.permute.xlu2 %774 }
  0xed   : > { %758 = vrot.lane.b32.xlu1 %v4333_v49, %s3452_s29  ;;  %v865_v40 = vsel %vm810_vm3, %v862_v27, %v864_v0 }
  0xee   : > { %754 = vrot.lane.b32.xlu0 %v4323_v19, %s3452_s29  ;;  %3424 = vmatpush.msra.mxu3 %v4022_v47  ;;  %v867_v47 = vrot.slane %v4304_v13, 2 }
  0xf0   : > { %v906_v59 = vpop.permute.xlu0 %905  ;;  %v870_v54 = vsel %vm810_vm3, %v867_v47, %v869_v24 }
  0xf1   : > { %v1027_v38 = vsel %vm1019_vm5, %v994_v31, %v906_v59  ;;  %v4357_v31 = vsel %vm633_vm1, %v685_v33, %v687_v17  ;;  %v692_v59 = vrot.slane %v566_v53, 1 }
  0xf2   : > { %3205 = vmatmul.msk.f32.gmra.mxu3 %vm1086_vm6, %v4339_v43  ;;  %3251 = vmatmul.msk.f32.gmra.mxu2 %vm1086_vm6, %v1027_v38  ;;  %v773_v20 = vpop.permute.xlu1 %772 }
  0xf3   : > { %3184 = vmatmul.msk.f32.gmra.mxu0 %vm1086_vm6, %v1026_v34  ;;  %3219 = vmatmul.msk.f32.gmra.mxu1 %vm1086_vm6, %v1026_v34  ;;  %v4374_v33 = vsel %vm633_vm1, %v690_v45, %v692_v59 }
  0xf4   : > { %756 = vrot.lane.b32.xlu2 %v4357_v31, %s3452_s29 }
  0xf5   : > { %937 = vrot.lane.b32.xlu1 %v870_v54, %s3453_s16 }
  0xf6   : > { %933 = vrot.lane.b32.xlu0 %v865_v40, %s3453_s16 }
  0xf8   : > { %v771_v34 = vpop.permute.xlu0 %770 }
  0xf9   : > { %v1015_v27 = vsel %vm306_vm0, %v3841_v42, %v771_v34  ;;  %v866_v42 = vrot.slane %v4302_v48, 2 }
  0xfa   : > { %3252 = vmatmul.msk.f32.gmra.mxu2 %vm1086_vm6, %v1028_v57  ;;  %v4368_v15 = vsel %vm1019_vm5, %v1015_v27, %v4285_v46  ;;  %v735_v41 = vpop.permute.xlu1 %734  ;;  %v737_v46 = vpop.permute.xlu2 %736 }
  0xfb   : > { %3185 = vmatmul.msk.f32.gmra.mxu0 %vm1086_vm6, %v1027_v38  ;;  %3206 = vmatmul.msk.f32.gmra.mxu3 %vm1086_vm6, %v4368_v15  ;;  %v868_v18 = vsel %vm810_vm3, %v866_v42, %v867_v47  ;;  %v997_v6 = vsel %vm306_vm0, %v3855_v62, %v735_v41  ;;  %v998_v62 = vsel %vm306_vm0, %v3857_v63, %v737_v46  ;;  %v4422_v41 = vld [vmem:[#allocation2 + $0x198] sm:$0xff]  ;;  %v4424_v42 = vld [vmem:[#allocation2 + $0x1a0] sm:$0xff] }
  0xfc   : > { %3220 = vmatmul.msk.f32.gmra.mxu1 %vm1086_vm6, %v1027_v38  ;;  %935 = vrot.lane.b32.xlu2 %v868_v18, %s3453_s16  ;;  %v1016_v38 = vsel %vm306_vm0, %v3835_v37, %v773_v20  ;;  %v1436_v63 = vrot.slane %v4422_v41, 2 }
  0xfe   : > { %760 = vrot.lane.b32.xlu0 %v4374_v33, %s3452_s29 }
 0x100   : > { %v733_v0 = vpop.permute.xlu0 %732 }
 0x101   : > { %v996_v53 = vsel %vm306_vm0, %v3805_v16, %v733_v0 }
 0x102   : > { %v1029_v24 = vsel %vm1019_vm5, %v996_v53, %v910_v14  ;;  %v952_v45 = vpop.permute.xlu1 %951  ;;  %v954_v17 = vpop.permute.xlu2 %953  ;;  %v1017_v14 = vsel %vm306_vm0, %v3879_v25, %v775_v51 }
 0x103   : > { %3186 = vmatmul.msk.f32.gmra.mxu0 %vm1086_vm6, %v1028_v57  ;;  %3253 = vmatmul.msk.f32.gmra.mxu2 %vm1086_vm6, %v1029_v24  ;;  %v4402_v20 = vsel %vm1019_vm5, %v1017_v14, %v952_v45 }
 0x104   : > { %3221 = vmatmul.msk.f32.gmra.mxu1 %vm1086_vm6, %v1028_v57 }
 0x108   : > { %v950_v47 = vpop.permute.xlu0 %949 }
 0x109   : > { %v4391_v40 = vsel %vm1019_vm5, %v1016_v38, %v950_v47  ;;  %v584_v38 = vld [vmem:[#allocation2 + $0x1a8] sm:$0x3]  ;;  %v1426_v47 = vrot.slane %v4424_v42, 1 }
 0x10a   : > { %3207 = vmatmul.msk.f32.gmra.mxu3 %vm1086_vm6, %v4391_v40  ;;  %v914_v16 = vpop.permute.xlu1 %913  ;;  %v916_v34 = vpop.permute.xlu2 %915 }
 0x10b   : > { %3187 = vmatmul.msk.f32.gmra.mxu0 %vm1086_vm6, %v1029_v24  ;;  %v1031_v27 = vsel %vm1019_vm5, %v998_v62, %v914_v16 }
 0x10c   : > { %3222 = vmatmul.msk.f32.gmra.mxu1 %vm1086_vm6, %v1029_v24 }
 0x110   : > { %v912_v37 = vpop.permute.xlu0 %911 }
 0x111   : > { %v1030_v54 = vsel %vm1019_vm5, %v997_v6, %v912_v37 }
 0x112   : > { %3208 = vmatmul.msk.f32.gmra.mxu3 %vm1086_vm6, %v4402_v20  ;;  %3254 = vmatmul.msk.f32.gmra.mxu2 %vm1086_vm6, %v1030_v54  ;;  %v1063_v59 = vpop.permute.xlu1 %1062  ;;  %v1065_v46 = vpop.permute.xlu2 %1064 }
 0x113   : > { %3188 = vmatmul.msk.f32.gmra.mxu0 %vm1086_vm6, %v1030_v54  ;;  %v1080_v62 = vsel %vm306_vm0, %v3923_v50, %v1065_v46  ;;  %v1425_v50 = vrot.slane %v4422_v41, 1  ;;  %v2321_v46 = vld [vmem:[%s5483_s6 + $0x10] sm:$0xff] }
 0x114   : > { %3223 = vmatmul.msk.f32.gmra.mxu1 %vm1086_vm6, %v1030_v54  ;;  %2584 = vmatpush.msrb.mxu0 %v2321_v46 }
 0x118   : > { %v777_v25 = vpop.permute.xlu0 %776 }
 0x119   : > { %v1018_v51 = vsel %vm306_vm0, %v3881_v26, %v777_v25  ;;  %v1437_v26 = vrot.slane %v4424_v42, 2 }
 0x11a   : > { %3255 = vmatmul.msk.f32.gmra.mxu2 %vm1086_vm6, %v1031_v27  ;;  %v4417_v57 = vsel %vm1019_vm5, %v1018_v51, %v954_v17  ;;  %v741_v18 = vpop.permute.xlu1 %740  ;;  %v1428_v17 = vrot.slane %v584_v38, 1  ;;  %v743_v6 = vpop.permute.xlu2 %742 }
 0x11b   : > { %3189 = vmatmul.msk.f32.gmra.mxu0 %vm1086_vm6, %v1031_v27  ;;  %3209 = vmatmul.msk.f32.gmra.mxu3 %vm1086_vm6, %v4417_v57  ;;  %v1438_v0 = vsel %vm810_vm3, %v1436_v63, %v1437_v26  ;;  %v1000_v25 = vsel %vm306_vm0, %v3958_v5, %v741_v18  ;;  %v1427_v5 = vsel %vm633_vm1, %v1425_v50, %v1426_v47 }
 0x11c   : > { %3224 = vmatmul.msk.f32.gmra.mxu1 %vm1086_vm6, %v1031_v27  ;;  %1441 = vrot.lane.b32.xlu0 %v1438_v0, %s3453_s16  ;;  %v1429_v16 = vsel %vm633_vm1, %v1426_v47, %v1428_v17  ;;  %v1001_v18 = vsel %vm306_vm0, %v4045_v35, %v743_v6  ;;  %v3349_v0 = vld [vmem:[%s5483_s6 + $0x40] sm:$0xff] }
 0x11d   : > { %1432 = vrot.lane.b32.xlu1 %v1429_v16, %s3452_s29  ;;  %1430 = vrot.lane.b32.xlu2 %v1427_v5, %s3452_s29  ;;  %v5522_v16 = vmov 0.0   ;;  %s3454_s29 = smov 16  }
 0x11e   : > { %2736 = vmatpush.msrb.mxu1 %v3349_v0  ;;  %1614 = vst.msk [vmem:[#allocation3 + $0x28] sm:$0x3] %vm1610_vm7, %v5522_v16  ;;  %v4552_v0 = vld [vmem:[%s5481_s4] ss:$0 sm:$0xff] }
 0x11f   : > { %1611 = vst.msk [vmem:[#allocation3 + $0x10] sm:$0x3] %vm1610_vm7, %v5522_v16 }
 0x120   : > { %v739_v53 = vpop.permute.xlu0 %738  ;;  %1617 = vst.msk [vmem:[#allocation3 + $0x40] sm:$0x3] %vm1610_vm7, %v5522_v16 }
 0x121   : > { %v999_v24 = vsel %vm306_vm0, %v3975_v12, %v739_v53  ;;  %v1079_v12 = vsel %vm306_vm0, %v3921_v21, %v1063_v59  ;;  %1620 = vst.msk [vmem:[#allocation3 + $0x58] sm:$0x3] %vm1610_vm7, %v5522_v16 }
 0x122   : > { %v1032_v45 = vsel %vm1019_vm5, %v999_v24, %v916_v34  ;;  %v1076_v14 = vpop.permute.xlu1 %1075  ;;  %v2868_v34 = vld [vmem:[%s5484_s7] sm:$0xf]  ;;  %v940_v63 = vpop.permute.xlu2 %939  ;;  %1623 = vst.msk [vmem:[#allocation3 + $0x70] sm:$0x3] %vm1610_vm7, %v5522_v16 }
 0x123   : > { %3190 = vmatmul.msk.f32.gmra.mxu0 %vm1086_vm6, %v1032_v45  ;;  %3256 = vmatmul.msk.f32.gmra.mxu2 %vm1086_vm6, %v1032_v45  ;;  %v4457_v51 = vsel %vm1019_vm5, %v1080_v62, %v1076_v14  ;;  %1626 = vst.msk [vmem:[#allocation3 + $0x88] sm:$0x3] %vm1610_vm7, %v5522_v16  ;;  %v4511_v62 = vld [vmem:[#allocation3 + $0x8] sm:$0xff] }
 0x124   : > { %3225 = vmatmul.msk.f32.gmra.mxu1 %vm1086_vm6, %v1032_v45  ;;  %3382 = vmatpush.msk.msrb.mxu2 %vm1183_vm4, %v2868_v34  ;;  %1629 = vst.msk [vmem:[#allocation3 + $0xa0] sm:$0x3] %vm1610_vm7, %v5522_v16  ;;  %v4509_v34 = vld [vmem:[#allocation3] sm:$0xff] }
 0x125   : > { %1632 = vst.msk [vmem:[#allocation3 + $0xb8] sm:$0x3] %vm1610_vm7, %v5522_v16 }
 0x126   : > { %1635 = vst.msk [vmem:[#allocation3 + $0xd0] sm:$0x3] %vm1610_vm7, %v5522_v16 }
 0x127   : > { %1638 = vst.msk [vmem:[#allocation3 + $0xe8] sm:$0x3] %vm1610_vm7, %v5522_v16 }
 0x128   : > { %v1074_v37 = vpop.permute.xlu0 %1073  ;;  %1641 = vst.msk [vmem:[#allocation3 + $0x100] sm:$0x3] %vm1610_vm7, %v5522_v16 }
 0x129   : > { %v4443_v54 = vsel %vm1019_vm5, %v1079_v12, %v1074_v37  ;;  %v1326_v12 = vpop.f32.mrf.mxu1  ;;  %1644 = vst.msk [vmem:[#allocation3 + $0x118] sm:$0x3] %vm1610_vm7, %v5522_v16 }
 0x12a   : > { %3210 = vmatmul.msk.f32.gmra.mxu3 %vm1086_vm6, %v4443_v54  ;;  %v920_v27 = vpop.permute.xlu1 %919  ;;  %v922_v17 = vpop.permute.xlu2 %921  ;;  %1647 = vst.msk [vmem:[#allocation3 + $0x130] sm:$0x3] %vm1610_vm7, %v5522_v16 }
 0x12b   : > { %v1034_v45 = vsel %vm1019_vm5, %v1001_v18, %v920_v27  ;;  %1650 = vst.msk [vmem:[#allocation3 + $0x148] sm:$0x3] %vm1610_vm7, %v5522_v16 }
 0x12c   : > { %1653 = vst.msk [vmem:[#allocation3 + $0x160] sm:$0x3] %vm1610_vm7, %v5522_v16 }
 0x12d   : > { %1656 = vst.msk [vmem:[#allocation3 + $0x178] sm:$0x3] %vm1610_vm7, %v5522_v16 }
 0x12e   : > { %1659 = vst.msk [vmem:[#allocation3 + $0x190] sm:$0x3] %vm1610_vm7, %v5522_v16 }
 0x12f   : > { %1662 = vst.msk [vmem:[#allocation3 + $0x1a8] sm:$0x3] %vm1610_vm7, %v5522_v16 }
 0x130   : > { %v918_v21 = vpop.permute.xlu0 %917 }
 0x131   : > { %v1033_v59 = vsel %vm1019_vm5, %v1000_v25, %v918_v21  ;;  %v2079_v25 = vrot.slane %v4511_v62, 2 }
 0x132   : > { %3191 = vmatmul.msk.f32.gmra.mxu0 %vm1086_vm6, %v1033_v59  ;;  %3211 = vmatmul.msk.f32.gmra.mxu3 %vm1086_vm6, %v4457_v51  ;;  %v765_v47 = vpop.permute.xlu1 %764 }
 0x133   : > { %3226 = vmatmul.msk.f32.gmra.mxu1 %vm1086_vm6, %v1033_v59  ;;  %3257 = vmatmul.msk.f32.gmra.mxu2 %vm1086_vm6, %v1033_v59  ;;  %v924_v59 = vpop.permute.xlu2 %923 }
 0x138   : > { %v763_v53 = vpop.permute.xlu0 %762 }
 0x139   : > { %v1011_v24 = vsel %vm306_vm0, %v4124_v11, %v763_v53  ;;  %v1439_v11 = vrot.slane %v584_v38, 2 }
 0x13a   : > { %v4479_v35 = vsel %vm1019_vm5, %v1011_v24, %v940_v63  ;;  %3192 = vmatmul.msk.f32.gmra.mxu0 %vm1086_vm6, %v1034_v45 }
 0x13b   : > { %3227 = vmatmul.msk.f32.gmra.mxu1 %vm1086_vm6, %v1034_v45  ;;  %3258 = vmatmul.msk.f32.gmra.mxu2 %vm1086_vm6, %v1034_v45  ;;  %v1440_v14 = vsel %vm810_vm3, %v1437_v26, %v1439_v11  ;;  %v4561_v45 = vld [vmem:[%s5482_s5] ss:$0 sm:$0xff] }
 0x13c   : > { %3237 = vmatmul.msk.f32.vlgmr.msrb.gmra.mxu3 %vm1086_vm6, %v4479_v35  ;;  %1443 = vrot.lane.b32.xlu2 %v1440_v14, %s3453_s16 }
 0x13d   : > { %v747_v26 = vpop.permute.xlu1 %746 }
 0x13e   : > { %v1003_v21 = vsel %vm306_vm0, %v4203_v1, %v747_v26  ;;  %v1012_v1 = vsel %vm306_vm0, %v4106_v7, %v765_v47  ;;  %v1329_v7 = vpop.f32.mrf.mxu1 }
 0x13f   : > { %v1036_v50 = vsel %vm1019_vm5, %v1003_v21, %v924_v59 }
 0x140   : > { %v745_v6 = vpop.permute.xlu0 %744 }
 0x141   : > { %v1002_v38 = vsel %vm306_vm0, %v4047_v2, %v745_v6  ;;  %v2078_v2 = vrot.slane %v4509_v34, 2 }
 0x142   : > { %v1035_v37 = vsel %vm1019_vm5, %v1002_v38, %v922_v17  ;;  %v1204_v5 = vpop.f32.mrf.mxu0 }
 0x143   : > { %3193 = vmatmul.msk.f32.gmra.mxu0 %vm1086_vm6, %v1035_v37  ;;  %3228 = vmatmul.msk.f32.gmra.mxu1 %vm1086_vm6, %v1035_v37  ;;  %v2080_v27 = vsel %vm810_vm3, %v2078_v2, %v2079_v25  ;;  %v1327_v46 = vadd.f32 %v1326_v12, %v1204_v5  ;;  %v751_v12 = vpop.permute.xlu2 %750 }
 0x144   : > { %3259 = vmatmul.msk.f32.gmra.mxu2 %vm1086_vm6, %v1035_v37  ;;  %2158 = vrot.lane.b32.xlu0 %v2080_v27, %s3454_s29 }
 0x145   : > { %v926_v47 = vpop.permute.xlu1 %925 }
 0x146   : > { %v1332_v37 = vpop.f32.mrf.mxu1 }
 0x148   : > { %v942_v63 = vpop.permute.xlu0 %941 }
 0x149   : > { %v4536_v18 = vsel %vm1019_vm5, %v1012_v1, %v942_v63 }
 0x14a   : > { %3238 = vmatmul.msk.f32.gmra.mxu3 %vm1086_vm6, %v4536_v18 }
 0x14b   : > { %3194 = vmatmul.msk.f32.gmra.mxu0 %vm1086_vm6, %v1036_v50  ;;  %3229 = vmatmul.msk.f32.gmra.mxu1 %vm1086_vm6, %v1036_v50  ;;  %v930_v5 = vpop.permute.xlu2 %929 }
 0x14c   : > { %3260 = vmatmul.msk.f32.gmra.mxu2 %vm1086_vm6, %v1036_v50 }
 0x14d   : > { %v1480_v53 = vpop.f32.mrf.mxu2 }
 0x14e   : > { %v1576_v24 = vadd.f32 %v1480_v53, %v1327_v46  ;;  %v753_v1 = vpop.permute.xlu1 %752  ;;  %v1902_v53 = vrot.slane %v4509_v34, 1 }
 0x150   : > { %v1667_v17 = vmul.f32 %v4552_v0, %v1576_v24  ;;  %v749_v11 = vpop.permute.xlu0 %748  ;;  %v1903_v24 = vrot.slane %v4511_v62, 1 }
 0x151   : > { %v1004_v14 = vsel %vm306_vm0, %v4206_v60, %v749_v11  ;;  %v1005_v60 = vsel %vm306_vm0, %v4260_v22, %v751_v12  ;;  %v1006_v22 = vsel %vm306_vm0, %v4245_v52, %v753_v1 }
 0x152   : > { %v1703_v6 = vadd.f32 %v4561_v45, %v1667_v17  ;;  %3239 = vmatmul.msk.f32.gmra.mxu3 %vm1086_vm6, %v4311_v32  ;;  %v1037_v16 = vsel %vm1019_vm5, %v1004_v14, %v926_v47  ;;  %v1039_v17 = vsel %vm1019_vm5, %v1006_v22, %v930_v5  ;;  %v1904_v14 = vsel %vm633_vm1, %v1902_v53, %v1903_v24 }
 0x153   : > { %3195 = vmatmul.msk.f32.gmra.mxu0 %vm1086_vm6, %v1037_v16  ;;  %3230 = vmatmul.msk.f32.gmra.mxu1 %vm1086_vm6, %v1037_v16 }
 0x154   : > { %v1735_v38 = vmax.f32 %v1703_v6, 0.0  ;;  %3261 = vmatmul.msk.f32.gmra.mxu2 %vm1086_vm6, %v1037_v16  ;;  %1982 = vrot.lane.b32.xlu2 %v1904_v14, %s3453_s16 }
 0x156   : > { %1768 = vst.msk [vmem:[#allocation3 + $0x19] sm:$0xff] %vm1019_vm5, %v1735_v38  ;;  %v1483_v59 = vpop.f32.mrf.mxu2 }
 0x157   : > { %v932_v16 = vpop.permute.xlu1 %931 }
 0x158   : > { %v1207_v26 = vpop.f32.mrf.mxu0  ;;  %v928_v21 = vpop.permute.xlu0 %927 }
 0x159   : > { %v1330_v2 = vadd.f32 %v1329_v7, %v1207_v26  ;;  %v1038_v27 = vsel %vm1019_vm5, %v1005_v60, %v928_v21  ;;  %v1335_v46 = vpop.f32.mrf.mxu1 }
 0x15a   : > { %3240 = vmatmul.msk.f32.gmra.mxu3 %vm1086_vm6, %v4339_v43 }
 0x15b   : > { %v1577_v63 = vadd.f32 %v1483_v59, %v1330_v2  ;;  %3196 = vmatmul.msk.f32.gmra.mxu0 %vm1086_vm6, %v1038_v27  ;;  %3231 = vmatmul.msk.f32.gmra.mxu1 %vm1086_vm6, %v1038_v27 }
 0x15c   : > { %3262 = vmatmul.msk.f32.gmra.mxu2 %vm1086_vm6, %v1038_v27 }
 0x15d   : > { %v1668_v50 = vmul.f32 %v4552_v0, %v1577_v63  ;;  %v4602_v21 = vld [vmem:[#allocation3 + $0x18] sm:$0xff]  ;;  %v757_v63 = vpop.permute.xlu2 %756 }
 0x15f   : > { %v1704_v7 = vadd.f32 %v4561_v45, %v1668_v50  ;;  %v1907_v50 = vrot.slane %v4602_v21, 1 }
 0x160   : > { %v1210_v47 = vpop.f32.mrf.mxu0  ;;  %v755_v52 = vpop.permute.xlu0 %754 }
 0x161   : > { %v1736_v11 = vmax.f32 %v1704_v7, 0.0  ;;  %v1007_v6 = vsel %vm306_vm0, %v4275_v10, %v755_v52  ;;  %v1333_v12 = vadd.f32 %v1332_v37, %v1210_v47  ;;  %v1338_v59 = vpop.f32.mrf.mxu1  ;;  %v2083_v10 = vrot.slane %v4602_v21, 2  ;;  %v2320_v52 = vld [vmem:[%s5483_s6 + $0x8] sm:$0xff] }
 0x162   : > { %3241 = vmatmul.msk.f32.gmra.mxu3 %vm1086_vm6, %v4368_v15  ;;  %v1040_v2 = vsel %vm1019_vm5, %v1007_v6, %v932_v16  ;;  %v1008_v47 = vsel %vm306_vm0, %v4277_v3, %v757_v63  ;;  %v3348_v6 = vld [vmem:[%s5483_s6 + $0x38] sm:$0xff]  ;;  %2585 = vmatpush.msrb.mxu0 %v2320_v52  ;;  %v4636_v63 = vld [vmem:[#allocation3 + $0x10] sm:$0x3] }
 0x163   : > { %1769 = vst.msk [vmem:[#allocation3 + $0x21] sm:$0xff] %vm1019_vm5, %v1736_v11  ;;  %3197 = vmatmul.msk.f32.gmra.mxu0 %vm1086_vm6, %v1039_v17  ;;  %3232 = vmatmul.msk.f32.gmra.mxu1 %vm1086_vm6, %v1039_v17 }
 0x164   : > { %3263 = vmatmul.msk.f32.gmra.mxu2 %vm1086_vm6, %v1039_v17  ;;  %2737 = vmatpush.msrb.mxu1 %v3348_v6 }
 0x167   : > { %v1486_v38 = vpop.f32.mrf.mxu2 }
 0x168   : > { %v1578_v60 = vadd.f32 %v1486_v38, %v1333_v12  ;;  %v1213_v26 = vpop.f32.mrf.mxu0  ;;  %v934_v17 = vpop.permute.xlu0 %933 }
 0x169   : > { %v1041_v3 = vsel %vm1019_vm5, %v1008_v47, %v934_v17 }
 0x16a   : > { %v1669_v27 = vmul.f32 %v4552_v0, %v1578_v60  ;;  %3242 = vmatmul.msk.f32.gmra.mxu3 %vm1086_vm6, %v4391_v40  ;;  %v4607_v1 = vld [vmem:[#allocation3 + $0x20] sm:$0xff]  ;;  %v1805_v14 = vld [vmem:[#allocation3 + $0x28] sm:$0x3]  ;;  %v759_v60 = vpop.permute.xlu1 %758 }
 0x16b   : > { %3198 = vmatmul.msk.f32.gmra.mxu0 %vm1086_vm6, %v1040_v2  ;;  %3233 = vmatmul.msk.f32.gmra.mxu1 %vm1086_vm6, %v1040_v2  ;;  %v2084_v37 = vrot.slane %v4607_v1, 2  ;;  %v1908_v22 = vrot.slane %v4607_v1, 1  ;;  %v1910_v12 = vrot.slane %v1805_v14, 1  ;;  %v2086_v38 = vrot.slane %v1805_v14, 2 }
 0x16c   : > { %v1705_v5 = vadd.f32 %v4561_v45, %v1669_v27  ;;  %3264 = vmatmul.msk.f32.gmra.mxu2 %vm1086_vm6, %v1040_v2  ;;  %v1341_v2 = vpop.f32.mrf.mxu1  ;;  %v1336_v27 = vadd.f32 %v1335_v46, %v1213_v26  ;;  %v2081_v46 = vrot.slane %v4636_v63, 2 }
 0x16d   : > { %v2085_v7 = vsel %vm810_vm3, %v2083_v10, %v2084_v37  ;;  %v1909_v53 = vsel %vm633_vm1, %v1907_v50, %v1908_v22  ;;  %v1911_v50 = vsel %vm633_vm1, %v1908_v22, %v1910_v12  ;;  %v4647_v14 = vpop.f32.mrf.mxu3 }
 0x16e   : > { %v1737_v11 = vmax.f32 %v1705_v5, 0.0  ;;  %2162 = vrot.lane.b32.xlu1 %v2085_v7, %s3454_s29  ;;  %1986 = vrot.lane.b32.xlu0 %v1909_v53, %s3453_s16  ;;  %v2087_v5 = vsel %vm810_vm3, %v2084_v37, %v2086_v38  ;;  %v1009_v7 = vsel %vm306_vm0, %v4302_v48, %v759_v60  ;;  %v936_v53 = vpop.permute.xlu2 %935  ;;  %v2082_v22 = vsel %vm810_vm3, %v2079_v25, %v2081_v46 }
 0x170   : > { %1770 = vst.msk [vmem:[#allocation3 + $0x31] sm:$0xff] %vm1019_vm5, %v1737_v11  ;;  %v1216_v16 = vpop.f32.mrf.mxu0  ;;  %v1042_v11 = vsel %vm1019_vm5, %v1009_v7, %v936_v53  ;;  %v761_v48 = vpop.permute.xlu0 %760 }
 0x171   : > { %v1339_v52 = vadd.f32 %v1338_v59, %v1216_v16  ;;  %v1010_v60 = vsel %vm306_vm0, %v4304_v13, %v761_v48 }
 0x172   : > { %3243 = vmatmul.msk.f32.gmra.mxu3 %vm1086_vm6, %v4402_v20 }
 0x173   : > { %3199 = vmatmul.msk.f32.gmra.mxu0 %vm1086_vm6, %v1041_v3  ;;  %3234 = vmatmul.msk.f32.gmra.mxu1 %vm1086_vm6, %v1041_v3 }
 0x174   : > { %3265 = vmatmul.msk.f32.gmra.mxu2 %vm1086_vm6, %v1041_v3  ;;  %v938_v3 = vpop.permute.xlu1 %937  ;;  %v1344_v12 = vpop.f32.mrf.mxu1 }
 0x175   : > { %v1489_v10 = vpop.f32.mrf.mxu2  ;;  %v1043_v25 = vsel %vm1019_vm5, %v1010_v60, %v938_v3  ;;  %v4667_v16 = vpop.f32.mrf.mxu3  ;;  %v1905_v3 = vrot.slane %v4636_v63, 1 }
 0x176   : > { %v1579_v47 = vadd.f32 %v1489_v10, %v1336_v27  ;;  %1988 = vrot.lane.b32.xlu1 %v1911_v50, %s3453_s16  ;;  %2164 = vrot.lane.b32.xlu0 %v2087_v5, %s3454_s29 }
 0x177   : > { %v4671_v13 = vld [vmem:[#allocation3 + $0x30] sm:$0xff] }
 0x178   : > { %v1670_v26 = vmul.f32 %v4552_v0, %v1579_v47  ;;  %v1219_v17 = vpop.f32.mrf.mxu0  ;;  %v2088_v46 = vrot.slane %v4671_v13, 2 }
 0x179   : > { %v1342_v7 = vadd.f32 %v1341_v2, %v1219_v17 }
 0x17a   : > { %v1706_v37 = vadd.f32 %v4561_v45, %v1670_v26  ;;  %3244 = vmatmul.msk.f32.gmra.mxu3 %vm1086_vm6, %v4417_v57  ;;  %v1912_v26 = vrot.slane %v4671_v13, 1 }
 0x17b   : > { %3200 = vmatmul.msk.f32.gmra.mxu0 %vm1086_vm6, %v1042_v11  ;;  %3235 = vmatmul.msk.f32.gmra.mxu1 %vm1086_vm6, %v1042_v11 }
 0x17c   : > { %v1738_v6 = vmax.f32 %v1706_v37, 0.0  ;;  %3266 = vmatmul.msk.f32.gmra.mxu2 %vm1086_vm6, %v1042_v11  ;;  %v1347_v37 = vpop.f32.mrf.mxu1 }
 0x17d   : > { %v1492_v38 = vpop.f32.mrf.mxu2 }
 0x17e   : > { %1771 = vst.msk [vmem:[#allocation3 + $0x39] sm:$0xff] %vm1019_vm5, %v1738_v6  ;;  %v1580_v27 = vadd.f32 %v1492_v38, %v1339_v52  ;;  %2160 = vrot.lane.b32.xlu0 %v2082_v22, %s3454_s29 }
 0x180   : > { %v1671_v10 = vmul.f32 %v4552_v0, %v1580_v27  ;;  %v1222_v50 = vpop.f32.mrf.mxu0  ;;  %v4694_v27 = vpop.f32.mrf.mxu3 }
 0x182   : > { %v1707_v59 = vadd.f32 %v4561_v45, %v1671_v10  ;;  %3272 = vmatmul.msk.f32.vlgmr.msra.gmra.mxu3 %vm1086_vm6, %v4368_v15 }
 0x183   : > { %3201 = vmatmul.msk.f32.gmra.mxu0 %vm1086_vm6, %v1043_v25  ;;  %3236 = vmatmul.msk.f32.gmra.mxu1 %vm1086_vm6, %v1043_v25 }
 0x184   : > { %v1739_v5 = vmax.f32 %v1707_v59, 0.0  ;;  %3267 = vmatmul.msk.f32.gmra.mxu2 %vm1086_vm6, %v1043_v25  ;;  %v1906_v25 = vsel %vm633_vm1, %v1903_v24, %v1905_v3  ;;  %v1350_v63 = vpop.f32.mrf.mxu1  ;;  %v1345_v59 = vadd.f32 %v1344_v12, %v1222_v50 }
 0x185   : > { %v4674_v53 = vld [vmem:[#allocation3 + $0x38] sm:$0xff]  ;;  %v1808_v6 = vld [vmem:[#allocation3 + $0x40] sm:$0x3] }
 0x186   : > { %1772 = vst.msk [vmem:[#allocation3 + $0x49] sm:$0xff] %vm1019_vm5, %v1739_v5  ;;  %v1495_v47 = vpop.f32.mrf.mxu2  ;;  %v2089_v15 = vrot.slane %v4674_v53, 2  ;;  %v1913_v11 = vrot.slane %v4674_v53, 1  ;;  %v1915_v60 = vrot.slane %v1808_v6, 1  ;;  %v2091_v24 = vrot.slane %v1808_v6, 2 }
 0x187   : > { %v1581_v48 = vadd.f32 %v1495_v47, %v1342_v7 }
 0x188   : > { %v2090_v22 = vsel %vm810_vm3, %v2088_v46, %v2089_v15  ;;  %v1914_v52 = vsel %vm633_vm1, %v1912_v26, %v1913_v11  ;;  %v1225_v17 = vpop.f32.mrf.mxu0 }
 0x189   : > { %v1672_v2 = vmul.f32 %v4552_v0, %v1581_v48  ;;  %2166 = vrot.lane.b32.xlu1 %v2090_v22, %s3454_s29  ;;  %1990 = vrot.lane.b32.xlu2 %v1914_v52, %s3453_s16 }
 0x18a   : > { %3273 = vmatmul.msk.f32.gmra.mxu3 %vm1086_vm6, %v4391_v40  ;;  %v1916_v40 = vsel %vm633_vm1, %v1913_v11, %v1915_v60 }
 0x18b   : > { %v1708_v38 = vadd.f32 %v4561_v45, %v1672_v2  ;;  %3202 = vmatmul.msk.f32.gmra.mxu0 %vm1086_vm6, %v4479_v35 }
 0x18c   : > { %3268 = vmatmul.msk.f32.gmra.mxu2 %vm1086_vm6, %v4479_v35  ;;  %v1353_v3 = vpop.f32.mrf.mxu1 }
 0x18d   : > { %v1740_v10 = vmax.f32 %v1708_v38, 0.0  ;;  %v4709_v5 = vld [vmem:[#allocation3 + $0x48] sm:$0xff]  ;;  %v4711_v7 = vpop.f32.mrf.mxu3  ;;  %v1348_v38 = vadd.f32 %v1347_v37, %v1225_v17 }
 0x18e   : > { %v2093_v11 = vrot.slane %v4709_v5, 2  ;;  %v1917_v48 = vrot.slane %v4709_v5, 1 }
 0x18f   : > { %1773 = vst.msk [vmem:[#allocation3 + $0x51] sm:$0xff] %vm1019_vm5, %v1740_v10 }
 0x190   : > { %v1228_v35 = vpop.f32.mrf.mxu0 }
 0x191   : > { %1992 = vrot.lane.b32.xlu1 %v1916_v40, %s3453_s16  ;;  %1984 = vrot.lane.b32.xlu2 %v1906_v25, %s3453_s16  ;;  %v1351_v17 = vadd.f32 %v1350_v63, %v1228_v35  ;;  %v1442_v35 = vpop.permute.xlu0 %1441 }
 0x192   : > { %3274 = vmatmul.msk.f32.gmra.mxu3 %vm1086_vm6, %v4402_v20 }
 0x193   : > { %3203 = vmatmul.msk.f32.gmra.mxu0 %vm1086_vm6, %v4536_v18 }
 0x194   : > { %3269 = vmatmul.msk.f32.gmra.mxu2 %vm1086_vm6, %v4536_v18  ;;  %v2092_v18 = vsel %vm810_vm3, %v2089_v15, %v2091_v24 }
 0x195   : > { %v1498_v47 = vpop.f32.mrf.mxu2  ;;  %v4732_v24 = vpop.f32.mrf.mxu3 }
 0x196   : > { %v1582_v46 = vadd.f32 %v1498_v47, %v1345_v59  ;;  %v4713_v26 = vld [vmem:[#allocation3 + $0x50] sm:$0xff]  ;;  %v1811_v2 = vld [vmem:[#allocation3 + $0x58] sm:$0x3] }
 0x197   : > { %v2094_v20 = vrot.slane %v4713_v26, 2  ;;  %v1918_v12 = vrot.slane %v4713_v26, 1  ;;  %v1920_v15 = vrot.slane %v1811_v2, 1  ;;  %v2096_v40 = vrot.slane %v1811_v2, 2 }
 0x198   : > { %v1673_v50 = vmul.f32 %v4552_v0, %v1582_v46  ;;  %v1231_v10 = vpop.f32.mrf.mxu0 }
 0x199   : > { %2168 = vrot.lane.b32.xlu2 %v2092_v18, %s3454_s29  ;;  %v2095_v22 = vsel %vm810_vm3, %v2093_v11, %v2094_v20  ;;  %v1919_v52 = vsel %vm633_vm1, %v1917_v48, %v1918_v12  ;;  %v1921_v46 = vsel %vm633_vm1, %v1918_v12, %v1920_v15  ;;  %v1356_v11 = vpop.f32.mrf.mxu1 }
 0x19a   : > { %v1709_v6 = vadd.f32 %v4561_v45, %v1673_v50  ;;  %2170 = vrot.lane.b32.xlu1 %v2095_v22, %s3454_s29  ;;  %1994 = vrot.lane.b32.xlu0 %v1919_v52, %s3453_s16  ;;  %v1431_v22 = vpop.permute.xlu2 %1430 }
 0x19b   : > { %3275 = vmatmul.msk.f32.gmra.mxu3 %vm1086_vm6, %v4417_v57  ;;  %v2097_v57 = vsel %vm810_vm3, %v2094_v20, %v2096_v40  ;;  %v1447_v63 = vsel %vm306_vm0, %v4422_v41, %v1431_v22 }
 0x19c   : > { %v1741_v60 = vmax.f32 %v1709_v6, 0.0  ;;  %3270 = vmatmul.msk.f32.gmra.mxu2 %vm1086_vm6, %v4311_v32 }
 0x19d   : > { %v1501_v25 = vpop.f32.mrf.mxu2 }
 0x19e   : > { %1774 = vst.msk [vmem:[#allocation3 + $0x61] sm:$0xff] %vm1019_vm5, %v1741_v60  ;;  %v1583_v59 = vadd.f32 %v1501_v25, %v1348_v38  ;;  %v4745_v18 = vpop.f32.mrf.mxu3 }
 0x1a0   : > { %v1674_v47 = vmul.f32 %v4552_v0, %v1583_v59  ;;  %v1234_v12 = vpop.f32.mrf.mxu0 }
 0x1a1   : > { %1996 = vrot.lane.b32.xlu2 %v1921_v46, %s3453_s16  ;;  %v1359_v40 = vpop.f32.mrf.mxu1  ;;  %v1449_v46 = vsel %vm1019_vm5, %v1447_v63, %v1442_v35 }
 0x1a2   : > { %v1710_v37 = vadd.f32 %v4561_v45, %v1674_v47  ;;  %2172 = vrot.lane.b32.xlu0 %v2097_v57, %s3454_s29  ;;  %v3282_v57 = vld [vmem:[%s5483_s6 + $0x28] sm:$0xff] }
 0x1a3   : > { %3276 = vmatmul.msk.f32.gmra.mxu3 %vm1086_vm6, %v4443_v54 }
 0x1a4   : > { %v1742_v32 = vmax.f32 %v1710_v37, 0.0  ;;  %3271 = vmatmul.msk.f32.gmra.mxu2 %vm1086_vm6, %v4339_v43  ;;  %v2319_v37 = vld [vmem:[%s5483_s6] sm:$0xff]  ;;  %2465 = vmatpush.msrb.mxu3 %v3282_v57 }
 0x1a5   : > { %v4748_v52 = vld [vmem:[#allocation3 + $0x60] sm:$0xff]  ;;  %2586 = vmatpush.msrb.mxu0 %v2319_v37 }
 0x1a6   : > { %1775 = vst.msk [vmem:[#allocation3 + $0x69] sm:$0xff] %vm1019_vm5, %v1742_v32  ;;  %v1504_v48 = vpop.f32.mrf.mxu2  ;;  %v2098_v6 = vrot.slane %v4748_v52, 2 }
 0x1a7   : > { %v1584_v50 = vadd.f32 %v1504_v48, %v1351_v17  ;;  %v1433_v17 = vpop.permute.xlu1 %1432  ;;  %v1354_v48 = vadd.f32 %v1353_v3, %v1231_v10  ;;  %v1357_v10 = vadd.f32 %v1356_v11, %v1234_v12 }
 0x1a9   : > { %v1675_v20 = vmul.f32 %v4552_v0, %v1584_v50  ;;  %v1448_v50 = vsel %vm306_vm0, %v4424_v42, %v1433_v17 }
 0x1ab   : > { %v1711_v54 = vadd.f32 %v4561_v45, %v1675_v20  ;;  %3277 = vmatmul.msk.f32.gmra.mxu3 %vm1086_vm6, %v4457_v51  ;;  %v1922_v51 = vrot.slane %v4748_v52, 1  ;;  %v1444_v20 = vpop.permute.xlu2 %1443 }
 0x1ac   : > { %3383 = vmatmul.msk.f32.vlgmr.msrb.gmra.mxu2 %vm306_vm0, %v3713_v61  ;;  %v1450_v35 = vsel %vm1019_vm5, %v1448_v50, %v1444_v20 }
 0x1ad   : > { %v1743_v43 = vmax.f32 %v1711_v54, 0.0  ;;  %v4757_v2 = vld [vmem:[#allocation3 + $0x68] sm:$0xff]  ;;  %v1814_v38 = vld [vmem:[#allocation3 + $0x70] sm:$0x3]  ;;  %v4774_v32 = vpop.f32.mrf.mxu3 }
 0x1ae   : > { %v2099_v60 = vrot.slane %v4757_v2, 2  ;;  %v1923_v15 = vrot.slane %v4757_v2, 1  ;;  %v1925_v25 = vrot.slane %v1814_v38, 1  ;;  %v2101_v22 = vrot.slane %v1814_v38, 2 }
 0x1af   : > { %1776 = vst.msk [vmem:[#allocation3 + $0x79] sm:$0xff] %vm1019_vm5, %v1743_v43  ;;  %v1237_v61 = vpop.f32.mrf.mxu0 }
 0x1b0   : > { %v2100_v59 = vsel %vm810_vm3, %v2098_v6, %v2099_v60  ;;  %v1926_v41 = vsel %vm633_vm1, %v1923_v15, %v1925_v25  ;;  %v1924_v47 = vsel %vm633_vm1, %v1922_v51, %v1923_v15  ;;  %v3347_v6 = vld [vmem:[%s5483_s6 + $0x30] sm:$0xff]  ;;  %v1362_v15 = vpop.f32.mrf.mxu1  ;;  %v1360_v20 = vadd.f32 %v1359_v40, %v1237_v61 }
 0x1b1   : > { %2174 = vrot.lane.b32.xlu2 %v2100_v59, %s3454_s29  ;;  %2000 = vrot.lane.b32.xlu0 %v1926_v41, %s3453_s16 }
 0x1b2   : > { %1998 = vrot.lane.b32.xlu1 %v1924_v47, %s3453_s16  ;;  %2738 = vmatpush.msrb.mxu1 %v3347_v6 }
 0x1b3   : > { %3278 = vmatmul.msk.f32.gmra.mxu3 %vm1086_vm6, %v1449_v46  ;;  %v1983_v41 = vpop.permute.xlu2 %1982  ;;  %v3281_v46 = vld [vmem:[%s5483_s6 + $0x20] sm:$0xff] }
 0x1b4   : > { %3384 = vmatmul.msk.f32.gmra.mxu2 %vm306_vm0, %v3770_v44  ;;  %v2102_v44 = vsel %vm810_vm3, %v2099_v60, %v2101_v22  ;;  %v2254_v47 = vsel %vm1019_vm5, %v4509_v34, %v1983_v41  ;;  %2466 = vmatpush.msrb.mxu3 %v3281_v46  ;;  %v3280_v34 = vld [vmem:[%s5483_s6 + $0x18] sm:$0xff] }
 0x1b5   : > { %v4791_v42 = vpop.f32.mrf.mxu3 }
 0x1b6   : > { %v1507_v54 = vpop.f32.mrf.mxu2  ;;  %v2159_v17 = vpop.permute.xlu0 %2158  ;;  %v4806_v12 = vld [vmem:[#allocation3 + $0x78] sm:$0xff]  ;;  %2467 = vmatpush.msrb.mxu3 %v3280_v34 }
 0x1b7   : > { %v1585_v43 = vadd.f32 %v1507_v54, %v1354_v48  ;;  %v1240_v63 = vpop.f32.mrf.mxu0  ;;  %v2103_v54 = vrot.slane %v4806_v12, 2 }
 0x1b8   : > { %v1365_v57 = vpop.f32.mrf.mxu1  ;;  %v1363_v46 = vadd.f32 %v1362_v15, %v1240_v63 }
 0x1b9   : > { %v1676_v25 = vmul.f32 %v4552_v0, %v1585_v43 }
 0x1ba   : > { %2176 = vrot.lane.b32.xlu1 %v2102_v44, %s3454_s29 }
 0x1bb   : > { %v1712_v3 = vadd.f32 %v4561_v45, %v1676_v25  ;;  %3279 = vmatmul.msk.f32.gmra.mxu3 %vm1086_vm6, %v1450_v35 }
 0x1bc   : > { %3385 = vmatmul.msk.f32.gmra.mxu2 %vm306_vm0, %v3705_v56  ;;  %v2287_v56 = vsel %vm2286_vm8, %v2254_v47, %v2159_v17 }
 0x1bd   : > { %v1744_v38 = vmax.f32 %v1712_v3, 0.0  ;;  %3315 = vmatmul.msk.f32.vlgmr.msrb.gmra.mxu0 %vm2355_vm9, %v2287_v56 }
 0x1be   : > { %v1510_v51 = vpop.f32.mrf.mxu2 }
 0x1bf   : > { %1777 = vst.msk [vmem:[#allocation3 + $0x81] sm:$0xff] %vm1019_vm5, %v1744_v38  ;;  %v1586_v59 = vadd.f32 %v1510_v51, %v1357_v10  ;;  %v4813_v50 = vpop.f32.mrf.mxu3 }
 0x1c0   : > { %v1243_v60 = vpop.f32.mrf.mxu0 }
 0x1c1   : > { %v1677_v37 = vmul.f32 %v4552_v0, %v1586_v59  ;;  %v1368_v59 = vpop.f32.mrf.mxu1  ;;  %v1366_v15 = vadd.f32 %v1365_v57, %v1243_v60 }
 0x1c3   : > { %v1713_v11 = vadd.f32 %v4561_v45, %v1677_v37 }
 0x1c4   : > { %3386 = vmatmul.msk.f32.gmra.mxu2 %vm306_vm0, %v3745_v29  ;;  %v1927_v29 = vrot.slane %v4806_v12, 1 }
 0x1c5   : > { %v1745_v48 = vmax.f32 %v1713_v11, 0.0 }
 0x1c6   : > { %v4816_v22 = vld [vmem:[#allocation3 + $0x80] sm:$0xff]  ;;  %v1817_v43 = vld [vmem:[#allocation3 + $0x88] sm:$0x3] }
 0x1c7   : > { %1778 = vst.msk [vmem:[#allocation3 + $0x91] sm:$0xff] %vm1019_vm5, %v1745_v48  ;;  %v1513_v35 = vpop.f32.mrf.mxu2  ;;  %v2104_v6 = vrot.slane %v4816_v22, 2  ;;  %v1928_v25 = vrot.slane %v4816_v22, 1  ;;  %v1930_v44 = vrot.slane %v1817_v43, 1  ;;  %v2106_v17 = vrot.slane %v1817_v43, 2 }
 0x1c8   : > { %v1587_v3 = vadd.f32 %v1513_v35, %v1360_v20  ;;  %v1246_v10 = vpop.f32.mrf.mxu0 }
 0x1c9   : > { %v2105_v38 = vsel %vm810_vm3, %v2103_v54, %v2104_v6  ;;  %v1931_v40 = vsel %vm633_vm1, %v1928_v25, %v1930_v44  ;;  %v1929_v61 = vsel %vm633_vm1, %v1927_v29, %v1928_v25  ;;  %v2107_v48 = vsel %vm810_vm3, %v2104_v6, %v2106_v17 }
 0x1ca   : > { %v1678_v51 = vmul.f32 %v4552_v0, %v1587_v3  ;;  %2178 = vrot.lane.b32.xlu0 %v2105_v38, %s3454_s29  ;;  %2004 = vrot.lane.b32.xlu1 %v1931_v40, %s3453_s16 }
 0x1cb   : > { %2002 = vrot.lane.b32.xlu2 %v1929_v61, %s3453_s16 }
 0x1cc   : > { %v1714_v41 = vadd.f32 %v4561_v45, %v1678_v51  ;;  %3387 = vmatmul.msk.f32.gmra.mxu2 %vm306_vm0, %v3796_v8  ;;  %v1371_v8 = vpop.f32.mrf.mxu1 }
 0x1cd   : > { %v4833_v47 = vpop.f32.mrf.mxu3 }
 0x1ce   : > { %v1746_v37 = vmax.f32 %v1714_v41, 0.0  ;;  %v4840_v35 = vld [vmem:[#allocation3 + $0x90] sm:$0xff] }
 0x1cf   : > { %v1516_v56 = vpop.f32.mrf.mxu2  ;;  %v2108_v6 = vrot.slane %v4840_v35, 2  ;;  %v1932_v3 = vrot.slane %v4840_v35, 1 }
 0x1d0   : > { %1779 = vst.msk [vmem:[#allocation3 + $0x99] sm:$0xff] %vm1019_vm5, %v1746_v37  ;;  %v1588_v11 = vadd.f32 %v1516_v56, %v1363_v46  ;;  %v1249_v20 = vpop.f32.mrf.mxu0  ;;  %v1369_v56 = vadd.f32 %v1368_v59, %v1246_v10 }
 0x1d2   : > { %v1679_v34 = vmul.f32 %v4552_v0, %v1588_v11 }
 0x1d3   : > { %2180 = vrot.lane.b32.xlu2 %v2107_v48, %s3454_s29 }
 0x1d4   : > { %v1715_v54 = vadd.f32 %v4561_v45, %v1679_v34  ;;  %3388 = vmatmul.msk.f32.gmra.mxu2 %vm306_vm0, %v3778_v55  ;;  %v1374_v34 = vpop.f32.mrf.mxu1 }
 0x1d5   : > { %v4844_v63 = vpop.f32.mrf.mxu3 }
 0x1d6   : > { %v1747_v43 = vmax.f32 %v1715_v54, 0.0 }
 0x1d7   : > { %v1519_v25 = vpop.f32.mrf.mxu2  ;;  %v4846_v44 = vld [vmem:[#allocation3 + $0x98] sm:$0xff]  ;;  %v1820_v29 = vld [vmem:[#allocation3 + $0xa0] sm:$0x3] }
 0x1d8   : > { %1780 = vst.msk [vmem:[#allocation3 + $0xa9] sm:$0xff] %vm1019_vm5, %v1747_v43  ;;  %v1589_v38 = vadd.f32 %v1519_v25, %v1366_v15  ;;  %v2109_v40 = vrot.slane %v4846_v44, 2  ;;  %v1933_v55 = vrot.slane %v4846_v44, 1  ;;  %v1935_v61 = vrot.slane %v1820_v29, 1  ;;  %v1252_v37 = vpop.f32.mrf.mxu0 }
 0x1d9   : > { %v2111_v54 = vrot.slane %v1820_v29, 2 }
 0x1da   : > { %v1680_v51 = vmul.f32 %v4552_v0, %v1589_v38  ;;  %v2110_v60 = vsel %vm810_vm3, %v2108_v6, %v2109_v40  ;;  %v1936_v57 = vsel %vm633_vm1, %v1933_v55, %v1935_v61  ;;  %v1934_v41 = vsel %vm633_vm1, %v1932_v3, %v1933_v55 }
 0x1db   : > { %2182 = vrot.lane.b32.xlu1 %v2110_v60, %s3454_s29  ;;  %2008 = vrot.lane.b32.xlu2 %v1936_v57, %s3453_s16  ;;  %v2112_v38 = vsel %vm810_vm3, %v2109_v40, %v2111_v54  ;;  %v1372_v55 = vadd.f32 %v1371_v8, %v1249_v20 }
 0x1dc   : > { %v1716_v46 = vadd.f32 %v4561_v45, %v1680_v51  ;;  %2006 = vrot.lane.b32.xlu0 %v1934_v41, %s3453_s16  ;;  %3389 = vmatmul.msk.f32.gmra.mxu2 %vm306_vm0, %v3825_v28  ;;  %v1377_v54 = vpop.f32.mrf.mxu1 }
 0x1dd   : > { %v4863_v17 = vpop.f32.mrf.mxu3 }
 0x1de   : > { %v1748_v11 = vmax.f32 %v1716_v46, 0.0 }
 0x1df   : > { %v1522_v48 = vpop.f32.mrf.mxu2  ;;  %v4879_v29 = vld [vmem:[#allocation3 + $0xa8] sm:$0xff] }
 0x1e0   : > { %1781 = vst.msk [vmem:[#allocation3 + $0xb1] sm:$0xff] %vm1019_vm5, %v1748_v11  ;;  %v1590_v15 = vadd.f32 %v1522_v48, %v1369_v56  ;;  %v1987_v43 = vpop.permute.xlu0 %1986  ;;  %v2163_v6 = vpop.permute.xlu1 %2162  ;;  %v2113_v57 = vrot.slane %v4879_v29, 2  ;;  %v1937_v20 = vrot.slane %v4879_v29, 1 }
 0x1e1   : > { %v2256_v25 = vsel %vm1019_vm5, %v4602_v21, %v1987_v43  ;;  %v1255_v51 = vpop.f32.mrf.mxu0 }
 0x1e2   : > { %v1681_v3 = vmul.f32 %v4552_v0, %v1590_v15  ;;  %v4870_v28 = vsel %vm2286_vm8, %v2256_v25, %v2163_v6 }
 0x1e3   : > { %v4873_v10 = vpop.permute.xlu2 %1990  ;;  %3283 = vmatmul.msk.f32.vlgmr.msrb.gmra.mxu3 %vm2355_vm9, %v4870_v28 }
 0x1e4   : > { %v1717_v59 = vadd.f32 %v4561_v45, %v1681_v3  ;;  %2184 = vrot.lane.b32.xlu0 %v2112_v38, %s3454_s29  ;;  %3390 = vmatmul.msk.f32.gmra.mxu2 %vm306_vm0, %v3890_v36 }
 0x1e5   : > { %v4883_v21 = vpop.f32.mrf.mxu3 }
 0x1e6   : > { %v1749_v61 = vmax.f32 %v1717_v59, 0.0 }
 0x1e7   : > { %v1525_v40 = vpop.f32.mrf.mxu2  ;;  %v4885_v60 = vld [vmem:[#allocation3 + $0xb0] sm:$0xff]  ;;  %v1823_v41 = vld [vmem:[#allocation3 + $0xb8] sm:$0x3] }
 0x1e8   : > { %1782 = vst.msk [vmem:[#allocation3 + $0xc1] sm:$0xff] %vm1019_vm5, %v1749_v61  ;;  %v1591_v46 = vadd.f32 %v1525_v40, %v1372_v55  ;;  %v2165_v56 = vpop.permute.xlu0 %2164  ;;  %v2114_v11 = vrot.slane %v4885_v60, 2  ;;  %v1938_v48 = vrot.slane %v4885_v60, 1  ;;  %v1940_v36 = vrot.slane %v1823_v41, 1  ;;  %v1989_v15 = vpop.permute.xlu1 %1988 }
 0x1e9   : > { %v2257_v43 = vsel %vm1019_vm5, %v4607_v1, %v1989_v15  ;;  %v1375_v61 = vadd.f32 %v1374_v34, %v1252_v37  ;;  %v1258_v15 = vpop.f32.mrf.mxu0 }
 0x1ea   : > { %v1682_v8 = vmul.f32 %v4552_v0, %v1591_v46  ;;  %v2115_v25 = vsel %vm810_vm3, %v2113_v57, %v2114_v11  ;;  %v1941_v6 = vsel %vm633_vm1, %v1938_v48, %v1940_v36  ;;  %v1939_v3 = vsel %vm633_vm1, %v1937_v20, %v1938_v48 }
 0x1eb   : > { %2186 = vrot.lane.b32.xlu2 %v2115_v25, %s3454_s29  ;;  %v4900_v38 = vsel %vm2286_vm8, %v2257_v43, %v2165_v56  ;;  %2010 = vrot.lane.b32.xlu1 %v1939_v3, %s3453_s16  ;;  %v1985_v55 = vpop.permute.xlu2 %1984  ;;  %v2116_v56 = vrot.slane %v1823_v41, 2  ;;  %v1380_v43 = vpop.f32.mrf.mxu1  ;;  %v1378_v41 = vadd.f32 %v1377_v54, %v1255_v51 }
 0x1ec   : > { %v1718_v59 = vadd.f32 %v4561_v45, %v1682_v8  ;;  %2012 = vrot.lane.b32.xlu0 %v1941_v6, %s3453_s16  ;;  %3284 = vmatmul.msk.f32.gmra.mxu3 %vm2355_vm9, %v4900_v38  ;;  %v2255_v57 = vsel %vm1019_vm5, %v4511_v62, %v1985_v55 }
 0x1ed   : > { %v4907_v1 = vpop.f32.mrf.mxu3  ;;  %3391 = vmatmul.msk.f32.gmra.mxu2 %vm306_vm0, %v3875_v23  ;;  %v2117_v23 = vsel %vm810_vm3, %v2114_v11, %v2116_v56 }
 0x1ee   : > { %v1750_v40 = vmax.f32 %v1718_v59, 0.0 }
 0x1ef   : > { %v1528_v46 = vpop.f32.mrf.mxu2  ;;  %v4920_v62 = vld [vmem:[#allocation3 + $0xc0] sm:$0xff] }
 0x1f0   : > { %1783 = vst.msk [vmem:[#allocation3 + $0xc9] sm:$0xff] %vm1019_vm5, %v1750_v40  ;;  %v1592_v48 = vadd.f32 %v1528_v46, %v1375_v61  ;;  %v2161_v36 = vpop.permute.xlu0 %2160  ;;  %v2118_v59 = vrot.slane %v4920_v62, 2  ;;  %v1942_v11 = vrot.slane %v4920_v62, 1 }
 0x1f1   : > { %v2288_v20 = vsel %vm2286_vm8, %v2255_v57, %v2161_v36  ;;  %v1261_v36 = vpop.f32.mrf.mxu0 }
 0x1f2   : > { %v1683_v8 = vmul.f32 %v4552_v0, %v1592_v48  ;;  %3316 = vmatmul.msk.f32.gmra.mxu0 %vm2355_vm9, %v2288_v20  ;;  %v2258_v48 = vsel %vm1019_vm5, %v4671_v13, %v4873_v10  ;;  %v1381_v13 = vadd.f32 %v1380_v43, %v1258_v15  ;;  %v1399_v15 = vadd.f32 %v4813_v50, %v4647_v14 }
 0x1f3   : > { %2188 = vrot.lane.b32.xlu1 %v2117_v23, %s3454_s29  ;;  %v2169_v43 = vpop.permute.xlu2 %2168 }
 0x1f4   : > { %v1719_v37 = vadd.f32 %v4561_v45, %v1683_v8 }
 0x1f5   : > { %v4922_v34 = vpop.f32.mrf.mxu3  ;;  %3392 = vmatmul.msk.f32.gmra.mxu2 %vm306_vm0, %v3926_v30 }
 0x1f6   : > { %v1751_v25 = vmax.f32 %v1719_v37, 0.0  ;;  %v1383_v37 = vpop.f32.mrf.mxu1 }
 0x1f7   : > { %v1531_v6 = vpop.f32.mrf.mxu2  ;;  %v4926_v3 = vld [vmem:[#allocation3 + $0xc8] sm:$0xff]  ;;  %v1826_v55 = vld [vmem:[#allocation3 + $0xd0] sm:$0x3] }
 0x1f8   : > { %1784 = vst.msk [vmem:[#allocation3 + $0xd9] sm:$0xff] %vm1019_vm5, %v1751_v25  ;;  %v1593_v61 = vadd.f32 %v1531_v6, %v1378_v41  ;;  %v2119_v40 = vrot.slane %v4926_v3, 2  ;;  %v1943_v57 = vrot.slane %v4926_v3, 1  ;;  %v1945_v46 = vrot.slane %v1826_v55, 1 }
 0x1f9   : > { %v2121_v10 = vrot.slane %v1826_v55, 2 }
 0x1fa   : > { %v1684_v30 = vmul.f32 %v4552_v0, %v1593_v61  ;;  %v2120_v51 = vsel %vm810_vm3, %v2118_v59, %v2119_v40  ;;  %v1946_v54 = vsel %vm633_vm1, %v1943_v57, %v1945_v46  ;;  %v1944_v56 = vsel %vm633_vm1, %v1942_v11, %v1943_v57  ;;  %3317 = vmatmul.msk.f32.gmra.mxu0 %vm2355_vm9, %v4870_v28  ;;  %v1264_v46 = vpop.f32.mrf.mxu0 }
 0x1fb   : > { %2190 = vrot.lane.b32.xlu0 %v2120_v51, %s3454_s29  ;;  %2014 = vrot.lane.b32.xlu2 %v1944_v56, %s3453_s16  ;;  %v2167_v20 = vpop.permute.xlu1 %2166  ;;  %v2122_v11 = vsel %vm810_vm3, %v2119_v40, %v2121_v10  ;;  %v1384_v51 = vadd.f32 %v1383_v37, %v1261_v36 }
 0x1fc   : > { %v1720_v8 = vadd.f32 %v4561_v45, %v1684_v30  ;;  %2016 = vrot.lane.b32.xlu1 %v1946_v54, %s3453_s16  ;;  %v2291_v23 = vsel %vm2286_vm8, %v2258_v48, %v2167_v20 }
 0x1fd   : > { %v4947_v41 = vpop.f32.mrf.mxu3  ;;  %3285 = vmatmul.msk.f32.gmra.mxu3 %vm2355_vm9, %v2291_v23  ;;  %3350 = vmatmul.msk.f32.vlgmr.msrb.gmra.mxu1 %vm2355_vm9, %v2291_v23 }
 0x1fe   : > { %v1752_v28 = vmax.f32 %v1720_v8, 0.0  ;;  %3393 = vmatmul.msk.f32.gmra.mxu2 %vm306_vm0, %v4031_v58  ;;  %v1386_v14 = vpop.f32.mrf.mxu1 }
 0x1ff   : > { %v1534_v25 = vpop.f32.mrf.mxu2  ;;  %v4964_v57 = vld [vmem:[#allocation3 + $0xd8] sm:$0xff] }
 0x200   : > { %1785 = vst.msk [vmem:[#allocation3 + $0xe1] sm:$0xff] %vm1019_vm5, %v1752_v28  ;;  %v1594_v6 = vadd.f32 %v1534_v25, %v1381_v13  ;;  %v2123_v48 = vrot.slane %v4964_v57, 2  ;;  %v1947_v20 = vrot.slane %v4964_v57, 1 }
 0x202   : > { %v1685_v59 = vmul.f32 %v4552_v0, %v1594_v6  ;;  %3318 = vmatmul.msk.f32.gmra.mxu0 %vm2355_vm9, %v4900_v38 }
 0x203   : > { %2192 = vrot.lane.b32.xlu2 %v2122_v11, %s3454_s29  ;;  %v1993_v61 = vpop.permute.xlu1 %1992  ;;  %v1402_v11 = vadd.f32 %v4833_v47, %v4667_v16  ;;  %v1267_v16 = vpop.f32.mrf.mxu0 }
 0x204   : > { %v1721_v58 = vadd.f32 %v4561_v45, %v1685_v59  ;;  %v2259_v55 = vsel %vm1019_vm5, %v4674_v53, %v1993_v61 }
 0x205   : > { %v1552_v30 = vpop.f32.mrf.mxu3  ;;  %v2292_v40 = vsel %vm2286_vm8, %v2259_v55, %v2169_v43 }
 0x206   : > { %v1753_v38 = vmax.f32 %v1721_v58, 0.0  ;;  %v1600_v54 = vadd.f32 %v1552_v30, %v1399_v15  ;;  %3286 = vmatmul.msk.f32.gmra.mxu3 %vm2355_vm9, %v2292_v40  ;;  %3351 = vmatmul.msk.f32.gmra.mxu1 %vm2355_vm9, %v2292_v40  ;;  %v1387_v58 = vadd.f32 %v1386_v14, %v1264_v46  ;;  %v1389_v14 = vpop.f32.mrf.mxu1 }
 0x207   : > { %v1537_v50 = vpop.f32.mrf.mxu2  ;;  %v4969_v56 = vld [vmem:[#allocation3 + $0xe0] sm:$0xff]  ;;  %v1829_v53 = vld [vmem:[#allocation3 + $0xe8] sm:$0x3]  ;;  %3394 = vmatmul.msk.f32.gmra.mxu2 %vm306_vm0, %v3993_v39 }
 0x208   : > { %1786 = vst.msk [vmem:[#allocation3 + $0xf1] sm:$0xff] %vm1019_vm5, %v1753_v38  ;;  %v1691_v36 = vmul.f32 %v4552_v0, %v1600_v54  ;;  %v1595_v8 = vadd.f32 %v1537_v50, %v1384_v51  ;;  %v2124_v37 = vrot.slane %v4969_v56, 2  ;;  %v1948_v13 = vrot.slane %v4969_v56, 1  ;;  %v1997_v50 = vpop.permute.xlu2 %1996 }
 0x209   : > { %v1950_v28 = vrot.slane %v1829_v53, 1  ;;  %v2126_v54 = vrot.slane %v1829_v53, 2 }
 0x20a   : > { %v1727_v10 = vadd.f32 %v4561_v45, %v1691_v36  ;;  %v1686_v25 = vmul.f32 %v4552_v0, %v1595_v8  ;;  %v2125_v6 = vsel %vm810_vm3, %v2123_v48, %v2124_v37  ;;  %v1949_v59 = vsel %vm633_vm1, %v1947_v20, %v1948_v13  ;;  %3319 = vmatmul.msk.f32.gmra.mxu0 %vm2355_vm9, %v2291_v23  ;;  %v5009_v48 = vld [vmem:[%s5482_s5] ss:$0 sm:$0xff] }
 0x20b   : > { %2194 = vrot.lane.b32.xlu1 %v2125_v6, %s3454_s29  ;;  %v1951_v39 = vsel %vm633_vm1, %v1948_v13, %v1950_v28  ;;  %2018 = vrot.lane.b32.xlu0 %v1949_v59, %s3453_s16  ;;  %v2127_v36 = vsel %vm810_vm3, %v2124_v37, %v2126_v54  ;;  %v2261_v8 = vsel %vm1019_vm5, %v4713_v26, %v1997_v50 }
 0x20c   : > { %v1759_v61 = vmax.f32 %v1727_v10, 0.0  ;;  %v1722_v15 = vadd.f32 %v4561_v45, %v1686_v25  ;;  %2020 = vrot.lane.b32.xlu2 %v1951_v39, %s3453_s16  ;;  %v1995_v0 = vpop.permute.xlu0 %1994  ;;  %v2171_v43 = vpop.permute.xlu1 %2170  ;;  %v5001_v45 = vld [vmem:[%s5481_s4] ss:$0 sm:$0xff]  ;;  %v1390_v37 = vadd.f32 %v1389_v14, %v1267_v16 }
 0x20d   : > { %v2260_v23 = vsel %vm1019_vm5, %v4709_v5, %v1995_v0  ;;  %v1555_v55 = vpop.f32.mrf.mxu3 }
 0x20e   : > { %1792 = vst.msk [vmem:[#allocation3 + $0x139] sm:$0xff] %vm1019_vm5, %v1759_v61  ;;  %v1754_v30 = vmax.f32 %v1722_v15, 0.0  ;;  %v2293_v51 = vsel %vm2286_vm8, %v2260_v23, %v2171_v43  ;;  %v1601_v38 = vadd.f32 %v1555_v55, %v1402_v11  ;;  %v5523_v23 = vld [vmem:[#allocation14_spill] sm:$0xff]  ;;  %v1270_v55 = vpop.f32.mrf.mxu0 }
 0x20f   : > { %v1540_v47 = vpop.f32.mrf.mxu2  ;;  %3287 = vmatmul.msk.f32.gmra.mxu3 %vm2355_vm9, %v2293_v51  ;;  %3352 = vmatmul.msk.f32.gmra.mxu1 %vm2355_vm9, %v2293_v51  ;;  %v5021_v25 = vld [vmem:[#allocation3 + $0xf0] sm:$0xff] }
 0x210   : > { %1787 = vst.msk [vmem:[#allocation3 + $0xf9] sm:$0xff] %vm1019_vm5, %v1754_v30  ;;  %v1692_v5 = vmul.f32 %v5001_v45, %v1601_v38  ;;  %v1596_v46 = vadd.f32 %v1540_v47, %v1387_v58  ;;  %3395 = vmatmul.msk.f32.gmra.mxu2 %vm306_vm0, %v4095_v4  ;;  %v1405_v4 = vadd.f32 %v4844_v63, %v4694_v27  ;;  %v2128_v26 = vrot.slane %v5021_v25, 2 }
 0x211   : > { %v1952_v61 = vrot.slane %v5021_v25, 1 }
 0x212   : > { %v1728_v53 = vadd.f32 %v5009_v48, %v1692_v5  ;;  %v1687_v20 = vmul.f32 %v5001_v45, %v1596_v46  ;;  %3320 = vmatmul.msk.f32.gmra.mxu0 %vm2355_vm9, %v2292_v40  ;;  %v1392_v5 = vpop.f32.mrf.mxu1 }
 0x213   : > { %2196 = vrot.lane.b32.xlu0 %v2127_v36, %s3454_s29 }
 0x214   : > { %v1760_v13 = vmax.f32 %v1728_v53, 0.0  ;;  %v1723_v28 = vadd.f32 %v5009_v48, %v1687_v20  ;;  %v2173_v10 = vpop.permute.xlu0 %2172  ;;  %v1408_v53 = vadd.f32 %v4863_v17, %v4711_v7  ;;  %v1393_v20 = vadd.f32 %v1392_v5, %v1270_v55 }
 0x215   : > { %v2294_v6 = vsel %vm2286_vm8, %v2261_v8, %v2173_v10  ;;  %v1558_v59 = vpop.f32.mrf.mxu3  ;;  %v5524_v10 = vld [vmem:[#allocation15_spill] sm:$0xff] }
 0x216   : > { %1793 = vst.msk [vmem:[#allocation3 + $0x141] sm:$0xff] %vm1019_vm5, %v1760_v13  ;;  %v1755_v40 = vmax.f32 %v1723_v28, 0.0  ;;  %v1602_v39 = vadd.f32 %v1558_v59, %v1405_v4  ;;  %v1273_v17 = vpop.f32.mrf.mxu0 }
 0x217   : > { %v1543_v11 = vpop.f32.mrf.mxu2  ;;  %3288 = vmatmul.msk.f32.gmra.mxu3 %vm2355_vm9, %v2294_v6  ;;  %3353 = vmatmul.msk.f32.gmra.mxu1 %vm2355_vm9, %v2294_v6  ;;  %v5027_v27 = vld [vmem:[#allocation3 + $0xf8] sm:$0xff]  ;;  %v1832_v63 = vld [vmem:[#allocation3 + $0x100] sm:$0x3] }
 0x218   : > { %1788 = vst.msk [vmem:[#allocation3 + $0x109] sm:$0xff] %vm1019_vm5, %v1755_v40  ;;  %v1693_v15 = vmul.f32 %v5001_v45, %v1602_v39  ;;  %v1597_v0 = vadd.f32 %v1543_v11, %v1390_v37  ;;  %v2129_v43 = vrot.slane %v5027_v27, 2  ;;  %v1953_v58 = vrot.slane %v5027_v27, 1  ;;  %3396 = vmatmul.msk.f32.gmra.mxu2 %vm306_vm0, %v5523_v23 }
 0x219   : > { %v1955_v30 = vrot.slane %v1832_v63, 1  ;;  %v2131_v4 = vrot.slane %v1832_v63, 2  ;;  %v1411_v63 = vadd.f32 %v4883_v21, %v4732_v24 }
 0x21a   : > { %v1729_v38 = vadd.f32 %v5009_v48, %v1693_v15  ;;  %v1688_v54 = vmul.f32 %v5001_v45, %v1597_v0  ;;  %v2130_v16 = vsel %vm810_vm3, %v2128_v26, %v2129_v43  ;;  %v1954_v47 = vsel %vm633_vm1, %v1952_v61, %v1953_v58  ;;  %3321 = vmatmul.msk.f32.gmra.mxu0 %vm2355_vm9, %v2293_v51  ;;  %v1395_v61 = vpop.f32.mrf.mxu1  ;;  %v2175_v15 = vpop.permute.xlu2 %2174 }
 0x21b   : > { %2198 = vrot.lane.b32.xlu2 %v2130_v16, %s3454_s29  ;;  %v1956_v46 = vsel %vm633_vm1, %v1953_v58, %v1955_v30  ;;  %2022 = vrot.lane.b32.xlu1 %v1954_v47, %s3453_s16  ;;  %v2132_v7 = vsel %vm810_vm3, %v2129_v43, %v2131_v4 }
 0x21c   : > { %v1761_v14 = vmax.f32 %v1729_v38, 0.0  ;;  %v1724_v50 = vadd.f32 %v5009_v48, %v1688_v54  ;;  %2024 = vrot.lane.b32.xlu0 %v1956_v46, %s3453_s16 }
 0x21e   : > { %1794 = vst.msk [vmem:[#allocation3 + $0x151] sm:$0xff] %vm1019_vm5, %v1761_v14  ;;  %v1756_v36 = vmax.f32 %v1724_v50, 0.0  ;;  %v1561_v51 = vpop.f32.mrf.mxu3 }
 0x21f   : > { %v1603_v8 = vadd.f32 %v1561_v51, %v1408_v53  ;;  %v1546_v13 = vpop.f32.mrf.mxu2  ;;  %v5060_v26 = vld [vmem:[#allocation3 + $0x108] sm:$0xff] }
 0x220   : > { %1789 = vst.msk [vmem:[#allocation3 + $0x111] sm:$0xff] %vm1019_vm5, %v1756_v36  ;;  %v1598_v28 = vadd.f32 %v1546_v13, %v1393_v20  ;;  %3397 = vmatmul.msk.f32.gmra.mxu2 %vm306_vm0, %v5524_v10  ;;  %v2133_v21 = vrot.slane %v5060_v26, 2 }
 0x221   : > { %v1694_v59 = vmul.f32 %v5001_v45, %v1603_v8 }
 0x222   : > { %v1689_v37 = vmul.f32 %v5001_v45, %v1598_v28  ;;  %3322 = vmatmul.msk.f32.gmra.mxu0 %vm2355_vm9, %v2294_v6  ;;  %v1396_v6 = vadd.f32 %v1395_v61, %v1273_v17  ;;  %v1414_v28 = vadd.f32 %v4907_v1, %v4745_v18 }
 0x223   : > { %v1730_v40 = vadd.f32 %v5009_v48, %v1694_v59  ;;  %2200 = vrot.lane.b32.xlu1 %v2132_v7, %s3454_s29  ;;  %v2001_v14 = vpop.permute.xlu0 %2000 }
 0x224   : > { %v1725_v39 = vadd.f32 %v5009_v48, %v1689_v37  ;;  %v1999_v11 = vpop.permute.xlu1 %1998 }
 0x225   : > { %v1762_v0 = vmax.f32 %v1730_v40, 0.0  ;;  %v2262_v43 = vsel %vm1019_vm5, %v4748_v52, %v1999_v11  ;;  %v1957_v52 = vrot.slane %v5060_v26, 1  ;;  %v5525_v40 = vld [vmem:[#allocation17_spill] sm:$0xff] }
 0x226   : > { %v1757_v58 = vmax.f32 %v1725_v39, 0.0  ;;  %v1564_v23 = vpop.f32.mrf.mxu3  ;;  %v2295_v55 = vsel %vm2286_vm8, %v2262_v43, %v2175_v15 }
 0x227   : > { %1795 = vst.msk [vmem:[#allocation3 + $0x159] sm:$0xff] %vm1019_vm5, %v1762_v0  ;;  %v1604_v30 = vadd.f32 %v1564_v23, %v1411_v63  ;;  %v1549_v38 = vpop.f32.mrf.mxu2  ;;  %3289 = vmatmul.msk.f32.gmra.mxu3 %vm2355_vm9, %v2295_v55  ;;  %3354 = vmatmul.msk.f32.gmra.mxu1 %vm2355_vm9, %v2295_v55  ;;  %v5070_v24 = vld [vmem:[#allocation3 + $0x110] sm:$0xff]  ;;  %v1835_v54 = vld [vmem:[#allocation3 + $0x118] sm:$0x3]  ;;  %v1417_v63 = vadd.f32 %v4922_v34, %v4774_v32  ;;  %v2003_v32 = vpop.permute.xlu2 %2002 }
 0x228   : > { %1790 = vst.msk [vmem:[#allocation3 + $0x121] sm:$0xff] %vm1019_vm5, %v1757_v58  ;;  %v1599_v16 = vadd.f32 %v1549_v38, %v1396_v6  ;;  %v2134_v47 = vrot.slane %v5070_v24, 2  ;;  %v1958_v5 = vrot.slane %v5070_v24, 1  ;;  %v1960_v46 = vrot.slane %v1835_v54, 1  ;;  %3398 = vmatmul.msk.f32.gmra.mxu2 %vm306_vm0, %v4258_v9 }
 0x229   : > { %v1695_v50 = vmul.f32 %v5001_v45, %v1604_v30  ;;  %v2263_v9 = vsel %vm1019_vm5, %v4757_v2, %v2001_v14  ;;  %v2136_v2 = vrot.slane %v1835_v54, 2 }
 0x22a   : > { %v1690_v53 = vmul.f32 %v5001_v45, %v1599_v16  ;;  %v2135_v20 = vsel %vm810_vm3, %v2133_v21, %v2134_v47  ;;  %v1961_v36 = vsel %vm633_vm1, %v1958_v5, %v1960_v46  ;;  %v1959_v51 = vsel %vm633_vm1, %v1957_v52, %v1958_v5  ;;  %3323 = vmatmul.msk.f32.gmra.mxu0 %vm2355_vm9, %v2295_v55  ;;  %v5526_v21 = vld [vmem:[#allocation16_spill] sm:$0xff]  ;;  %v5126_v5 = vld [vmem:[#allocation3 + $0x140] sm:$0xff] }
 0x22b   : > { %v1731_v4 = vadd.f32 %v5009_v48, %v1695_v50  ;;  %2202 = vrot.lane.b32.xlu0 %v2135_v20, %s3454_s29  ;;  %2028 = vrot.lane.b32.xlu1 %v1961_v36, %s3453_s16  ;;  %v2137_v39 = vsel %vm810_vm3, %v2134_v47, %v2136_v2  ;;  %v2264_v46 = vsel %vm1019_vm5, %v4806_v12, %v2003_v32  ;;  %v5134_v36 = vld [vmem:[#allocation3 + $0x138] sm:$0xff] }
 0x22c   : > { %v1726_v8 = vadd.f32 %v5009_v48, %v1690_v53  ;;  %2026 = vrot.lane.b32.xlu2 %v1959_v51, %s3453_s16  ;;  %v2177_v13 = vpop.permute.xlu1 %2176  ;;  %v1420_v50 = vadd.f32 %v4947_v41, %v4791_v42  ;;  %v2144_v42 = vrot.slane %v5126_v5, 2  ;;  %v1967_v41 = vrot.slane %v5134_v36, 1 }
 0x22d   : > { %v1763_v10 = vmax.f32 %v1731_v4, 0.0  ;;  %v2296_v59 = vsel %vm2286_vm8, %v2263_v9, %v2177_v13  ;;  %v1968_v4 = vrot.slane %v5126_v5, 1 }
 0x22e   : > { %v1758_v37 = vmax.f32 %v1726_v8, 0.0  ;;  %v1567_v7 = vpop.f32.mrf.mxu3 }
 0x22f   : > { %1796 = vst.msk [vmem:[#allocation3 + $0x169] sm:$0xff] %vm1019_vm5, %v1763_v10  ;;  %v1605_v17 = vadd.f32 %v1567_v7, %v1414_v28  ;;  %3290 = vmatmul.msk.f32.gmra.mxu3 %vm2355_vm9, %v2296_v59  ;;  %3355 = vmatmul.msk.f32.gmra.mxu1 %vm2355_vm9, %v2296_v59  ;;  %v5106_v11 = vld [vmem:[#allocation3 + $0x120] sm:$0xff]  ;;  %v2143_v28 = vrot.slane %v5134_v36, 2  ;;  %v2181_v2 = vpop.permute.xlu2 %2180 }
 0x230   : > { %1791 = vst.msk [vmem:[#allocation3 + $0x129] sm:$0xff] %vm1019_vm5, %v1758_v37  ;;  %3399 = vmatmul.msk.f32.gmra.mxu2 %vm306_vm0, %v5525_v40  ;;  %v2138_v6 = vrot.slane %v5106_v11, 2  ;;  %v1962_v38 = vrot.slane %v5106_v11, 1 }
 0x231   : > { %v1696_v18 = vmul.f32 %v5001_v45, %v1605_v17  ;;  %v2145_v17 = vsel %vm810_vm3, %v2143_v28, %v2144_v42 }
 0x232   : > { %3324 = vmatmul.msk.f32.gmra.mxu0 %vm2355_vm9, %v2296_v59  ;;  %v1969_v59 = vsel %vm633_vm1, %v1967_v41, %v1968_v4 }
 0x233   : > { %v1732_v1 = vadd.f32 %v5009_v48, %v1696_v18  ;;  %v5161_v18 = vld [vmem:[#allocation3 + $0x150] sm:$0xff] }
 0x234   : > { %2204 = vrot.lane.b32.xlu2 %v2137_v39, %s3454_s29  ;;  %v2148_v32 = vrot.slane %v5161_v18, 2 }
 0x235   : > { %v1764_v61 = vmax.f32 %v1732_v1, 0.0 }
 0x236   : > { %v1570_v15 = vpop.f32.mrf.mxu3 }
 0x237   : > { %1797 = vst.msk [vmem:[#allocation3 + $0x171] sm:$0xff] %vm1019_vm5, %v1764_v61  ;;  %v1606_v0 = vadd.f32 %v1570_v15, %v1417_v63  ;;  %v5111_v43 = vld [vmem:[#allocation3 + $0x128] sm:$0xff]  ;;  %v1838_v58 = vld [vmem:[#allocation3 + $0x130] sm:$0x3]  ;;  %v1972_v63 = vrot.slane %v5161_v18, 1 }
 0x238   : > { %v2139_v23 = vrot.slane %v5111_v43, 2  ;;  %v1963_v55 = vrot.slane %v5111_v43, 1  ;;  %v1965_v30 = vrot.slane %v1838_v58, 1  ;;  %3400 = vmatmul.msk.f32.gmra.mxu2 %vm306_vm0, %v5526_v21  ;;  %v2141_v9 = vrot.slane %v1838_v58, 2 }
 0x239   : > { %v1697_v34 = vmul.f32 %v5001_v45, %v1606_v0 }
 0x23a   : > { %v2140_v54 = vsel %vm810_vm3, %v2138_v6, %v2139_v23  ;;  %v1966_v52 = vsel %vm633_vm1, %v1963_v55, %v1965_v30  ;;  %v1964_v16 = vsel %vm633_vm1, %v1962_v38, %v1963_v55  ;;  %v2142_v37 = vsel %vm810_vm3, %v2139_v23, %v2141_v9  ;;  %v1844_v6 = vld [vmem:[#allocation3 + $0x160] sm:$0x3] }
 0x23b   : > { %v1733_v47 = vadd.f32 %v5009_v48, %v1697_v34  ;;  %2206 = vrot.lane.b32.xlu1 %v2140_v54, %s3454_s29  ;;  %2030 = vrot.lane.b32.xlu0 %v1964_v16, %s3453_s16  ;;  %v1975_v55 = vrot.slane %v1844_v6, 1  ;;  %v2151_v38 = vrot.slane %v1844_v6, 2  ;;  %v2953_v6 = vpop.f32.mrf.mxu2 }
 0x23c   : > { %2032 = vrot.lane.b32.xlu2 %v1966_v52, %s3453_s16  ;;  %v2179_v14 = vpop.permute.xlu0 %2178  ;;  %v2005_v12 = vpop.permute.xlu1 %2004 }
 0x23d   : > { %v1765_v53 = vmax.f32 %v1733_v47, 0.0  ;;  %v2297_v20 = vsel %vm2286_vm8, %v2264_v46, %v2179_v14  ;;  %v2265_v10 = vsel %vm1019_vm5, %v4816_v22, %v2005_v12  ;;  %v2009_v52 = vpop.permute.xlu2 %2008  ;;  %v5193_v47 = vld [vmem:[#allocation3 + $0x168] sm:$0xff] }
 0x23e   : > { %v1573_v51 = vpop.f32.mrf.mxu3  ;;  %3291 = vmatmul.msk.f32.gmra.mxu3 %vm2355_vm9, %v2297_v20  ;;  %3325 = vmatmul.msk.f32.gmra.mxu0 %vm2355_vm9, %v2297_v20  ;;  %v2298_v22 = vsel %vm2286_vm8, %v2265_v10, %v2181_v2  ;;  %v5190_v16 = vld [vmem:[#allocation3 + $0x170] sm:$0xff]  ;;  %v2267_v46 = vsel %vm1019_vm5, %v4846_v44, %v2009_v52  ;;  %v1977_v9 = vrot.slane %v5193_v47, 1 }
 0x23f   : > { %1798 = vst.msk [vmem:[#allocation3 + $0x181] sm:$0xff] %vm1019_vm5, %v1765_v53  ;;  %v1607_v8 = vadd.f32 %v1573_v51, %v1420_v50  ;;  %3356 = vmatmul.msk.f32.gmra.mxu1 %vm2355_vm9, %v2297_v20  ;;  %v2154_v50 = vrot.slane %v5190_v16, 2  ;;  %v1978_v53 = vrot.slane %v5190_v16, 1 }
 0x240   : > { %3401 = vmatmul.msk.f32.gmra.mxu2 %vm306_vm0, %v4323_v19  ;;  %v1841_v19 = vld [vmem:[#allocation3 + $0x148] sm:$0x3] }
 0x241   : > { %v1698_v13 = vmul.f32 %v5001_v45, %v1607_v8  ;;  %v5156_v45 = vld [vmem:[#allocation3 + $0x158] sm:$0xff]  ;;  %v1970_v1 = vrot.slane %v1841_v19, 1  ;;  %v1979_v12 = vsel %vm633_vm1, %v1977_v9, %v1978_v53 }
 0x242   : > { %v1973_v39 = vrot.slane %v5156_v45, 1 }
 0x243   : > { %v1734_v7 = vadd.f32 %v5009_v48, %v1698_v13  ;;  %2034 = vrot.lane.b32.xlu1 %v1969_v59, %s3453_s16  ;;  %2208 = vrot.lane.b32.xlu0 %v2142_v37, %s3454_s29  ;;  %v2146_v48 = vrot.slane %v1841_v19, 2  ;;  %v1971_v15 = vsel %vm633_vm1, %v1968_v4, %v1970_v1  ;;  %v2153_v4 = vrot.slane %v5193_v47, 2  ;;  %v5527_v19 = vld [vmem:[#allocation13_spill] sm:$0xff] }
 0x244   : > { %2210 = vrot.lane.b32.xlu2 %v2145_v17, %s3454_s29  ;;  %v1974_v0 = vsel %vm633_vm1, %v1972_v63, %v1973_v39  ;;  %v1976_v34 = vsel %vm633_vm1, %v1973_v39, %v1975_v55  ;;  %v2588_v39 = vpop.f32.mrf.mxu0 }
 0x245   : > { %v1766_v40 = vmax.f32 %v1734_v7, 0.0  ;;  %v2147_v61 = vsel %vm810_vm3, %v2144_v42, %v2146_v48  ;;  %v2155_v44 = vsel %vm810_vm3, %v2153_v4, %v2154_v50  ;;  %v2187_v10 = vpop.permute.xlu2 %2186 }
 0x246   : > { %3292 = vmatmul.msk.f32.gmra.mxu3 %vm2355_vm9, %v2298_v22  ;;  %3326 = vmatmul.msk.f32.gmra.mxu0 %vm2355_vm9, %v2298_v22 }
 0x247   : > { %1799 = vst.msk [vmem:[#allocation3 + $0x189] sm:$0xff] %vm1019_vm5, %v1766_v40  ;;  %3357 = vmatmul.msk.f32.gmra.mxu1 %vm2355_vm9, %v2298_v22 }
 0x248   : > { %3402 = vmatmul.msk.f32.gmra.mxu2 %vm306_vm0, %v4357_v31  ;;  %v2149_v31 = vrot.slane %v5156_v45, 2 }
 0x24a   : > { %v2150_v54 = vsel %vm810_vm3, %v2148_v32, %v2149_v31 }
 0x24b   : > { %2212 = vrot.lane.b32.xlu1 %v2147_v61, %s3454_s29  ;;  %2036 = vrot.lane.b32.xlu0 %v1971_v15, %s3453_s16 }
 0x24c   : > { %2038 = vrot.lane.b32.xlu2 %v1974_v0, %s3453_s16 }
 0x24d   : > { %v2183_v58 = vpop.permute.xlu1 %2182 }
 0x24e   : > { %v2007_v23 = vpop.permute.xlu0 %2006  ;;  %v5212_v42 = vld [vmem:[#allocation3 + $0x188] sm:$0xff]  ;;  %v1850_v1 = vld [vmem:[#allocation3 + $0x190] sm:$0x3] }
 0x24f   : > { %v2266_v30 = vsel %vm1019_vm5, %v4840_v35, %v2007_v23  ;;  %v2152_v35 = vsel %vm810_vm3, %v2149_v31, %v2151_v38  ;;  %v2326_v28 = vrot.slane %v5212_v42, 1  ;;  %v2337_v37 = vrot.slane %v5212_v42, 2  ;;  %v5528_v23 = vld [vmem:[#allocation12_spill] sm:$0xff]  ;;  %v5247_v38 = vld [vmem:[#allocation3 + $0x1a0] sm:$0xff] }
 0x250   : > { %v2299_v21 = vsel %vm2286_vm8, %v2266_v30, %v2183_v58  ;;  %3403 = vmatmul.msk.f32.gmra.mxu2 %vm306_vm0, %v4333_v49  ;;  %v1847_v49 = vld [vmem:[#allocation3 + $0x178] sm:$0x3]  ;;  %v2328_v15 = vrot.slane %v1850_v1, 1  ;;  %v2339_v0 = vrot.slane %v1850_v1, 2  ;;  %v2699_v32 = vrot.slane %v5247_v38, 2 }
 0x251   : > { %3293 = vmatmul.msk.f32.gmra.mxu3 %vm2355_vm9, %v2299_v21  ;;  %3327 = vmatmul.msk.f32.gmra.mxu0 %vm2355_vm9, %v2299_v21  ;;  %v1980_v51 = vrot.slane %v1847_v49, 1  ;;  %v2156_v13 = vrot.slane %v1847_v49, 2  ;;  %v5245_v30 = vld [vmem:[#allocation3 + $0x198] sm:$0xff]  ;;  %v2956_v49 = vpop.f32.mrf.mxu2 }
 0x252   : > { %3358 = vmatmul.msk.f32.gmra.mxu1 %vm2355_vm9, %v2299_v21  ;;  %v2329_v31 = vsel %vm633_vm1, %v2326_v28, %v2328_v15  ;;  %v2698_v21 = vrot.slane %v5245_v30, 2  ;;  %v2687_v1 = vrot.slane %v5245_v30, 1 }
 0x253   : > { %2040 = vrot.lane.b32.xlu1 %v1976_v34, %s3453_s16  ;;  %2214 = vrot.lane.b32.xlu0 %v2150_v54, %s3454_s29  ;;  %v1981_v8 = vsel %vm633_vm1, %v1978_v53, %v1980_v51  ;;  %v2157_v40 = vsel %vm810_vm3, %v2154_v50, %v2156_v13  ;;  %v1853_v50 = vld [vmem:[#allocation3 + $0x1a8] sm:$0x3] }
 0x254   : > { %2216 = vrot.lane.b32.xlu2 %v2152_v35, %s3454_s29 }
 0x255   : > { %v2015_v55 = vpop.permute.xlu2 %2014 }
 0x256   : > { %v2185_v14 = vpop.permute.xlu0 %2184  ;;  %v2270_v34 = vsel %vm1019_vm5, %v4920_v62, %v2015_v55  ;;  %v2688_v62 = vrot.slane %v5247_v38, 1 }
 0x257   : > { %v2300_v20 = vsel %vm2286_vm8, %v2267_v46, %v2185_v14  ;;  %v2700_v46 = vsel %vm810_vm3, %v2698_v21, %v2699_v32  ;;  %v5529_v14 = vld [vmem:[#allocation4_spill] sm:$0xff] }
 0x258   : > { %3404 = vmatmul.msk.f32.gmra.mxu2 %vm306_vm0, %v4374_v33  ;;  %v5215_v33 = vld [vmem:[#allocation3 + $0x180] sm:$0xff] }
 0x259   : > { %3294 = vmatmul.msk.f32.gmra.mxu3 %vm2355_vm9, %v2300_v20  ;;  %3328 = vmatmul.msk.f32.gmra.mxu0 %vm2355_vm9, %v2300_v20  ;;  %v2325_v17 = vrot.slane %v5215_v33, 1  ;;  %v2336_v2 = vrot.slane %v5215_v33, 2 }
 0x25a   : > { %3359 = vmatmul.msk.f32.gmra.mxu1 %vm2355_vm9, %v2300_v20  ;;  %v2690_v20 = vrot.slane %v1853_v50, 1 }
 0x25b   : > { %2218 = vrot.lane.b32.xlu1 %v2155_v44, %s3454_s29  ;;  %2042 = vrot.lane.b32.xlu0 %v1979_v12, %s3453_s16  ;;  %v2338_v48 = vsel %vm810_vm3, %v2336_v2, %v2337_v37 }
 0x25c   : > { %2044 = vrot.lane.b32.xlu2 %v1981_v8, %s3453_s16  ;;  %v2691_v4 = vsel %vm633_vm1, %v2688_v62, %v2690_v20 }
 0x25d   : > { %v2011_v41 = vpop.permute.xlu1 %2010  ;;  %v2193_v44 = vpop.permute.xlu2 %2192 }
 0x25e   : > { %v2268_v59 = vsel %vm1019_vm5, %v4879_v29, %v2011_v41  ;;  %v2327_v29 = vsel %vm633_vm1, %v2325_v17, %v2326_v28  ;;  %v2013_v22 = vpop.permute.xlu0 %2012  ;;  %v5530_v41 = vld [vmem:[#allocation5_spill] sm:$0xff] }
 0x25f   : > { %v2301_v7 = vsel %vm2286_vm8, %v2268_v59, %v2187_v10  ;;  %v2269_v63 = vsel %vm1019_vm5, %v4885_v60, %v2013_v22  ;;  %v2340_v60 = vsel %vm810_vm3, %v2337_v37, %v2339_v0  ;;  %v2959_v10 = vpop.f32.mrf.mxu2 }
 0x260   : > { %3405 = vmatmul.msk.f32.gmra.mxu2 %vm306_vm0, %v5527_v19 }
 0x261   : > { %3295 = vmatmul.msk.f32.gmra.mxu3 %vm2355_vm9, %v2301_v7  ;;  %3329 = vmatmul.msk.f32.gmra.mxu0 %vm2355_vm9, %v2301_v7 }
 0x262   : > { %3360 = vmatmul.msk.f32.gmra.mxu1 %vm2355_vm9, %v2301_v7 }
 0x263   : > { %2220 = vrot.lane.b32.xlu0 %v2157_v40, %s3454_s29  ;;  %2330 = vrot.lane.b32.xlu1 %v2327_v29, %s3453_s16  ;;  %v5531_v29 = vld [vmem:[#allocation7_spill] sm:$0xff] }
 0x264   : > { %2341 = vrot.lane.b32.xlu2 %v2338_v48, %s3454_s29 }
 0x265   : > { %v2189_v61 = vpop.permute.xlu1 %2188 }
 0x266   : > { %v2302_v58 = vsel %vm2286_vm8, %v2269_v63, %v2189_v61  ;;  %v2469_v51 = vpop.f32.mrf.mxu3  ;;  %v2021_v22 = vpop.permute.xlu2 %2020  ;;  %v2689_v61 = vsel %vm633_vm1, %v2687_v1, %v2688_v62 }
 0x267   : > { %v2589_v13 = vadd.f32 %v2588_v39, %v2469_v51  ;;  %v2962_v63 = vpop.f32.mrf.mxu2  ;;  %v2273_v15 = vsel %vm1019_vm5, %v4969_v56, %v2021_v22 }
 0x268   : > { %3406 = vmatmul.msk.f32.gmra.mxu2 %vm306_vm0, %v5528_v23 }
 0x269   : > { %3296 = vmatmul.msk.f32.gmra.mxu3 %vm2355_vm9, %v2302_v58  ;;  %3330 = vmatmul.msk.f32.gmra.mxu0 %vm2355_vm9, %v2302_v58 }
 0x26a   : > { %3361 = vmatmul.msk.f32.gmra.mxu1 %vm2355_vm9, %v2302_v58 }
 0x26b   : > { %2332 = vrot.lane.b32.xlu0 %v2329_v31, %s3453_s16  ;;  %2343 = vrot.lane.b32.xlu1 %v2340_v60, %s3454_s29  ;;  %v5532_v31 = vld [vmem:[#allocation6_spill] sm:$0xff]  ;;  %v2701_v60 = vrot.slane %v1853_v50, 2  ;;  %v5533_v50 = vld [vmem:[#allocation8_spill] sm:$0xff] }
 0x26c   : > { %2692 = vrot.lane.b32.xlu2 %v2689_v61, %s3453_s16  ;;  %v5536_v61 = vld [vmem:[#allocation11_spill] sm:$0xff] }
 0x26d   : > { %v2191_v54 = vpop.permute.xlu0 %2190 }
 0x26e   : > { %v2303_v52 = vsel %vm2286_vm8, %v2270_v34, %v2191_v54  ;;  %v2017_v53 = vpop.permute.xlu1 %2016 }
 0x26f   : > { %v2591_v35 = vpop.f32.mrf.mxu0  ;;  %v2271_v9 = vsel %vm1019_vm5, %v4926_v3, %v2017_v53  ;;  %v2472_v17 = vpop.f32.mrf.mxu3 }
 0x270   : > { %3407 = vmatmul.msk.f32.gmra.mxu2 %vm306_vm0, %v5529_v14  ;;  %v2304_v8 = vsel %vm2286_vm8, %v2271_v9, %v2193_v44  ;;  %v2592_v48 = vadd.f32 %v2591_v35, %v2472_v17  ;;  %v2965_v34 = vpop.f32.mrf.mxu2  ;;  %v2702_v35 = vsel %vm810_vm3, %v2699_v32, %v2701_v60 }
 0x271   : > { %3297 = vmatmul.msk.f32.gmra.mxu3 %vm2355_vm9, %v2303_v52  ;;  %3331 = vmatmul.msk.f32.gmra.mxu0 %vm2355_vm9, %v2303_v52 }
 0x272   : > { %3362 = vmatmul.msk.f32.gmra.mxu1 %vm2355_vm9, %v2303_v52 }
 0x273   : > { %2703 = vrot.lane.b32.xlu0 %v2700_v46, %s3454_s29  ;;  %2694 = vrot.lane.b32.xlu1 %v2691_v4, %s3453_s16 }
 0x274   : > { %2705 = vrot.lane.b32.xlu2 %v2702_v35, %s3454_s29 }
 0x277   : > { %v2594_v12 = vpop.f32.mrf.mxu0 }
 0x278   : > { %3408 = vmatmul.msk.f32.gmra.mxu2 %vm306_vm0, %v5530_v41 }
 0x279   : > { %3298 = vmatmul.msk.f32.gmra.mxu3 %vm2355_vm9, %v2304_v8  ;;  %3332 = vmatmul.msk.f32.gmra.mxu0 %vm2355_vm9, %v2304_v8 }
 0x27a   : > { %3363 = vmatmul.msk.f32.gmra.mxu1 %vm2355_vm9, %v2304_v8  ;;  %v2740_v28 = vpop.f32.mrf.mxu1  ;;  %v2968_v8 = vpop.f32.mrf.mxu2 }
 0x27b   : > { %v2836_v59 = vadd.f32 %v2740_v28, %v2589_v13  ;;  %v5534_v28 = vld [vmem:[#allocation10_spill] sm:$0xff] }
 0x27d   : > { %v2019_v3 = vpop.permute.xlu0 %2018  ;;  %v3049_v37 = vadd.f32 %v2953_v6, %v2836_v59  ;;  %v2195_v7 = vpop.permute.xlu1 %2194 }
 0x27e   : > { %v2272_v19 = vsel %vm1019_vm5, %v4964_v57, %v2019_v3 }
 0x27f   : > { %3081 = vst.msk [vmem:[%s5281_s25] sm:$0xff] %vm1019_vm5, %v3049_v37  ;;  %v2305_v2 = vsel %vm2286_vm8, %v2272_v19, %v2195_v7  ;;  %v2597_v40 = vpop.f32.mrf.mxu0  ;;  %v5535_v19 = vld [vmem:[#allocation9_spill] sm:$0xff] }
 0x280   : > { %3409 = vmatmul.msk.f32.gmra.mxu2 %vm306_vm0, %v5531_v29  ;;  %v2475_v6 = vpop.f32.mrf.mxu3 }
 0x281   : > { %3299 = vmatmul.msk.f32.gmra.mxu3 %vm2355_vm9, %v2305_v2  ;;  %3333 = vmatmul.msk.f32.gmra.mxu0 %vm2355_vm9, %v2305_v2  ;;  %v2595_v56 = vadd.f32 %v2594_v12, %v2475_v6 }
 0x282   : > { %3364 = vmatmul.msk.f32.gmra.mxu1 %vm2355_vm9, %v2305_v2  ;;  %v2971_v7 = vpop.f32.mrf.mxu2 }
 0x283   : > { %v2743_v57 = vpop.f32.mrf.mxu1 }
 0x284   : > { %v2837_v39 = vadd.f32 %v2743_v57, %v2592_v48 }
 0x285   : > { %v2197_v0 = vpop.permute.xlu0 %2196 }
 0x286   : > { %v2306_v58 = vsel %vm2286_vm8, %v2273_v15, %v2197_v0  ;;  %v3050_v23 = vadd.f32 %v2956_v49, %v2837_v39  ;;  %v2199_v49 = vpop.permute.xlu2 %2198 }
 0x287   : > { %v2600_v55 = vpop.f32.mrf.mxu0 }
 0x288   : > { %3082 = vst.msk [vmem:[%s5281_s25 + $0x8] sm:$0xff] %vm1019_vm5, %v3050_v23  ;;  %3410 = vmatmul.msk.f32.gmra.mxu2 %vm306_vm0, %v5532_v31 }
 0x289   : > { %3300 = vmatmul.msk.f32.gmra.mxu3 %vm2355_vm9, %v2306_v58  ;;  %3334 = vmatmul.msk.f32.gmra.mxu0 %vm2355_vm9, %v2306_v58  ;;  %v2478_v20 = vpop.f32.mrf.mxu3 }
 0x28a   : > { %3365 = vmatmul.msk.f32.gmra.mxu1 %vm2355_vm9, %v2306_v58 }
 0x28c   : > { %v2746_v21 = vpop.f32.mrf.mxu1 }
 0x28d   : > { %v2838_v54 = vadd.f32 %v2746_v21, %v2595_v56  ;;  %v2023_v52 = vpop.permute.xlu1 %2022 }
 0x28e   : > { %v2274_v46 = vsel %vm1019_vm5, %v5021_v25, %v2023_v52  ;;  %v2025_v32 = vpop.permute.xlu0 %2024  ;;  %v2598_v25 = vadd.f32 %v2597_v40, %v2478_v20 }
 0x28f   : > { %v3051_v14 = vadd.f32 %v2959_v10, %v2838_v54  ;;  %v2307_v53 = vsel %vm2286_vm8, %v2274_v46, %v2199_v49  ;;  %v2603_v62 = vpop.f32.mrf.mxu0  ;;  %v2275_v4 = vsel %vm1019_vm5, %v5027_v27, %v2025_v32  ;;  %v2027_v10 = vpop.permute.xlu2 %2026 }
 0x290   : > { %3411 = vmatmul.msk.f32.gmra.mxu2 %vm306_vm0, %v5533_v50  ;;  %v2276_v27 = vsel %vm1019_vm5, %v5060_v26, %v2027_v10 }
 0x291   : > { %3083 = vst.msk [vmem:[%s5281_s25 + $0x10] sm:$0xff] %vm1019_vm5, %v3051_v14  ;;  %3301 = vmatmul.msk.f32.gmra.mxu3 %vm2355_vm9, %v2307_v53  ;;  %3335 = vmatmul.msk.f32.gmra.mxu0 %vm2355_vm9, %v2307_v53 }
 0x292   : > { %3366 = vmatmul.msk.f32.gmra.mxu1 %vm2355_vm9, %v2307_v53  ;;  %v2481_v3 = vpop.f32.mrf.mxu3 }
 0x293   : > { %v2601_v40 = vadd.f32 %v2600_v55, %v2481_v3 }
 0x294   : > { %v2749_v51 = vpop.f32.mrf.mxu1 }
 0x295   : > { %v2839_v9 = vadd.f32 %v2749_v51, %v2598_v25  ;;  %v2201_v44 = vpop.permute.xlu1 %2200 }
 0x296   : > { %v2308_v12 = vsel %vm2286_vm8, %v2275_v4, %v2201_v44 }
 0x297   : > { %v3052_v41 = vadd.f32 %v2962_v63, %v2839_v9  ;;  %v2606_v13 = vpop.f32.mrf.mxu0  ;;  %v2205_v48 = vpop.permute.xlu2 %2204 }
 0x298   : > { %3412 = vmatmul.msk.f32.gmra.mxu2 %vm306_vm0, %v5534_v28  ;;  %v2974_v63 = vpop.f32.mrf.mxu2 }
 0x299   : > { %3084 = vst.msk [vmem:[%s5281_s25 + $0x18] sm:$0xff] %vm1019_vm5, %v3052_v41  ;;  %3302 = vmatmul.msk.f32.gmra.mxu3 %vm2355_vm9, %v2308_v12  ;;  %3336 = vmatmul.msk.f32.gmra.mxu0 %vm2355_vm9, %v2308_v12 }
 0x29a   : > { %3367 = vmatmul.msk.f32.gmra.mxu1 %vm2355_vm9, %v2308_v12  ;;  %v2484_v57 = vpop.f32.mrf.mxu3 }
 0x29d   : > { %v2203_v59 = vpop.permute.xlu0 %2202  ;;  %v2029_v2 = vpop.permute.xlu1 %2028 }
 0x29e   : > { %v2309_v37 = vsel %vm2286_vm8, %v2276_v27, %v2203_v59  ;;  %v2277_v26 = vsel %vm1019_vm5, %v5070_v24, %v2029_v2  ;;  %v2604_v24 = vadd.f32 %v2603_v62, %v2484_v57 }
 0x29f   : > { %v2609_v17 = vpop.f32.mrf.mxu0  ;;  %v2310_v39 = vsel %vm2286_vm8, %v2277_v26, %v2205_v48 }
 0x2a0   : > { %3413 = vmatmul.msk.f32.gmra.mxu2 %vm306_vm0, %v5535_v19  ;;  %v2977_v21 = vpop.f32.mrf.mxu2 }
 0x2a1   : > { %3303 = vmatmul.msk.f32.gmra.mxu3 %vm2355_vm9, %v2309_v37  ;;  %3337 = vmatmul.msk.f32.gmra.mxu0 %vm2355_vm9, %v2309_v37 }
 0x2a2   : > { %3368 = vmatmul.msk.f32.gmra.mxu1 %vm2355_vm9, %v2309_v37 }
 0x2a4   : > { %v2752_v29 = vpop.f32.mrf.mxu1 }
 0x2a5   : > { %v2840_v22 = vadd.f32 %v2752_v29, %v2601_v40 }
 0x2a7   : > { %v3053_v1 = vadd.f32 %v2965_v34, %v2840_v22  ;;  %v2612_v15 = vpop.f32.mrf.mxu0  ;;  %v2033_v34 = vpop.permute.xlu2 %2032 }
 0x2a8   : > { %3414 = vmatmul.msk.f32.gmra.mxu2 %vm306_vm0, %v5536_v61  ;;  %v2279_v52 = vsel %vm1019_vm5, %v5111_v43, %v2033_v34  ;;  %v2980_v49 = vpop.f32.mrf.mxu2 }
 0x2a9   : > { %3085 = vst.msk [vmem:[%s5281_s25 + $0x20] sm:$0xff] %vm1019_vm5, %v3053_v1  ;;  %3304 = vmatmul.msk.f32.gmra.mxu3 %vm2355_vm9, %v2310_v39  ;;  %3338 = vmatmul.msk.f32.gmra.mxu0 %vm2355_vm9, %v2310_v39 }
 0x2aa   : > { %3369 = vmatmul.msk.f32.gmra.mxu1 %vm2355_vm9, %v2310_v39  ;;  %v2487_v60 = vpop.f32.mrf.mxu3 }
 0x2ab   : > { %v2607_v53 = vadd.f32 %v2606_v13, %v2487_v60 }
 0x2ac   : > { %v2755_v0 = vpop.f32.mrf.mxu1 }
 0x2ad   : > { %v2841_v6 = vadd.f32 %v2755_v0, %v2604_v24  ;;  %v2031_v58 = vpop.permute.xlu0 %2030  ;;  %v2207_v23 = vpop.permute.xlu1 %2206 }
 0x2ae   : > { %v2278_v55 = vsel %vm1019_vm5, %v5106_v11, %v2031_v58 }
 0x2af   : > { %v2311_v31 = vsel %vm2286_vm8, %v2278_v55, %v2207_v23  ;;  %v3054_v56 = vadd.f32 %v2968_v8, %v2841_v6  ;;  %v2615_v54 = vpop.f32.mrf.mxu0  ;;  %v2211_v32 = vpop.permute.xlu2 %2210 }
 0x2b0   : > { %v2983_v4 = vpop.f32.mrf.mxu2 }
 0x2b1   : > { %3086 = vst.msk [vmem:[%s5281_s25 + $0x28] sm:$0xff] %vm1019_vm5, %v3054_v56  ;;  %3305 = vmatmul.msk.f32.gmra.mxu3 %vm2355_vm9, %v2311_v31  ;;  %3339 = vmatmul.msk.f32.gmra.mxu0 %vm2355_vm9, %v2311_v31 }
 0x2b2   : > { %3370 = vmatmul.msk.f32.gmra.mxu1 %vm2355_vm9, %v2311_v31  ;;  %v2490_v46 = vpop.f32.mrf.mxu3 }
 0x2b3   : > { %v2610_v12 = vadd.f32 %v2609_v17, %v2490_v46 }
 0x2b5   : > { %v2209_v35 = vpop.permute.xlu0 %2208  ;;  %v2035_v14 = vpop.permute.xlu1 %2034 }
 0x2b6   : > { %v2312_v11 = vsel %vm2286_vm8, %v2279_v52, %v2209_v35  ;;  %v2280_v50 = vsel %vm1019_vm5, %v5134_v36, %v2035_v14 }
 0x2b7   : > { %v2313_v51 = vsel %vm2286_vm8, %v2280_v50, %v2211_v32  ;;  %v2039_v3 = vpop.permute.xlu2 %2038 }
 0x2b8   : > { %v5373_v59 = vpop.f32.mrf.mxu2  ;;  %v2282_v19 = vsel %vm1019_vm5, %v5161_v18, %v2039_v3 }
 0x2b9   : > { %3306 = vmatmul.msk.f32.gmra.mxu3 %vm2355_vm9, %v2312_v11  ;;  %3340 = vmatmul.msk.f32.gmra.mxu0 %vm2355_vm9, %v2312_v11 }
 0x2ba   : > { %3371 = vmatmul.msk.f32.gmra.mxu1 %vm2355_vm9, %v2312_v11 }
 0x2bb   : > { %v2618_v62 = vpop.f32.mrf.mxu0 }
 0x2bc   : > { %v2758_v20 = vpop.f32.mrf.mxu1 }
 0x2bd   : > { %v2842_v43 = vadd.f32 %v2758_v20, %v2607_v53  ;;  %v2037_v9 = vpop.permute.xlu0 %2036  ;;  %v2213_v41 = vpop.permute.xlu1 %2212 }
 0x2be   : > { %v2281_v36 = vsel %vm1019_vm5, %v5126_v5, %v2037_v9 }
 0x2bf   : > { %v3055_v25 = vadd.f32 %v2971_v7, %v2842_v43  ;;  %v2314_v27 = vsel %vm2286_vm8, %v2281_v36, %v2213_v41 }
 0x2c0   : > { %v5383_v26 = vpop.f32.mrf.mxu2 }
 0x2c1   : > { %3087 = vst.msk [vmem:[%s5281_s25 + $0x30] sm:$0xff] %vm1019_vm5, %v3055_v25  ;;  %3307 = vmatmul.msk.f32.gmra.mxu3 %vm2355_vm9, %v2313_v51  ;;  %3341 = vmatmul.msk.f32.gmra.mxu0 %vm2355_vm9, %v2313_v51  ;;  %v2493_v44 = vpop.f32.mrf.mxu3 }
 0x2c2   : > { %3372 = vmatmul.msk.f32.gmra.mxu1 %vm2355_vm9, %v2313_v51  ;;  %v2613_v7 = vadd.f32 %v2612_v15, %v2493_v44 }
 0x2c3   : > { %v2621_v28 = vpop.f32.mrf.mxu0 }
 0x2c4   : > { %v2761_v8 = vpop.f32.mrf.mxu1 }
 0x2c5   : > { %v2843_v13 = vadd.f32 %v2761_v8, %v2610_v12  ;;  %v2215_v5 = vpop.permute.xlu0 %2214  ;;  %v2041_v22 = vpop.permute.xlu1 %2040 }
 0x2c6   : > { %v2315_v40 = vsel %vm2286_vm8, %v2282_v19, %v2215_v5  ;;  %v2283_v18 = vsel %vm1019_vm5, %v5156_v45, %v2041_v22 }
 0x2c7   : > { %v3056_v10 = vadd.f32 %v2974_v63, %v2843_v13  ;;  %v2217_v63 = vpop.permute.xlu2 %2216 }
 0x2c8   : > { %v2316_v24 = vsel %vm2286_vm8, %v2283_v18, %v2217_v63  ;;  %v2992_v0 = vpop.f32.mrf.mxu2 }
 0x2c9   : > { %3088 = vst.msk [vmem:[%s5281_s25 + $0x38] sm:$0xff] %vm1019_vm5, %v3056_v10  ;;  %3308 = vmatmul.msk.f32.gmra.mxu3 %vm2355_vm9, %v2314_v27  ;;  %3342 = vmatmul.msk.f32.gmra.mxu0 %vm2355_vm9, %v2314_v27  ;;  %v2496_v37 = vpop.f32.mrf.mxu3 }
 0x2ca   : > { %3373 = vmatmul.msk.f32.gmra.mxu1 %vm2355_vm9, %v2314_v27  ;;  %v2616_v57 = vadd.f32 %v2615_v54, %v2496_v37 }
 0x2cd   : > { %v2043_v6 = vpop.permute.xlu0 %2042  ;;  %v2219_v55 = vpop.permute.xlu1 %2218 }
 0x2ce   : > { %v2624_v17 = vpop.f32.mrf.mxu0  ;;  %v2284_v23 = vsel %vm1019_vm5, %v5193_v47, %v2043_v6 }
 0x2cf   : > { %v2764_v2 = vpop.f32.mrf.mxu1  ;;  %v2045_v35 = vpop.permute.xlu2 %2044 }
 0x2d0   : > { %v2844_v29 = vadd.f32 %v2764_v2, %v2613_v7  ;;  %v2995_v54 = vpop.f32.mrf.mxu2  ;;  %v2285_v14 = vsel %vm1019_vm5, %v5190_v16, %v2045_v35 }
 0x2d1   : > { %3309 = vmatmul.msk.f32.gmra.mxu3 %vm2355_vm9, %v2315_v40  ;;  %3343 = vmatmul.msk.f32.gmra.mxu0 %vm2355_vm9, %v2315_v40 }
 0x2d2   : > { %v3057_v48 = vadd.f32 %v2977_v21, %v2844_v29  ;;  %3374 = vmatmul.msk.f32.gmra.mxu1 %vm2355_vm9, %v2315_v40  ;;  %v2317_v21 = vsel %vm2286_vm8, %v2284_v23, %v2219_v55 }
 0x2d4   : > { %3089 = vst.msk [vmem:[%s5281_s25 + $0x40] sm:$0xff] %vm1019_vm5, %v3057_v48  ;;  %v2499_v1 = vpop.f32.mrf.mxu3 }
 0x2d5   : > { %v2619_v31 = vadd.f32 %v2618_v62, %v2499_v1  ;;  %v2221_v11 = vpop.permute.xlu0 %2220  ;;  %v2331_v43 = vpop.permute.xlu1 %2330 }
 0x2d6   : > { %v2627_v39 = vpop.f32.mrf.mxu0  ;;  %v2318_v62 = vsel %vm2286_vm8, %v2285_v14, %v2221_v11  ;;  %v2347_v16 = vsel %vm1019_vm5, %v5215_v33, %v2331_v43 }
 0x2d7   : > { %v2767_v61 = vpop.f32.mrf.mxu1  ;;  %v2342_v51 = vpop.permute.xlu2 %2341 }
 0x2d8   : > { %v2845_v15 = vadd.f32 %v2767_v61, %v2616_v57  ;;  %v2998_v50 = vpop.f32.mrf.mxu2  ;;  %v2349_v8 = vsel %vm2286_vm8, %v2347_v16, %v2342_v51 }
 0x2d9   : > { %3310 = vmatmul.msk.f32.gmra.mxu3 %vm2355_vm9, %v2316_v24  ;;  %3344 = vmatmul.msk.f32.gmra.mxu0 %vm2355_vm9, %v2316_v24 }
 0x2da   : > { %v3058_v58 = vadd.f32 %v2980_v49, %v2845_v15  ;;  %3375 = vmatmul.msk.f32.gmra.mxu1 %vm2355_vm9, %v2316_v24 }
 0x2dc   : > { %3090 = vst.msk [vmem:[%s5281_s25 + $0x48] sm:$0xff] %vm1019_vm5, %v3058_v58  ;;  %v2502_v45 = vpop.f32.mrf.mxu3 }
 0x2dd   : > { %v2622_v49 = vadd.f32 %v2621_v28, %v2502_v45  ;;  %v2333_v41 = vpop.permute.xlu0 %2332  ;;  %v2344_v10 = vpop.permute.xlu1 %2343 }
 0x2de   : > { %v2630_v56 = vpop.f32.mrf.mxu0  ;;  %v2348_v33 = vsel %vm1019_vm5, %v5212_v42, %v2333_v41 }
 0x2df   : > { %v2770_v60 = vpop.f32.mrf.mxu1  ;;  %v2350_v3 = vsel %vm2286_vm8, %v2348_v33, %v2344_v10  ;;  %v2693_v7 = vpop.permute.xlu2 %2692 }
 0x2e0   : > { %v2846_v34 = vadd.f32 %v2770_v60, %v2619_v31  ;;  %v3001_v36 = vpop.f32.mrf.mxu2  ;;  %v2709_v42 = vsel %vm1019_vm5, %v5245_v30, %v2693_v7 }
 0x2e1   : > { %3311 = vmatmul.msk.f32.gmra.mxu3 %vm2355_vm9, %v2317_v21  ;;  %3345 = vmatmul.msk.f32.gmra.mxu0 %vm2355_vm9, %v2317_v21 }
 0x2e2   : > { %v3059_v52 = vadd.f32 %v2983_v4, %v2846_v34  ;;  %3376 = vmatmul.msk.f32.gmra.mxu1 %vm2355_vm9, %v2317_v21 }
 0x2e4   : > { %3091 = vst.msk [vmem:[%s5281_s25 + $0x50] sm:$0xff] %vm1019_vm5, %v3059_v52  ;;  %v2505_v47 = vpop.f32.mrf.mxu3 }
 0x2e5   : > { %v2625_v4 = vadd.f32 %v2624_v17, %v2505_v47  ;;  %v2704_v40 = vpop.permute.xlu0 %2703  ;;  %v2695_v1 = vpop.permute.xlu1 %2694 }
 0x2e6   : > { %v2633_v46 = vpop.f32.mrf.mxu0  ;;  %v2711_v22 = vsel %vm2286_vm8, %v2709_v42, %v2704_v40  ;;  %v2710_v63 = vsel %vm1019_vm5, %v5247_v38, %v2695_v1 }
 0x2e7   : > { %v2773_v53 = vpop.f32.mrf.mxu1  ;;  %v2706_v61 = vpop.permute.xlu2 %2705 }
 0x2e8   : > { %v2847_v20 = vadd.f32 %v2773_v53, %v2622_v49  ;;  %v3004_v19 = vpop.f32.mrf.mxu2 }
 0x2e9   : > { %3312 = vmatmul.msk.f32.gmra.mxu3 %vm2355_vm9, %v2318_v62  ;;  %3346 = vmatmul.msk.f32.gmra.mxu0 %vm2355_vm9, %v2318_v62 }
 0x2ea   : > { %v3060_v32 = vadd.f32 %v5373_v59, %v2847_v20  ;;  %3377 = vmatmul.msk.f32.gmra.mxu1 %vm2355_vm9, %v2318_v62 }
 0x2ec   : > { %3092 = vst.msk [vmem:[%s5281_s25 + $0x58] sm:$0xff] %vm1019_vm5, %v3060_v32  ;;  %v2508_v25 = vpop.f32.mrf.mxu3 }
 0x2ed   : > { %v2628_v27 = vadd.f32 %v2627_v39, %v2508_v25 }
 0x2ee   : > { %v2636_v9 = vpop.f32.mrf.mxu0 }
 0x2ef   : > { %v2776_v44 = vpop.f32.mrf.mxu1 }
 0x2f0   : > { %v2848_v12 = vadd.f32 %v2776_v44, %v2625_v4  ;;  %v3007_v30 = vpop.f32.mrf.mxu2 }
 0x2f1   : > { %3313 = vmatmul.msk.f32.gmra.mxu3 %vm2355_vm9, %v2349_v8 }
 0x2f2   : > { %v3061_v13 = vadd.f32 %v5383_v26, %v2848_v12  ;;  %3378 = vmatmul.msk.f32.gmra.mxu1 %vm2355_vm9, %v2349_v8 }
 0x2f4   : > { %3093 = vst.msk [vmem:[%s5281_s25 + $0x60] sm:$0xff] %vm1019_vm5, %v3061_v13  ;;  %v2511_v28 = vpop.f32.mrf.mxu3 }
 0x2f5   : > { %v2631_v29 = vadd.f32 %v2630_v56, %v2511_v28 }
 0x2f6   : > { %v2639_v5 = vpop.f32.mrf.mxu0 }
 0x2f7   : > { %v2779_v59 = vpop.f32.mrf.mxu1 }
 0x2f8   : > { %v2849_v37 = vadd.f32 %v2779_v59, %v2628_v27  ;;  %v3010_v56 = vpop.f32.mrf.mxu2 }
 0x2f9   : > { %3314 = vmatmul.msk.f32.gmra.mxu3 %vm2355_vm9, %v2350_v3 }
 0x2fa   : > { %v3062_v17 = vadd.f32 %v2992_v0, %v2849_v37  ;;  %3379 = vmatmul.msk.f32.gmra.mxu1 %vm2355_vm9, %v2350_v3  ;;  %v2712_v0 = vsel %vm2286_vm8, %v2710_v63, %v2706_v61 }
 0x2fc   : > { %3094 = vst.msk [vmem:[%s5281_s25 + $0x68] sm:$0xff] %vm1019_vm5, %v3062_v17  ;;  %v2514_v2 = vpop.f32.mrf.mxu3 }
 0x2fd   : > { %v2634_v15 = vadd.f32 %v2633_v46, %v2514_v2 }
 0x2fe   : > { %v2642_v57 = vpop.f32.mrf.mxu0 }
 0x2ff   : > { %v2782_v26 = vpop.f32.mrf.mxu1 }
 0x300   : > { %v2850_v48 = vadd.f32 %v2782_v26, %v2631_v29  ;;  %v3013_v47 = vpop.f32.mrf.mxu2 }
 0x302   : > { %v3063_v18 = vadd.f32 %v2995_v54, %v2850_v48  ;;  %3380 = vmatmul.msk.f32.gmra.mxu1 %vm2355_vm9, %v2711_v22 }
 0x304   : > { %3095 = vst.msk [vmem:[%s5281_s25 + $0x70] sm:$0xff] %vm1019_vm5, %v3063_v18  ;;  %v2517_v39 = vpop.f32.mrf.mxu3 }
 0x305   : > { %v2637_v55 = vadd.f32 %v2636_v9, %v2517_v39 }
 0x306   : > { %v2645_v23 = vpop.f32.mrf.mxu0 }
 0x307   : > { %v2785_v24 = vpop.f32.mrf.mxu1 }
 0x308   : > { %v2851_v6 = vadd.f32 %v2785_v24, %v2634_v15 }
 0x30a   : > { %v3064_v58 = vadd.f32 %v2998_v50, %v2851_v6  ;;  %3381 = vmatmul.msk.f32.gmra.mxu1 %vm2355_vm9, %v2712_v0  ;;  %v3016_v50 = vpop.f32.mrf.mxu2 }
 0x30c   : > { %3096 = vst.msk [vmem:[%s5281_s25 + $0x78] sm:$0xff] %vm1019_vm5, %v3064_v58  ;;  %v2520_v45 = vpop.f32.mrf.mxu3 }
 0x30d   : > { %v2640_v34 = vadd.f32 %v2639_v5, %v2520_v45 }
 0x30e   : > { %v2648_v54 = vpop.f32.mrf.mxu0 }
 0x30f   : > { %v2788_v31 = vpop.f32.mrf.mxu1 }
 0x310   : > { %v2852_v38 = vadd.f32 %v2788_v31, %v2637_v55 }
 0x312   : > { %v3065_v60 = vadd.f32 %v3001_v36, %v2852_v38  ;;  %v3019_v44 = vpop.f32.mrf.mxu2 }
 0x314   : > { %3097 = vst.msk [vmem:[%s5281_s25 + $0x80] sm:$0xff] %vm1019_vm5, %v3065_v60  ;;  %v2523_v21 = vpop.f32.mrf.mxu3 }
 0x315   : > { %v2643_v46 = vadd.f32 %v2642_v57, %v2523_v21 }
 0x316   : > { %v2651_v62 = vpop.f32.mrf.mxu0 }
 0x317   : > { %v2791_v52 = vpop.f32.mrf.mxu1 }
 0x318   : > { %v2853_v35 = vadd.f32 %v2791_v52, %v2640_v34 }
 0x31a   : > { %v3066_v11 = vadd.f32 %v3004_v19, %v2853_v35  ;;  %v3022_v27 = vpop.f32.mrf.mxu2 }
 0x31c   : > { %3098 = vst.msk [vmem:[%s5281_s25 + $0x88] sm:$0xff] %vm1019_vm5, %v3066_v11  ;;  %v2526_v49 = vpop.f32.mrf.mxu3 }
 0x31d   : > { %v2646_v32 = vadd.f32 %v2645_v23, %v2526_v49 }
 0x31e   : > { %v2654_v4 = vpop.f32.mrf.mxu0 }
 0x31f   : > { %v2794_v14 = vpop.f32.mrf.mxu1 }
 0x320   : > { %v2854_v53 = vadd.f32 %v2794_v14, %v2643_v46 }
 0x322   : > { %v3067_v20 = vadd.f32 %v3007_v30, %v2854_v53  ;;  %v3025_v2 = vpop.f32.mrf.mxu2 }
 0x324   : > { %3099 = vst.msk [vmem:[%s5281_s25 + $0x90] sm:$0xff] %vm1019_vm5, %v3067_v20  ;;  %v2529_v43 = vpop.f32.mrf.mxu3 }
 0x325   : > { %v2649_v12 = vadd.f32 %v2648_v54, %v2529_v43 }
 0x326   : > { %v2657_v28 = vpop.f32.mrf.mxu0 }
 0x327   : > { %v2797_v25 = vpop.f32.mrf.mxu1 }
 0x328   : > { %v2855_v16 = vadd.f32 %v2797_v25, %v2646_v32 }
 0x32a   : > { %v3068_v51 = vadd.f32 %v3010_v56, %v2855_v16  ;;  %v3028_v18 = vpop.f32.mrf.mxu2 }
 0x32c   : > { %3100 = vst.msk [vmem:[%s5281_s25 + $0x98] sm:$0xff] %vm1019_vm5, %v3068_v51  ;;  %v2532_v9 = vpop.f32.mrf.mxu3 }
 0x32d   : > { %v2652_v33 = vadd.f32 %v2651_v62, %v2532_v9 }
 0x32e   : > { %v2660_v7 = vpop.f32.mrf.mxu0 }
 0x32f   : > { %v2800_v8 = vpop.f32.mrf.mxu1 }
 0x330   : > { %v2856_v36 = vadd.f32 %v2800_v8, %v2649_v12 }
 0x332   : > { %v3069_v41 = vadd.f32 %v3013_v47, %v2856_v36  ;;  %v3031_v0 = vpop.f32.mrf.mxu2 }
 0x334   : > { %3101 = vst.msk [vmem:[%s5281_s25 + $0xa0] sm:$0xff] %vm1019_vm5, %v3069_v41  ;;  %v2535_v13 = vpop.f32.mrf.mxu3 }
 0x335   : > { %v2655_v5 = vadd.f32 %v2654_v4, %v2535_v13 }
 0x336   : > { %v2663_v48 = vpop.f32.mrf.mxu0 }
 0x337   : > { %v2803_v10 = vpop.f32.mrf.mxu1 }
 0x338   : > { %v2857_v59 = vadd.f32 %v2803_v10, %v2652_v33 }
 0x33a   : > { %v3070_v3 = vadd.f32 %v3016_v50, %v2857_v59  ;;  %v3034_v60 = vpop.f32.mrf.mxu2 }
 0x33c   : > { %3102 = vst.msk [vmem:[%s5281_s25 + $0xa8] sm:$0xff] %vm1019_vm5, %v3070_v3  ;;  %v2538_v37 = vpop.f32.mrf.mxu3 }
 0x33d   : > { %v2658_v29 = vadd.f32 %v2657_v28, %v2538_v37 }
 0x33e   : > { %v2666_v15 = vpop.f32.mrf.mxu0 }
 0x33f   : > { %v2806_v17 = vpop.f32.mrf.mxu1 }
 0x340   : > { %v2858_v19 = vadd.f32 %v2806_v17, %v2655_v5 }
 0x342   : > { %v3071_v42 = vadd.f32 %v3019_v44, %v2858_v19  ;;  %v3037_v49 = vpop.f32.mrf.mxu2 }
 0x344   : > { %3103 = vst.msk [vmem:[%s5281_s25 + $0xb0] sm:$0xff] %vm1019_vm5, %v3071_v42  ;;  %v2541_v40 = vpop.f32.mrf.mxu3 }
 0x345   : > { %v2661_v39 = vadd.f32 %v2660_v7, %v2541_v40 }
 0x346   : > { %v2669_v31 = vpop.f32.mrf.mxu0 }
 0x347   : > { %v2809_v26 = vpop.f32.mrf.mxu1 }
 0x348   : > { %v2859_v22 = vadd.f32 %v2809_v26, %v2658_v29 }
 0x34a   : > { %v3072_v1 = vadd.f32 %v3022_v27, %v2859_v22  ;;  %v3040_v32 = vpop.f32.mrf.mxu2 }
 0x34c   : > { %3104 = vst.msk [vmem:[%s5281_s25 + $0xb8] sm:$0xff] %vm1019_vm5, %v3072_v1  ;;  %v2544_v57 = vpop.f32.mrf.mxu3 }
 0x34d   : > { %v2664_v6 = vadd.f32 %v2663_v48, %v2544_v57 }
 0x34e   : > { %v2672_v35 = vpop.f32.mrf.mxu0 }
 0x34f   : > { %v2812_v63 = vpop.f32.mrf.mxu1 }
 0x350   : > { %v2860_v61 = vadd.f32 %v2812_v63, %v2661_v39 }
 0x352   : > { %v3073_v30 = vadd.f32 %v3025_v2, %v2860_v61  ;;  %v3043_v12 = vpop.f32.mrf.mxu2 }
 0x354   : > { %3105 = vst.msk [vmem:[%s5281_s25 + $0xc0] sm:$0xff] %vm1019_vm5, %v3073_v30  ;;  %v2547_v24 = vpop.f32.mrf.mxu3 }
 0x355   : > { %v2667_v56 = vadd.f32 %v2666_v15, %v2547_v24 }
 0x356   : > { %v2675_v50 = vpop.f32.mrf.mxu0 }
 0x357   : > { %v2815_v58 = vpop.f32.mrf.mxu1 }
 0x358   : > { %v2861_v45 = vadd.f32 %v2815_v58, %v2664_v6 }
 0x35a   : > { %v3074_v23 = vadd.f32 %v3028_v18, %v2861_v45  ;;  %v3046_v59 = vpop.f32.mrf.mxu2 }
 0x35c   : > { %3106 = vst.msk [vmem:[%s5281_s25 + $0xc8] sm:$0xff] %vm1019_vm5, %v3074_v23  ;;  %v2550_v55 = vpop.f32.mrf.mxu3 }
 0x35d   : > { %v2670_v52 = vadd.f32 %v2669_v31, %v2550_v55 }
 0x35e   : > { %v2678_v44 = vpop.f32.mrf.mxu0 }
 0x35f   : > { %v2818_v38 = vpop.f32.mrf.mxu1 }
 0x360   : > { %v2862_v21 = vadd.f32 %v2818_v38, %v2667_v56 }
 0x362   : > { %v3075_v34 = vadd.f32 %v3031_v0, %v2862_v21 }
 0x364   : > { %3107 = vst.msk [vmem:[%s5281_s25 + $0xd0] sm:$0xff] %vm1019_vm5, %v3075_v34  ;;  %v2553_v54 = vpop.f32.mrf.mxu3 }
 0x365   : > { %v2673_v14 = vadd.f32 %v2672_v35, %v2553_v54 }
 0x366   : > { %v2681_v33 = vpop.f32.mrf.mxu0 }
 0x367   : > { %v2821_v47 = vpop.f32.mrf.mxu1 }
 0x368   : > { %v2863_v11 = vadd.f32 %v2821_v47, %v2670_v52 }
 0x36a   : > { %v3076_v46 = vadd.f32 %v3034_v60, %v2863_v11 }
 0x36c   : > { %3108 = vst.msk [vmem:[%s5281_s25 + $0xd8] sm:$0xff] %vm1019_vm5, %v3076_v46  ;;  %v2556_v53 = vpop.f32.mrf.mxu3 }
 0x36d   : > { %v2676_v25 = vadd.f32 %v2675_v50, %v2556_v53 }
 0x36f   : > { %v2824_v62 = vpop.f32.mrf.mxu1 }
 0x370   : > { %v2864_v20 = vadd.f32 %v2824_v62, %v2673_v14 }
 0x372   : > { %v3077_v43 = vadd.f32 %v3037_v49, %v2864_v20 }
 0x374   : > { %3109 = vst.msk [vmem:[%s5281_s25 + $0xe0] sm:$0xff] %vm1019_vm5, %v3077_v43  ;;  %v2559_v4 = vpop.f32.mrf.mxu3 }
 0x375   : > { %v2679_v8 = vadd.f32 %v2678_v44, %v2559_v4 }
 0x377   : > { %v2827_v16 = vpop.f32.mrf.mxu1 }
 0x378   : > { %v2865_v51 = vadd.f32 %v2827_v16, %v2676_v25 }
 0x37a   : > { %v3078_v9 = vadd.f32 %v3040_v32, %v2865_v51 }
 0x37c   : > { %3110 = vst.msk [vmem:[%s5281_s25 + $0xe8] sm:$0xff] %vm1019_vm5, %v3078_v9  ;;  %v2562_v28 = vpop.f32.mrf.mxu3 }
 0x37d   : > { %v2682_v10 = vadd.f32 %v2681_v33, %v2562_v28 }
 0x37f   : > { %v2830_v36 = vpop.f32.mrf.mxu1 }
 0x380   : > { %v2866_v41 = vadd.f32 %v2830_v36, %v2679_v8 }
 0x382   : > { %v3079_v13 = vadd.f32 %v3043_v12, %v2866_v41 }
 0x384   : > { %3111 = vst.msk [vmem:[%s5281_s25 + $0xf0] sm:$0xff] %vm1019_vm5, %v3079_v13 }
 0x387   : > { %v2833_v27 = vpop.f32.mrf.mxu1 }
 0x388   : > { %v2867_v3 = vadd.f32 %v2833_v27, %v2682_v10 }
 0x38a   : > { %v3080_v37 = vadd.f32 %v3046_v59, %v2867_v3 }
 0x38c   : > { %3112 = vst.msk [vmem:[%s5281_s25 + $0xf8] sm:$0xff] %vm1019_vm5, %v3080_v37 }
 0x38d PF: > { %s18_s27 = sadd.s32 1, %s3449_s27  }
 0x38e   : > { %p15_p4 = scmp.ge.s32.totalorder %s18_s27, 4  }
 0x390   :  { %17 = sbr.rel (!%p15_p4) target bundleno = 1 (0x1), region = 88 }

</bundles_post_ra>
